<compile_context>
chip_gen: v7x
topology: tpu7x:2x2x1
jax: 0.10.0
libtpu: 0.0.40
codegen_flags: <defaults>
</compile_context>

<pallas_src>
import math

import jax
import jax.numpy as jnp
from jax.experimental import pallas as pl
from jax.experimental.pallas import tpu as pltpu

# ----------------------------- configuration --------------------------------
B = 2                 # batch
IMG_CH = 3            # img_channels
IMG = 16              # image_size
PATCH = 4             # ViT patch size -> 4x4 = 16 tokens
NUM_TOKENS = (IMG // PATCH) ** 2
SEQ = NUM_TOKENS + 1  # with [CLS]
D_MODEL = 32          # encoder width (args.d_model)
HEADS = 4
DH = D_MODEL // HEADS
DEPTH = 2             # encoder blocks
ENC_MLP_HIDDEN = 4 * D_MODEL
MS_LAYERS = (0, 1)    # args.ms_which_encoder_layers
ENCODER_FINAL_NORM = True
NUM_SLOTS = 4
SLOT_SIZE = 32        # args.slot_size  (== D_MODEL in this config)
NUM_ITERS = 2         # args.num_iterations
SLOT_MLP_HIDDEN = 64  # args.mlp_hidden_size
DEC_HIDDEN = 64       # args.mlp_dec_hidden
H_ENC = W_ENC = int(math.isqrt(NUM_TOKENS))

MATMUL_DTYPE = jnp.bfloat16   # MXU input dtype; accumulation is always f32

# packed-output row layout (lane width = D_MODEL = 32)
R_RECON = 0                       # rows  0:16  -> dec_recon (N, D)
R_SLOTS = R_RECON + NUM_TOKENS    # rows 16:20  -> slots (K, S)
R_ATTN = R_SLOTS + NUM_SLOTS      # rows 20:24  -> [attn_t | logits_t] (K, 2N)
R_MASK = R_ATTN + NUM_SLOTS       # rows 24:28  -> [masks_t | loss]    (K, 2N)
PACK_ROWS = R_MASK + NUM_SLOTS


# --------------------------- in-kernel helpers --------------------------------
def _mm(a, w, b=None):
    """Matmul with f32 accumulation; casts activation to the weight dtype."""
    y = jnp.dot(a.astype(w.dtype), w, preferred_element_type=jnp.float32)
    if b is not None:
        y = y + b
    return y


def _mm_t(a, b_mat):
    """a @ b_mat.T without materializing a transpose (contract last dims)."""
    return jax.lax.dot_general(a, b_mat, (((1,), (1,)), ((), ())),
                               preferred_element_type=jnp.float32)


def _ln(x, g, b, eps=1e-5):
    mu = jnp.mean(x, axis=-1, keepdims=True)
    var = jnp.mean((x - mu) ** 2, axis=-1, keepdims=True)
    return (x - mu) * jax.lax.rsqrt(var + eps) * g + b


def _softmax_lastdim(s):
    s = s - jnp.max(s, axis=-1, keepdims=True)
    e = jnp.exp(s)
    return e / jnp.sum(e, axis=-1, keepdims=True)


# ------------------------------ BlockSpec helpers -----------------------------
def _const_spec(a):
    nd = a.ndim
    return pl.BlockSpec(a.shape, lambda b, _n=nd: (0,) * _n)


def _batch_spec(a):
    nd = a.ndim
    return pl.BlockSpec((1,) + tuple(a.shape[1:]),
                        lambda b, _n=nd: (b,) + (0,) * (_n - 1))


# ------------------------------ the fused kernel ------------------------------
_PARAM_ORDER = (
    "patch_w", "bias_pos",
    "enc_qkv_w", "enc_qkv_b", "enc_proj_w", "enc_fc1_w", "enc_fc1_b",
    "enc_fc2_w", "enc_vec", "enc_norm",
    "sa_in_w", "sa_kv_w", "sa_q_w", "sa_gru_wih", "sa_gru_whh", "sa_gru_b",
    "sa_mlp_w1", "sa_mlp_b1", "sa_mlp_w2", "sa_vec", "sa_slots_init",
    "dec_pos", "dec_fc1_w", "dec_fc2_w", "dec_fc3_w", "dec_b",
)


def _msspot_kernel(
    x_ref,                                            # (1, SEQ, C*P*P) f32
    patch_w, bias_pos,                                # (48, D) bf16, (SEQ, D)
    enc_qkv_w, enc_qkv_b, enc_proj_w,                 # (L, D, 3D) (L, 1, 3D) (L, D, D)
    enc_fc1_w, enc_fc1_b, enc_fc2_w,                  # (L, D, 4D) (L, 1, 4D) (L, 4D, D)
    enc_vec, enc_norm,                                # (L, 6, D), (2, D)
    sa_in_w, sa_kv_w, sa_q_w,                         # (2, D, D) (D, 2S) (S, S)
    sa_gru_wih, sa_gru_whh, sa_gru_b,                 # (S, 3S) (S, 3S) (2, 3S)
    sa_mlp_w1, sa_mlp_b1, sa_mlp_w2,                  # (S, H) (1, H) (H, S)
    sa_vec, sa_slots_init,                            # (11, D), (K, S)
    dec_pos, dec_fc1_w, dec_fc2_w, dec_fc3_w, dec_b,  # (N, S) (S, H) (H, H) (H, H) (3, H)
    out_ref,                                          # (1, PACK_ROWS, D) f32
):
    f32 = jnp.float32

    # ------------------------------ ViT encoder ------------------------------
    # row 0 of x_ref is zero; bias_pos carries cls + pos (+ patch bias on tokens)
    x = _mm(x_ref[0], patch_w[...]) + bias_pos[...]                 # (SEQ, D)
    scale = 1.0 / math.sqrt(DH)
    ms_feats = []
    for l in range(DEPTH):
        vec = enc_vec[l]                                            # (6, D)
        xn = _ln(x, vec[0:1], vec[1:2])
        qkv = _mm(xn, enc_qkv_w[l], enc_qkv_b[l])                   # (SEQ, 3D) f32
        heads = []
        for h in range(HEADS):
            q = qkv[:, h * DH:(h + 1) * DH]
            k = qkv[:, D_MODEL + h * DH:D_MODEL + (h + 1) * DH]
            v = qkv[:, 2 * D_MODEL + h * DH:2 * D_MODEL + (h + 1) * DH]
            s = _mm_t(q, k) * scale                                 # (SEQ, SEQ)
            p = _softmax_lastdim(s)
            heads.append(jnp.dot(p, v, preferred_element_type=f32))  # (SEQ, DH)
        o_cat = jnp.concatenate(heads, axis=-1)                     # (SEQ, D)
        x = x + _mm(o_cat, enc_proj_w[l]) + vec[4:5]
        hn = _ln(x, vec[2:3], vec[3:4])
        hmid = jax.nn.gelu(_mm(hn, enc_fc1_w[l], enc_fc1_b[l]))     # (SEQ, 4D)
        x = x + _mm(hmid, enc_fc2_w[l]) + vec[5:6]
        if l == DEPTH - 1 and ENCODER_FINAL_NORM:
            nm = enc_norm[...]
            x = _ln(x, nm[0:1], nm[1:2])
        if l in MS_LAYERS:
            ms_feats.append(x[1:, :])                               # drop [CLS] -> (N, D)

    emb_target = ms_feats[-1]                                       # (N, D), stays in vregs

    # ----------------------------- slot attention ----------------------------
    # TODO(synk): MultiScaleSlotAttentionEncoder source unavailable; multi-scale
    # fusion (concat_method) simplified to the mean over the selected layers.
    feats = ms_feats[0]
    for f in ms_feats[1:]:
        feats = feats + f
    feats = feats * (1.0 / len(ms_feats))

    sv = sa_vec[...]                                                # (11, D)
    xin = _ln(feats, sv[0:1], sv[1:2])
    xin = jnp.maximum(_mm(xin, sa_in_w[0], sv[2:3]), 0.0)
    xin = _mm(xin, sa_in_w[1], sv[3:4])
    inputs = _ln(xin, sv[4:5], sv[5:6])
    kv = _mm(inputs, sa_kv_w[...])                                  # (N, 2S)
    k_sa = kv[:, :SLOT_SIZE]
    v_sa = kv[:, SLOT_SIZE:]

    gb = sa_gru_b[...]                                              # (2, 3S)
    sa_scale = SLOT_SIZE ** -0.5
    slots = sa_slots_init[...]                                      # (K, S)
    attn_t = logits_t = None
    for _ in range(NUM_ITERS):                                      # unrolled
        slots_prev = slots
        sn = _ln(slots, sv[6:7], sv[7:8])
        q = _mm(sn, sa_q_w[...])                                    # (K, S)
        # scores slot-major (K, N): no transposes, lane-dense outputs
        logits_t = _mm_t(q, k_sa) * sa_scale                        # (K, N)
        mx = jnp.max(logits_t, axis=0, keepdims=True)
        e = jnp.exp(logits_t - mx)
        attn_t = e / jnp.sum(e, axis=0, keepdims=True)              # softmax over slots
        aw = attn_t + 1e-8
        w = aw / jnp.sum(aw, axis=1, keepdims=True)                 # weighted mean over tokens
        upd = jnp.dot(w, v_sa, preferred_element_type=f32)          # (K, S)
        # fused GRUCell: column blocks (r, z, n)
        gi = _mm(upd, sa_gru_wih[...]) + gb[0:1]
        gh = _mm(slots_prev, sa_gru_whh[...]) + gb[1:2]
        r = jax.nn.sigmoid(gi[:, :SLOT_SIZE] + gh[:, :SLOT_SIZE])
        z = jax.nn.sigmoid(gi[:, SLOT_SIZE:2 * SLOT_SIZE]
                           + gh[:, SLOT_SIZE:2 * SLOT_SIZE])
        n = jnp.tanh(gi[:, 2 * SLOT_SIZE:] + r * gh[:, 2 * SLOT_SIZE:])
        slots = (1.0 - z) * n + z * slots_prev
        # residual MLP
        sm = _ln(slots, sv[8:9], sv[9:10])
        hmid = jnp.maximum(_mm(sm, sa_mlp_w1[...], sa_mlp_b1[...]), 0.0)
        slots = slots + _mm(hmid, sa_mlp_w2[...]) + sv[10:11]

    # --------------------------- MLP decoder + loss ---------------------------
    db = dec_b[...]                                                 # (3, H)
    pos = dec_pos[...]                                              # (N, S)
    # slot-vectorized: stack the K broadcast slots along sublanes -> (K*N, S)
    feat = jnp.concatenate(
        [slots[kk:kk + 1, :] + pos for kk in range(NUM_SLOTS)], axis=0)
    h1 = jnp.maximum(_mm(feat, dec_fc1_w[...]) + db[0:1], 0.0)      # (K*N, H)
    h2 = jnp.maximum(_mm(h1, dec_fc2_w[...]) + db[1:2], 0.0)        # (K*N, H)
    o3 = _mm(h2, dec_fc3_w[...]) + db[2:3]                          # (K*N, H): [:D]=feat, [D]=alpha

    dec_feat = [o3[kk * NUM_TOKENS:(kk + 1) * NUM_TOKENS, :D_MODEL]
                for kk in range(NUM_SLOTS)]                         # each (N, D)
    alpha = [o3[kk * NUM_TOKENS:(kk + 1) * NUM_TOKENS, D_MODEL:D_MODEL + 1]
             for kk in range(NUM_SLOTS)]                            # each (N, 1)

    # softmax over slots (element-wise across the per-slot columns)
    m = alpha[0]
    for a in alpha[1:]:
        m = jnp.maximum(m, a)
    exps = [jnp.exp(a - m) for a in alpha]
    denom = exps[0]
    for e_ in exps[1:]:
        denom = denom + e_
    w_slot = [e_ / denom for e_ in exps]                            # each (N, 1)

    recon = jnp.zeros((NUM_TOKENS, D_MODEL), f32)
    for kk in range(NUM_SLOTS):
        recon = recon + dec_feat[kk] * w_slot[kk]
    mask_nk = jnp.concatenate(w_slot, axis=-1)                      # (N, K)
    masks_t = mask_nk.T                                             # (K, N)

    diff = emb_target - recon
    loss11 = jnp.sum(diff * diff, keepdims=True)                    # (1, 1) partial
    loss_b = loss11 * jnp.ones((NUM_SLOTS, NUM_TOKENS), f32)

    # ------------------------------ packed output -----------------------------
    out_ref[0, R_RECON:R_RECON + NUM_TOKENS, :] = recon
    out_ref[0, R_SLOTS:R_SLOTS + NUM_SLOTS, :] = slots
    out_ref[0, R_ATTN:R_ATTN + NUM_SLOTS, :] = jnp.concatenate(
        [attn_t, logits_t], axis=-1)
    out_ref[0, R_MASK:R_MASK + NUM_SLOTS, :] = jnp.concatenate(
        [masks_t, loss_b], axis=-1)


# ------------------------------- full forward ---------------------------------
def msspot_forward(image, params):
    bsz = image.shape[0]
    p = PATCH
    # patchify NCHW -> (B, tokens, C*P*P); pure layout work, left to XLA
    x = image.reshape(bsz, IMG_CH, IMG // p, p, IMG // p, p)
    x = x.transpose(0, 2, 4, 1, 3, 5).reshape(bsz, NUM_TOKENS, IMG_CH * p * p)
    # zero token row in front: its embedding (cls + pos[0]) comes via bias_pos,
    # so no in-kernel sublane concat is needed.
    x_pad = jnp.concatenate(
        [jnp.zeros((bsz, 1, x.shape[-1]), x.dtype), x], axis=1)

    weights = [params[k] for k in _PARAM_ORDER]
    in_specs = [_batch_spec(x_pad)] + [_const_spec(w) for w in weights]
    out_spec = pl.BlockSpec((1, PACK_ROWS, D_MODEL), lambda b: (b, 0, 0))

    packed = pl.pallas_call(
        _msspot_kernel,
        grid=(bsz,),
        in_specs=in_specs,
        out_specs=out_spec,
        out_shape=jax.ShapeDtypeStruct((bsz, PACK_ROWS, D_MODEL), jnp.float32),
        compiler_params=pltpu.CompilerParams(dimension_semantics=("parallel",)),
    )(x_pad, *weights)

    dec_recon = packed[:, R_RECON:R_RECON + NUM_TOKENS, :]
    slots = packed[:, R_SLOTS:R_SLOTS + NUM_SLOTS, :]
    attn_t = packed[:, R_ATTN:R_ATTN + NUM_SLOTS, :NUM_TOKENS]          # (B, K, N)
    logits_t = packed[:, R_ATTN:R_ATTN + NUM_SLOTS, NUM_TOKENS:2 * NUM_TOKENS]
    masks_t = packed[:, R_MASK:R_MASK + NUM_SLOTS, :NUM_TOKENS]          # (B, K, N)
    loss_parts = packed[:, R_MASK, NUM_TOKENS]                           # (B,)

    loss_mse = jnp.sum(loss_parts) / (bsz * H_ENC * W_ENC * D_MODEL)
    slots_attns = attn_t.reshape(bsz, NUM_SLOTS, H_ENC, W_ENC)
    dec_slots_attns = masks_t.reshape(bsz, NUM_SLOTS, H_ENC, W_ENC)
    # NOTE: the reference calls attn_logits.squeeze(); with no singleton dims
    # here it is a no-op, and skipping it avoids the B==1 rank-change pitfall.
    attn_logits = jnp.transpose(logits_t, (0, 2, 1))                     # (B, N, K)
    # NOTE: input_proj(bos ++ shifted target) of the reference is dead for
    # dec_type='mlp' (never consumed) and is intentionally not computed.
    return loss_mse, slots_attns, dec_slots_attns, slots, dec_recon, attn_logits


# ------------------------------ parameter init --------------------------------
class _Keys:
    def __init__(self, key):
        self._key = key
        self._i = 0

    def __call__(self):
        self._i += 1
        return jax.random.fold_in(self._key, self._i)


def _nrm(kg, shape, std=0.02, dtype=jnp.float32):
    return (std * jax.random.normal(kg(), shape, jnp.float32)).astype(dtype)


def init_params(key):
    kg = _Keys(key)
    d, s, hdec = D_MODEL, SLOT_SIZE, DEC_HIDDEN
    wdt = MATMUL_DTYPE
    ones = lambda *sh: jnp.ones(sh, jnp.float32)
    zeros = lambda *sh: jnp.zeros(sh, jnp.float32)

    # --- encoder ---
    patch_w = _nrm(kg, (IMG_CH * PATCH * PATCH, d), dtype=wdt)
    patch_b = zeros(1, d)
    cls_tok = _nrm(kg, (1, d))
    pos = _nrm(kg, (SEQ, d))
    bias_pos = pos + jnp.concatenate(
        [cls_tok, jnp.broadcast_to(patch_b, (NUM_TOKENS, d))], axis=0)

    enc_qkv_w = _nrm(kg, (DEPTH, d, 3 * d), dtype=wdt)   # fused q|k|v
    enc_qkv_b = zeros(DEPTH, 1, 3 * d)
    enc_proj_w = _nrm(kg, (DEPTH, d, d), dtype=wdt)
    enc_fc1_w = _nrm(kg, (DEPTH, d, ENC_MLP_HIDDEN), dtype=wdt)
    enc_fc1_b = zeros(DEPTH, 1, ENC_MLP_HIDDEN)
    enc_fc2_w = _nrm(kg, (DEPTH, ENC_MLP_HIDDEN, d), dtype=wdt)
    # rows: ln1_g, ln1_b, ln2_g, ln2_b, proj_b, fc2_b
    enc_vec = jnp.broadcast_to(
        jnp.stack([jnp.ones((d,)), jnp.zeros((d,)), jnp.ones((d,)),
                   jnp.zeros((d,)), jnp.zeros((d,)), jnp.zeros((d,))]),
        (DEPTH, 6, d)).astype(jnp.float32)
    enc_norm = jnp.stack([jnp.ones((d,)), jnp.zeros((d,))]).astype(jnp.float32)

    # --- slot attention (kept f32 for fidelity; matmuls are tiny) ---
    sa_in_w = jnp.stack([_nrm(kg, (d, d)), _nrm(kg, (d, d))])
    sa_kv_w = _nrm(kg, (d, 2 * s))                       # fused k|v
    sa_q_w = _nrm(kg, (s, s))
    sa_gru_wih = _nrm(kg, (s, 3 * s))                    # column blocks r|z|n
    sa_gru_whh = _nrm(kg, (s, 3 * s))
    sa_gru_b = zeros(2, 3 * s)                           # rows: b_ih, b_hh
    sa_mlp_w1 = _nrm(kg, (s, SLOT_MLP_HIDDEN))
    sa_mlp_b1 = zeros(1, SLOT_MLP_HIDDEN)
    sa_mlp_w2 = _nrm(kg, (SLOT_MLP_HIDDEN, s))
    # rows: in_ln_g, in_ln_b, in_fc1_b, in_fc2_b, norm_in_g, norm_in_b,
    #       norm_s_g, norm_s_b, norm_mlp_g, norm_mlp_b, mlp_fc2_b
    sa_vec = jnp.stack([
        jnp.ones((d,)), jnp.zeros((d,)), jnp.zeros((d,)), jnp.zeros((d,)),
        jnp.ones((d,)), jnp.zeros((d,)),
        jnp.ones((s,)), jnp.zeros((s,)), jnp.ones((s,)), jnp.zeros((s,)),
        jnp.zeros((s,))]).astype(jnp.float32)
    sa_slots_init = _nrm(kg, (NUM_SLOTS, s))

    # --- decoder (fc3 packed: cols 0:D = features, col D = alpha, rest zero) ---
    dec_pos = _nrm(kg, (NUM_TOKENS, s))
    dec_fc1_w = _nrm(kg, (s, hdec), dtype=wdt)
    dec_fc2_w = _nrm(kg, (hdec, hdec), dtype=wdt)
    fc3_feat = _nrm(kg, (hdec, d))
    fc3_alpha = _nrm(kg, (hdec, 1))
    dec_fc3_w = jnp.concatenate(
        [fc3_feat, fc3_alpha, jnp.zeros((hdec, hdec - d - 1))], axis=-1).astype(wdt)
    dec_b = zeros(3, hdec)                               # rows: fc1_b, fc2_b, fc3_b(packed)

    return dict(
        patch_w=patch_w, bias_pos=bias_pos,
        enc_qkv_w=enc_qkv_w, enc_qkv_b=enc_qkv_b, enc_proj_w=enc_proj_w,
        enc_fc1_w=enc_fc1_w, enc_fc1_b=enc_fc1_b, enc_fc2_w=enc_fc2_w,
        enc_vec=enc_vec, enc_norm=enc_norm,
        sa_in_w=sa_in_w, sa_kv_w=sa_kv_w, sa_q_w=sa_q_w,
        sa_gru_wih=sa_gru_wih, sa_gru_whh=sa_gru_whh, sa_gru_b=sa_gru_b,
        sa_mlp_w1=sa_mlp_w1, sa_mlp_b1=sa_mlp_b1, sa_mlp_w2=sa_mlp_w2,
        sa_vec=sa_vec, sa_slots_init=sa_slots_init,
        dec_pos=dec_pos, dec_fc1_w=dec_fc1_w, dec_fc2_w=dec_fc2_w,
        dec_fc3_w=dec_fc3_w, dec_b=dec_b,
    )


# ------------------------------------ main -------------------------------------
if __name__ == "__main__":
    root_key = jax.random.PRNGKey(0)
    params = init_params(root_key)
    image = jax.random.uniform(jax.random.fold_in(root_key, 12345),
                               (B, IMG_CH, IMG, IMG), jnp.float32)

    fwd = jax.jit(lambda im: msspot_forward(im, params))
    outs = jax.block_until_ready(fwd(image))

    loss_mse, slots_attns, dec_slots_attns, slots, dec_recon, attn_logits = outs
    assert slots_attns.shape == (B, NUM_SLOTS, H_ENC, W_ENC)
    assert dec_slots_attns.shape == (B, NUM_SLOTS, H_ENC, W_ENC)
    assert slots.shape == (B, NUM_SLOTS, SLOT_SIZE)
    assert dec_recon.shape == (B, NUM_TOKENS, D_MODEL)
    assert attn_logits.shape == (B, NUM_TOKENS, NUM_SLOTS)
    assert bool(jnp.isfinite(loss_mse))
    assert bool(jnp.all(jnp.isfinite(dec_recon)))
    assert bool(jnp.all(jnp.isfinite(slots)))
    # attention / decoder masks are softmaxes over slots -> columns sum to 1
    assert bool(jnp.allclose(jnp.sum(slots_attns, axis=1), 1.0, atol=1e-3))
    assert bool(jnp.allclose(jnp.sum(dec_slots_attns, axis=1), 1.0, atol=1e-3))
    print("KERNEL_OK")
</pallas_src>

<mosaic_0001>
module attributes {stable_mosaic.version = 11 : i64} {
  func.func @_msspot_kernel(%arg0: i32, %arg1: memref<1x17x48xf32, #tpu.memory_space<vmem>>, %arg2: memref<48x32xbf16, #tpu.memory_space<vmem>>, %arg3: memref<17x32xf32, #tpu.memory_space<vmem>>, %arg4: memref<2x32x96xbf16, #tpu.memory_space<vmem>>, %arg5: memref<2x1x96xf32, #tpu.memory_space<vmem>>, %arg6: memref<2x32x32xbf16, #tpu.memory_space<vmem>>, %arg7: memref<2x32x128xbf16, #tpu.memory_space<vmem>>, %arg8: memref<2x1x128xf32, #tpu.memory_space<vmem>>, %arg9: memref<2x128x32xbf16, #tpu.memory_space<vmem>>, %arg10: memref<2x6x32xf32, #tpu.memory_space<vmem>>, %arg11: memref<2x32xf32, #tpu.memory_space<vmem>>, %arg12: memref<2x32x32xf32, #tpu.memory_space<vmem>>, %arg13: memref<32x64xf32, #tpu.memory_space<vmem>>, %arg14: memref<32x32xf32, #tpu.memory_space<vmem>>, %arg15: memref<32x96xf32, #tpu.memory_space<vmem>>, %arg16: memref<32x96xf32, #tpu.memory_space<vmem>>, %arg17: memref<2x96xf32, #tpu.memory_space<vmem>>, %arg18: memref<32x64xf32, #tpu.memory_space<vmem>>, %arg19: memref<1x64xf32, #tpu.memory_space<vmem>>, %arg20: memref<64x32xf32, #tpu.memory_space<vmem>>, %arg21: memref<11x32xf32, #tpu.memory_space<vmem>>, %arg22: memref<4x32xf32, #tpu.memory_space<vmem>>, %arg23: memref<16x32xf32, #tpu.memory_space<vmem>>, %arg24: memref<32x64xbf16, #tpu.memory_space<vmem>>, %arg25: memref<64x64xbf16, #tpu.memory_space<vmem>>, %arg26: memref<64x64xbf16, #tpu.memory_space<vmem>>, %arg27: memref<3x64xf32, #tpu.memory_space<vmem>>, %arg28: memref<1x28x32xf32, #tpu.memory_space<vmem>>) attributes {dimension_semantics = [#tpu.dimension_semantics<parallel>], iteration_bounds = array<i64: 2>, scalar_prefetch = 0 : i64, scratch_operands = 0 : i64, tpu.core_type = #tpu.core_type<tc>, window_params = [{transform_indices = @transform_0, window_bounds = array<i64: 1, 17, 48>}, {pipeline_mode = #tpu.pipeline_mode<synchronous>, transform_indices = @transform_1, window_bounds = array<i64: 48, 32>}, {pipeline_mode = #tpu.pipeline_mode<synchronous>, transform_indices = @transform_2, window_bounds = array<i64: 17, 32>}, {pipeline_mode = #tpu.pipeline_mode<synchronous>, transform_indices = @transform_3, window_bounds = array<i64: 2, 32, 96>}, {pipeline_mode = #tpu.pipeline_mode<synchronous>, transform_indices = @transform_4, window_bounds = array<i64: 2, 1, 96>}, {pipeline_mode = #tpu.pipeline_mode<synchronous>, transform_indices = @transform_5, window_bounds = array<i64: 2, 32, 32>}, {pipeline_mode = #tpu.pipeline_mode<synchronous>, transform_indices = @transform_6, window_bounds = array<i64: 2, 32, 128>}, {pipeline_mode = #tpu.pipeline_mode<synchronous>, transform_indices = @transform_7, window_bounds = array<i64: 2, 1, 128>}, {pipeline_mode = #tpu.pipeline_mode<synchronous>, transform_indices = @transform_8, window_bounds = array<i64: 2, 128, 32>}, {pipeline_mode = #tpu.pipeline_mode<synchronous>, transform_indices = @transform_9, window_bounds = array<i64: 2, 6, 32>}, {pipeline_mode = #tpu.pipeline_mode<synchronous>, transform_indices = @transform_10, window_bounds = array<i64: 2, 32>}, {pipeline_mode = #tpu.pipeline_mode<synchronous>, transform_indices = @transform_11, window_bounds = array<i64: 2, 32, 32>}, {pipeline_mode = #tpu.pipeline_mode<synchronous>, transform_indices = @transform_12, window_bounds = array<i64: 32, 64>}, {pipeline_mode = #tpu.pipeline_mode<synchronous>, transform_indices = @transform_13, window_bounds = array<i64: 32, 32>}, {pipeline_mode = #tpu.pipeline_mode<synchronous>, transform_indices = @transform_14, window_bounds = array<i64: 32, 96>}, {pipeline_mode = #tpu.pipeline_mode<synchronous>, transform_indices = @transform_15, window_bounds = array<i64: 32, 96>}, {pipeline_mode = #tpu.pipeline_mode<synchronous>, transform_indices = @transform_16, window_bounds = array<i64: 2, 96>}, {pipeline_mode = #tpu.pipeline_mode<synchronous>, transform_indices = @transform_17, window_bounds = array<i64: 32, 64>}, {pipeline_mode = #tpu.pipeline_mode<synchronous>, transform_indices = @transform_18, window_bounds = array<i64: 1, 64>}, {pipeline_mode = #tpu.pipeline_mode<synchronous>, transform_indices = @transform_19, window_bounds = array<i64: 64, 32>}, {pipeline_mode = #tpu.pipeline_mode<synchronous>, transform_indices = @transform_20, window_bounds = array<i64: 11, 32>}, {pipeline_mode = #tpu.pipeline_mode<synchronous>, transform_indices = @transform_21, window_bounds = array<i64: 4, 32>}, {pipeline_mode = #tpu.pipeline_mode<synchronous>, transform_indices = @transform_22, window_bounds = array<i64: 16, 32>}, {pipeline_mode = #tpu.pipeline_mode<synchronous>, transform_indices = @transform_23, window_bounds = array<i64: 32, 64>}, {pipeline_mode = #tpu.pipeline_mode<synchronous>, transform_indices = @transform_24, window_bounds = array<i64: 64, 64>}, {pipeline_mode = #tpu.pipeline_mode<synchronous>, transform_indices = @transform_25, window_bounds = array<i64: 64, 64>}, {pipeline_mode = #tpu.pipeline_mode<synchronous>, transform_indices = @transform_26, window_bounds = array<i64: 3, 64>}, {transform_indices = @transform_27, window_bounds = array<i64: 1, 28, 32>}]} {
    %c0 = arith.constant 0 : index
    %c0_0 = arith.constant 0 : index
    %c0_1 = arith.constant 0 : index
    %0 = vector.load %arg1[%c0, %c0_0, %c0_1] : memref<1x17x48xf32, #tpu.memory_space<vmem>>, vector<1x17x48xf32>
    %1 = vector.shape_cast %0 : vector<1x17x48xf32> to vector<17x48xf32>
    %c0_2 = arith.constant 0 : index
    %c0_3 = arith.constant 0 : index
    %2 = vector.load %arg2[%c0_2, %c0_3] : memref<48x32xbf16, #tpu.memory_space<vmem>>, vector<48x32xbf16>
    %3 = arith.truncf %1 : vector<17x48xf32> to vector<17x48xbf16>
    %cst = arith.constant dense<0.000000e+00> : vector<17x32xf32>
    %4 = tpu.matmul %3, %2, %cst {dimension_numbers = #tpu.dot_dimension_numbers<[1], [0], [0], [1], [0, 0, 1, 1], [], []>} : vector<17x48xbf16>, vector<48x32xbf16>, vector<17x32xf32> -> vector<17x32xf32>
    %c0_4 = arith.constant 0 : index
    %c0_5 = arith.constant 0 : index
    %5 = vector.load %arg3[%c0_4, %c0_5] : memref<17x32xf32, #tpu.memory_space<vmem>>, vector<17x32xf32>
    %6 = arith.addf %4, %5 : vector<17x32xf32>
    %c0_6 = arith.constant 0 : index
    %c0_7 = arith.constant 0 : index
    %c0_8 = arith.constant 0 : index
    %7 = vector.load %arg10[%c0_6, %c0_7, %c0_8] : memref<2x6x32xf32, #tpu.memory_space<vmem>>, vector<1x6x32xf32>
    %8 = vector.shape_cast %7 : vector<1x6x32xf32> to vector<6x32xf32>
    %9 = vector.extract_strided_slice %8 {offsets = [0, 0], sizes = [1, 32], strides = [1, 1]} : vector<6x32xf32> to vector<1x32xf32>
    %10 = vector.extract_strided_slice %8 {offsets = [1, 0], sizes = [1, 32], strides = [1, 1]} : vector<6x32xf32> to vector<1x32xf32>
    %cst_9 = arith.constant dense<0.000000e+00> : vector<17xf32>
    %11 = vector.multi_reduction <add>, %6, %cst_9 [1] : vector<17x32xf32> to vector<17xf32>
    %12 = vector.shape_cast %11 : vector<17xf32> to vector<17x1xf32>
    %cst_10 = arith.constant 3.200000e+01 : f32
    %13 = vector.broadcast %cst_10 : f32 to vector<17x1xf32>
    %14 = arith.divf %12, %13 : vector<17x1xf32>
    %15 = vector.broadcast %14 : vector<17x1xf32> to vector<17x32xf32>
    %16 = arith.subf %6, %15 : vector<17x32xf32>
    %17 = arith.mulf %16, %16 : vector<17x32xf32>
    %cst_11 = arith.constant dense<0.000000e+00> : vector<17xf32>
    %18 = vector.multi_reduction <add>, %17, %cst_11 [1] : vector<17x32xf32> to vector<17xf32>
    %19 = vector.shape_cast %18 : vector<17xf32> to vector<17x1xf32>
    %cst_12 = arith.constant 3.200000e+01 : f32
    %20 = vector.broadcast %cst_12 : f32 to vector<17x1xf32>
    %21 = arith.divf %19, %20 : vector<17x1xf32>
    %22 = vector.broadcast %14 : vector<17x1xf32> to vector<17x32xf32>
    %23 = arith.subf %6, %22 : vector<17x32xf32>
    %cst_13 = arith.constant 9.99999974E-6 : f32
    %24 = vector.broadcast %cst_13 : f32 to vector<17x1xf32>
    %25 = arith.addf %21, %24 : vector<17x1xf32>
    %26 = math.rsqrt %25 : vector<17x1xf32>
    %27 = vector.broadcast %26 : vector<17x1xf32> to vector<17x32xf32>
    %28 = arith.mulf %23, %27 : vector<17x32xf32>
    %29 = vector.broadcast %9 : vector<1x32xf32> to vector<17x32xf32>
    %30 = arith.mulf %28, %29 : vector<17x32xf32>
    %31 = vector.broadcast %10 : vector<1x32xf32> to vector<17x32xf32>
    %32 = arith.addf %30, %31 : vector<17x32xf32>
    %c0_14 = arith.constant 0 : index
    %c0_15 = arith.constant 0 : index
    %c0_16 = arith.constant 0 : index
    %33 = vector.load %arg4[%c0_14, %c0_15, %c0_16] : memref<2x32x96xbf16, #tpu.memory_space<vmem>>, vector<1x32x96xbf16>
    %34 = vector.shape_cast %33 : vector<1x32x96xbf16> to vector<32x96xbf16>
    %c0_17 = arith.constant 0 : index
    %c0_18 = arith.constant 0 : index
    %c0_19 = arith.constant 0 : index
    %35 = vector.load %arg5[%c0_17, %c0_18, %c0_19] : memref<2x1x96xf32, #tpu.memory_space<vmem>>, vector<1x1x96xf32>
    %36 = vector.shape_cast %35 : vector<1x1x96xf32> to vector<1x96xf32>
    %37 = arith.truncf %32 : vector<17x32xf32> to vector<17x32xbf16>
    %cst_20 = arith.constant dense<0.000000e+00> : vector<17x96xf32>
    %38 = tpu.matmul %37, %34, %cst_20 {dimension_numbers = #tpu.dot_dimension_numbers<[1], [0], [0], [1], [0, 0, 1, 1], [], []>} : vector<17x32xbf16>, vector<32x96xbf16>, vector<17x96xf32> -> vector<17x96xf32>
    %39 = vector.broadcast %36 : vector<1x96xf32> to vector<17x96xf32>
    %40 = arith.addf %38, %39 : vector<17x96xf32>
    %41 = vector.extract_strided_slice %40 {offsets = [0, 0], sizes = [17, 8], strides = [1, 1]} : vector<17x96xf32> to vector<17x8xf32>
    %42 = vector.extract_strided_slice %40 {offsets = [0, 32], sizes = [17, 8], strides = [1, 1]} : vector<17x96xf32> to vector<17x8xf32>
    %43 = vector.extract_strided_slice %40 {offsets = [0, 64], sizes = [17, 8], strides = [1, 1]} : vector<17x96xf32> to vector<17x8xf32>
    %cst_21 = arith.constant dense<0.000000e+00> : vector<17x17xf32>
    %44 = tpu.matmul %41, %42, %cst_21 {dimension_numbers = #tpu.dot_dimension_numbers<[1], [1], [0], [0], [0, 0, 1, 0], [], []>} : vector<17x8xf32>, vector<17x8xf32>, vector<17x17xf32> -> vector<17x17xf32>
    %cst_22 = arith.constant 0.353553385 : f32
    %45 = vector.broadcast %cst_22 : f32 to vector<17x17xf32>
    %46 = arith.mulf %44, %45 : vector<17x17xf32>
    %cst_23 = arith.constant dense<0xFF800000> : vector<17xf32>
    %47 = vector.multi_reduction <maximumf>, %46, %cst_23 [1] : vector<17x17xf32> to vector<17xf32>
    %48 = vector.shape_cast %47 : vector<17xf32> to vector<17x1xf32>
    %49 = vector.broadcast %48 : vector<17x1xf32> to vector<17x17xf32>
    %50 = arith.subf %46, %49 : vector<17x17xf32>
    %51 = math.exp %50 : vector<17x17xf32>
    %cst_24 = arith.constant dense<0.000000e+00> : vector<17xf32>
    %52 = vector.multi_reduction <add>, %51, %cst_24 [1] : vector<17x17xf32> to vector<17xf32>
    %53 = vector.shape_cast %52 : vector<17xf32> to vector<17x1xf32>
    %54 = vector.broadcast %53 : vector<17x1xf32> to vector<17x17xf32>
    %55 = arith.divf %51, %54 : vector<17x17xf32>
    %cst_25 = arith.constant dense<0.000000e+00> : vector<17x8xf32>
    %56 = tpu.matmul %55, %43, %cst_25 {dimension_numbers = #tpu.dot_dimension_numbers<[1], [0], [0], [1], [0, 0, 1, 1], [], []>} : vector<17x17xf32>, vector<17x8xf32>, vector<17x8xf32> -> vector<17x8xf32>
    %57 = vector.extract_strided_slice %40 {offsets = [0, 8], sizes = [17, 8], strides = [1, 1]} : vector<17x96xf32> to vector<17x8xf32>
    %58 = vector.extract_strided_slice %40 {offsets = [0, 40], sizes = [17, 8], strides = [1, 1]} : vector<17x96xf32> to vector<17x8xf32>
    %59 = vector.extract_strided_slice %40 {offsets = [0, 72], sizes = [17, 8], strides = [1, 1]} : vector<17x96xf32> to vector<17x8xf32>
    %cst_26 = arith.constant dense<0.000000e+00> : vector<17x17xf32>
    %60 = tpu.matmul %57, %58, %cst_26 {dimension_numbers = #tpu.dot_dimension_numbers<[1], [1], [0], [0], [0, 0, 1, 0], [], []>} : vector<17x8xf32>, vector<17x8xf32>, vector<17x17xf32> -> vector<17x17xf32>
    %cst_27 = arith.constant 0.353553385 : f32
    %61 = vector.broadcast %cst_27 : f32 to vector<17x17xf32>
    %62 = arith.mulf %60, %61 : vector<17x17xf32>
    %cst_28 = arith.constant dense<0xFF800000> : vector<17xf32>
    %63 = vector.multi_reduction <maximumf>, %62, %cst_28 [1] : vector<17x17xf32> to vector<17xf32>
    %64 = vector.shape_cast %63 : vector<17xf32> to vector<17x1xf32>
    %65 = vector.broadcast %64 : vector<17x1xf32> to vector<17x17xf32>
    %66 = arith.subf %62, %65 : vector<17x17xf32>
    %67 = math.exp %66 : vector<17x17xf32>
    %cst_29 = arith.constant dense<0.000000e+00> : vector<17xf32>
    %68 = vector.multi_reduction <add>, %67, %cst_29 [1] : vector<17x17xf32> to vector<17xf32>
    %69 = vector.shape_cast %68 : vector<17xf32> to vector<17x1xf32>
    %70 = vector.broadcast %69 : vector<17x1xf32> to vector<17x17xf32>
    %71 = arith.divf %67, %70 : vector<17x17xf32>
    %cst_30 = arith.constant dense<0.000000e+00> : vector<17x8xf32>
    %72 = tpu.matmul %71, %59, %cst_30 {dimension_numbers = #tpu.dot_dimension_numbers<[1], [0], [0], [1], [0, 0, 1, 1], [], []>} : vector<17x17xf32>, vector<17x8xf32>, vector<17x8xf32> -> vector<17x8xf32>
    %73 = vector.extract_strided_slice %40 {offsets = [0, 16], sizes = [17, 8], strides = [1, 1]} : vector<17x96xf32> to vector<17x8xf32>
    %74 = vector.extract_strided_slice %40 {offsets = [0, 48], sizes = [17, 8], strides = [1, 1]} : vector<17x96xf32> to vector<17x8xf32>
    %75 = vector.extract_strided_slice %40 {offsets = [0, 80], sizes = [17, 8], strides = [1, 1]} : vector<17x96xf32> to vector<17x8xf32>
    %cst_31 = arith.constant dense<0.000000e+00> : vector<17x17xf32>
    %76 = tpu.matmul %73, %74, %cst_31 {dimension_numbers = #tpu.dot_dimension_numbers<[1], [1], [0], [0], [0, 0, 1, 0], [], []>} : vector<17x8xf32>, vector<17x8xf32>, vector<17x17xf32> -> vector<17x17xf32>
    %cst_32 = arith.constant 0.353553385 : f32
    %77 = vector.broadcast %cst_32 : f32 to vector<17x17xf32>
    %78 = arith.mulf %76, %77 : vector<17x17xf32>
    %cst_33 = arith.constant dense<0xFF800000> : vector<17xf32>
    %79 = vector.multi_reduction <maximumf>, %78, %cst_33 [1] : vector<17x17xf32> to vector<17xf32>
    %80 = vector.shape_cast %79 : vector<17xf32> to vector<17x1xf32>
    %81 = vector.broadcast %80 : vector<17x1xf32> to vector<17x17xf32>
    %82 = arith.subf %78, %81 : vector<17x17xf32>
    %83 = math.exp %82 : vector<17x17xf32>
    %cst_34 = arith.constant dense<0.000000e+00> : vector<17xf32>
    %84 = vector.multi_reduction <add>, %83, %cst_34 [1] : vector<17x17xf32> to vector<17xf32>
    %85 = vector.shape_cast %84 : vector<17xf32> to vector<17x1xf32>
    %86 = vector.broadcast %85 : vector<17x1xf32> to vector<17x17xf32>
    %87 = arith.divf %83, %86 : vector<17x17xf32>
    %cst_35 = arith.constant dense<0.000000e+00> : vector<17x8xf32>
    %88 = tpu.matmul %87, %75, %cst_35 {dimension_numbers = #tpu.dot_dimension_numbers<[1], [0], [0], [1], [0, 0, 1, 1], [], []>} : vector<17x17xf32>, vector<17x8xf32>, vector<17x8xf32> -> vector<17x8xf32>
    %89 = vector.extract_strided_slice %40 {offsets = [0, 24], sizes = [17, 8], strides = [1, 1]} : vector<17x96xf32> to vector<17x8xf32>
    %90 = vector.extract_strided_slice %40 {offsets = [0, 56], sizes = [17, 8], strides = [1, 1]} : vector<17x96xf32> to vector<17x8xf32>
    %91 = vector.extract_strided_slice %40 {offsets = [0, 88], sizes = [17, 8], strides = [1, 1]} : vector<17x96xf32> to vector<17x8xf32>
    %cst_36 = arith.constant dense<0.000000e+00> : vector<17x17xf32>
    %92 = tpu.matmul %89, %90, %cst_36 {dimension_numbers = #tpu.dot_dimension_numbers<[1], [1], [0], [0], [0, 0, 1, 0], [], []>} : vector<17x8xf32>, vector<17x8xf32>, vector<17x17xf32> -> vector<17x17xf32>
    %cst_37 = arith.constant 0.353553385 : f32
    %93 = vector.broadcast %cst_37 : f32 to vector<17x17xf32>
    %94 = arith.mulf %92, %93 : vector<17x17xf32>
    %cst_38 = arith.constant dense<0xFF800000> : vector<17xf32>
    %95 = vector.multi_reduction <maximumf>, %94, %cst_38 [1] : vector<17x17xf32> to vector<17xf32>
    %96 = vector.shape_cast %95 : vector<17xf32> to vector<17x1xf32>
    %97 = vector.broadcast %96 : vector<17x1xf32> to vector<17x17xf32>
    %98 = arith.subf %94, %97 : vector<17x17xf32>
    %99 = math.exp %98 : vector<17x17xf32>
    %cst_39 = arith.constant dense<0.000000e+00> : vector<17xf32>
    %100 = vector.multi_reduction <add>, %99, %cst_39 [1] : vector<17x17xf32> to vector<17xf32>
    %101 = vector.shape_cast %100 : vector<17xf32> to vector<17x1xf32>
    %102 = vector.broadcast %101 : vector<17x1xf32> to vector<17x17xf32>
    %103 = arith.divf %99, %102 : vector<17x17xf32>
    %cst_40 = arith.constant dense<0.000000e+00> : vector<17x8xf32>
    %104 = tpu.matmul %103, %91, %cst_40 {dimension_numbers = #tpu.dot_dimension_numbers<[1], [0], [0], [1], [0, 0, 1, 1], [], []>} : vector<17x17xf32>, vector<17x8xf32>, vector<17x8xf32> -> vector<17x8xf32>
    %105 = tpu.concatenate %56, %72, %88, %104 in 1 : vector<17x8xf32>, vector<17x8xf32>, vector<17x8xf32>, vector<17x8xf32> -> vector<17x32xf32>
    %c0_41 = arith.constant 0 : index
    %c0_42 = arith.constant 0 : index
    %c0_43 = arith.constant 0 : index
    %106 = vector.load %arg6[%c0_41, %c0_42, %c0_43] : memref<2x32x32xbf16, #tpu.memory_space<vmem>>, vector<1x32x32xbf16>
    %107 = vector.shape_cast %106 : vector<1x32x32xbf16> to vector<32x32xbf16>
    %108 = arith.truncf %105 : vector<17x32xf32> to vector<17x32xbf16>
    %cst_44 = arith.constant dense<0.000000e+00> : vector<17x32xf32>
    %109 = tpu.matmul %108, %107, %cst_44 {dimension_numbers = #tpu.dot_dimension_numbers<[1], [0], [0], [1], [0, 0, 1, 1], [], []>} : vector<17x32xbf16>, vector<32x32xbf16>, vector<17x32xf32> -> vector<17x32xf32>
    %110 = arith.addf %6, %109 : vector<17x32xf32>
    %111 = vector.extract_strided_slice %8 {offsets = [4, 0], sizes = [1, 32], strides = [1, 1]} : vector<6x32xf32> to vector<1x32xf32>
    %112 = vector.broadcast %111 : vector<1x32xf32> to vector<17x32xf32>
    %113 = arith.addf %110, %112 : vector<17x32xf32>
    %114 = vector.extract_strided_slice %8 {offsets = [2, 0], sizes = [1, 32], strides = [1, 1]} : vector<6x32xf32> to vector<1x32xf32>
    %115 = vector.extract_strided_slice %8 {offsets = [3, 0], sizes = [1, 32], strides = [1, 1]} : vector<6x32xf32> to vector<1x32xf32>
    %cst_45 = arith.constant dense<0.000000e+00> : vector<17xf32>
    %116 = vector.multi_reduction <add>, %113, %cst_45 [1] : vector<17x32xf32> to vector<17xf32>
    %117 = vector.shape_cast %116 : vector<17xf32> to vector<17x1xf32>
    %cst_46 = arith.constant 3.200000e+01 : f32
    %118 = vector.broadcast %cst_46 : f32 to vector<17x1xf32>
    %119 = arith.divf %117, %118 : vector<17x1xf32>
    %120 = vector.broadcast %119 : vector<17x1xf32> to vector<17x32xf32>
    %121 = arith.subf %113, %120 : vector<17x32xf32>
    %122 = arith.mulf %121, %121 : vector<17x32xf32>
    %cst_47 = arith.constant dense<0.000000e+00> : vector<17xf32>
    %123 = vector.multi_reduction <add>, %122, %cst_47 [1] : vector<17x32xf32> to vector<17xf32>
    %124 = vector.shape_cast %123 : vector<17xf32> to vector<17x1xf32>
    %cst_48 = arith.constant 3.200000e+01 : f32
    %125 = vector.broadcast %cst_48 : f32 to vector<17x1xf32>
    %126 = arith.divf %124, %125 : vector<17x1xf32>
    %127 = vector.broadcast %119 : vector<17x1xf32> to vector<17x32xf32>
    %128 = arith.subf %113, %127 : vector<17x32xf32>
    %cst_49 = arith.constant 9.99999974E-6 : f32
    %129 = vector.broadcast %cst_49 : f32 to vector<17x1xf32>
    %130 = arith.addf %126, %129 : vector<17x1xf32>
    %131 = math.rsqrt %130 : vector<17x1xf32>
    %132 = vector.broadcast %131 : vector<17x1xf32> to vector<17x32xf32>
    %133 = arith.mulf %128, %132 : vector<17x32xf32>
    %134 = vector.broadcast %114 : vector<1x32xf32> to vector<17x32xf32>
    %135 = arith.mulf %133, %134 : vector<17x32xf32>
    %136 = vector.broadcast %115 : vector<1x32xf32> to vector<17x32xf32>
    %137 = arith.addf %135, %136 : vector<17x32xf32>
    %c0_50 = arith.constant 0 : index
    %c0_51 = arith.constant 0 : index
    %c0_52 = arith.constant 0 : index
    %138 = vector.load %arg7[%c0_50, %c0_51, %c0_52] : memref<2x32x128xbf16, #tpu.memory_space<vmem>>, vector<1x32x128xbf16>
    %139 = vector.shape_cast %138 : vector<1x32x128xbf16> to vector<32x128xbf16>
    %c0_53 = arith.constant 0 : index
    %c0_54 = arith.constant 0 : index
    %c0_55 = arith.constant 0 : index
    %140 = vector.load %arg8[%c0_53, %c0_54, %c0_55] : memref<2x1x128xf32, #tpu.memory_space<vmem>>, vector<1x1x128xf32>
    %141 = vector.shape_cast %140 : vector<1x1x128xf32> to vector<1x128xf32>
    %142 = arith.truncf %137 : vector<17x32xf32> to vector<17x32xbf16>
    %cst_56 = arith.constant dense<0.000000e+00> : vector<17x128xf32>
    %143 = tpu.matmul %142, %139, %cst_56 {dimension_numbers = #tpu.dot_dimension_numbers<[1], [0], [0], [1], [0, 0, 1, 1], [], []>} : vector<17x32xbf16>, vector<32x128xbf16>, vector<17x128xf32> -> vector<17x128xf32>
    %144 = vector.broadcast %141 : vector<1x128xf32> to vector<17x128xf32>
    %145 = arith.addf %143, %144 : vector<17x128xf32>
    %146 = arith.mulf %145, %145 : vector<17x128xf32>
    %147 = arith.mulf %145, %146 : vector<17x128xf32>
    %cst_57 = arith.constant 4.471500e-02 : f32
    %148 = vector.broadcast %cst_57 : f32 to vector<17x128xf32>
    %149 = arith.mulf %148, %147 : vector<17x128xf32>
    %150 = arith.addf %145, %149 : vector<17x128xf32>
    %cst_58 = arith.constant 0.797884583 : f32
    %151 = vector.broadcast %cst_58 : f32 to vector<17x128xf32>
    %152 = arith.mulf %151, %150 : vector<17x128xf32>
    %153 = math.tanh %152 : vector<17x128xf32>
    %cst_59 = arith.constant 1.000000e+00 : f32
    %154 = vector.broadcast %cst_59 : f32 to vector<17x128xf32>
    %155 = arith.addf %154, %153 : vector<17x128xf32>
    %cst_60 = arith.constant 5.000000e-01 : f32
    %156 = vector.broadcast %cst_60 : f32 to vector<17x128xf32>
    %157 = arith.mulf %156, %155 : vector<17x128xf32>
    %158 = arith.mulf %145, %157 : vector<17x128xf32>
    %c0_61 = arith.constant 0 : index
    %c0_62 = arith.constant 0 : index
    %c0_63 = arith.constant 0 : index
    %159 = vector.load %arg9[%c0_61, %c0_62, %c0_63] : memref<2x128x32xbf16, #tpu.memory_space<vmem>>, vector<1x128x32xbf16>
    %160 = vector.shape_cast %159 : vector<1x128x32xbf16> to vector<128x32xbf16>
    %161 = arith.truncf %158 : vector<17x128xf32> to vector<17x128xbf16>
    %cst_64 = arith.constant dense<0.000000e+00> : vector<17x32xf32>
    %162 = tpu.matmul %161, %160, %cst_64 {dimension_numbers = #tpu.dot_dimension_numbers<[1], [0], [0], [1], [0, 0, 1, 1], [], []>} : vector<17x128xbf16>, vector<128x32xbf16>, vector<17x32xf32> -> vector<17x32xf32>
    %163 = arith.addf %113, %162 : vector<17x32xf32>
    %164 = vector.extract_strided_slice %8 {offsets = [5, 0], sizes = [1, 32], strides = [1, 1]} : vector<6x32xf32> to vector<1x32xf32>
    %165 = vector.broadcast %164 : vector<1x32xf32> to vector<17x32xf32>
    %166 = arith.addf %163, %165 : vector<17x32xf32>
    %167 = vector.extract_strided_slice %166 {offsets = [1, 0], sizes = [16, 32], strides = [1, 1]} : vector<17x32xf32> to vector<16x32xf32>
    %c1 = arith.constant 1 : index
    %c0_65 = arith.constant 0 : index
    %c0_66 = arith.constant 0 : index
    %168 = vector.load %arg10[%c1, %c0_65, %c0_66] : memref<2x6x32xf32, #tpu.memory_space<vmem>>, vector<1x6x32xf32>
    %169 = vector.shape_cast %168 : vector<1x6x32xf32> to vector<6x32xf32>
    %170 = vector.extract_strided_slice %169 {offsets = [0, 0], sizes = [1, 32], strides = [1, 1]} : vector<6x32xf32> to vector<1x32xf32>
    %171 = vector.extract_strided_slice %169 {offsets = [1, 0], sizes = [1, 32], strides = [1, 1]} : vector<6x32xf32> to vector<1x32xf32>
    %cst_67 = arith.constant dense<0.000000e+00> : vector<17xf32>
    %172 = vector.multi_reduction <add>, %166, %cst_67 [1] : vector<17x32xf32> to vector<17xf32>
    %173 = vector.shape_cast %172 : vector<17xf32> to vector<17x1xf32>
    %cst_68 = arith.constant 3.200000e+01 : f32
    %174 = vector.broadcast %cst_68 : f32 to vector<17x1xf32>
    %175 = arith.divf %173, %174 : vector<17x1xf32>
    %176 = vector.broadcast %175 : vector<17x1xf32> to vector<17x32xf32>
    %177 = arith.subf %166, %176 : vector<17x32xf32>
    %178 = arith.mulf %177, %177 : vector<17x32xf32>
    %cst_69 = arith.constant dense<0.000000e+00> : vector<17xf32>
    %179 = vector.multi_reduction <add>, %178, %cst_69 [1] : vector<17x32xf32> to vector<17xf32>
    %180 = vector.shape_cast %179 : vector<17xf32> to vector<17x1xf32>
    %cst_70 = arith.constant 3.200000e+01 : f32
    %181 = vector.broadcast %cst_70 : f32 to vector<17x1xf32>
    %182 = arith.divf %180, %181 : vector<17x1xf32>
    %183 = vector.broadcast %175 : vector<17x1xf32> to vector<17x32xf32>
    %184 = arith.subf %166, %183 : vector<17x32xf32>
    %cst_71 = arith.constant 9.99999974E-6 : f32
    %185 = vector.broadcast %cst_71 : f32 to vector<17x1xf32>
    %186 = arith.addf %182, %185 : vector<17x1xf32>
    %187 = math.rsqrt %186 : vector<17x1xf32>
    %188 = vector.broadcast %187 : vector<17x1xf32> to vector<17x32xf32>
    %189 = arith.mulf %184, %188 : vector<17x32xf32>
    %190 = vector.broadcast %170 : vector<1x32xf32> to vector<17x32xf32>
    %191 = arith.mulf %189, %190 : vector<17x32xf32>
    %192 = vector.broadcast %171 : vector<1x32xf32> to vector<17x32xf32>
    %193 = arith.addf %191, %192 : vector<17x32xf32>
    %c1_72 = arith.constant 1 : index
    %c0_73 = arith.constant 0 : index
    %c0_74 = arith.constant 0 : index
    %194 = vector.load %arg4[%c1_72, %c0_73, %c0_74] : memref<2x32x96xbf16, #tpu.memory_space<vmem>>, vector<1x32x96xbf16>
    %195 = vector.shape_cast %194 : vector<1x32x96xbf16> to vector<32x96xbf16>
    %c1_75 = arith.constant 1 : index
    %c0_76 = arith.constant 0 : index
    %c0_77 = arith.constant 0 : index
    %196 = vector.load %arg5[%c1_75, %c0_76, %c0_77] : memref<2x1x96xf32, #tpu.memory_space<vmem>>, vector<1x1x96xf32>
    %197 = vector.shape_cast %196 : vector<1x1x96xf32> to vector<1x96xf32>
    %198 = arith.truncf %193 : vector<17x32xf32> to vector<17x32xbf16>
    %cst_78 = arith.constant dense<0.000000e+00> : vector<17x96xf32>
    %199 = tpu.matmul %198, %195, %cst_78 {dimension_numbers = #tpu.dot_dimension_numbers<[1], [0], [0], [1], [0, 0, 1, 1], [], []>} : vector<17x32xbf16>, vector<32x96xbf16>, vector<17x96xf32> -> vector<17x96xf32>
    %200 = vector.broadcast %197 : vector<1x96xf32> to vector<17x96xf32>
    %201 = arith.addf %199, %200 : vector<17x96xf32>
    %202 = vector.extract_strided_slice %201 {offsets = [0, 0], sizes = [17, 8], strides = [1, 1]} : vector<17x96xf32> to vector<17x8xf32>
    %203 = vector.extract_strided_slice %201 {offsets = [0, 32], sizes = [17, 8], strides = [1, 1]} : vector<17x96xf32> to vector<17x8xf32>
    %204 = vector.extract_strided_slice %201 {offsets = [0, 64], sizes = [17, 8], strides = [1, 1]} : vector<17x96xf32> to vector<17x8xf32>
    %cst_79 = arith.constant dense<0.000000e+00> : vector<17x17xf32>
    %205 = tpu.matmul %202, %203, %cst_79 {dimension_numbers = #tpu.dot_dimension_numbers<[1], [1], [0], [0], [0, 0, 1, 0], [], []>} : vector<17x8xf32>, vector<17x8xf32>, vector<17x17xf32> -> vector<17x17xf32>
    %cst_80 = arith.constant 0.353553385 : f32
    %206 = vector.broadcast %cst_80 : f32 to vector<17x17xf32>
    %207 = arith.mulf %205, %206 : vector<17x17xf32>
    %cst_81 = arith.constant dense<0xFF800000> : vector<17xf32>
    %208 = vector.multi_reduction <maximumf>, %207, %cst_81 [1] : vector<17x17xf32> to vector<17xf32>
    %209 = vector.shape_cast %208 : vector<17xf32> to vector<17x1xf32>
    %210 = vector.broadcast %209 : vector<17x1xf32> to vector<17x17xf32>
    %211 = arith.subf %207, %210 : vector<17x17xf32>
    %212 = math.exp %211 : vector<17x17xf32>
    %cst_82 = arith.constant dense<0.000000e+00> : vector<17xf32>
    %213 = vector.multi_reduction <add>, %212, %cst_82 [1] : vector<17x17xf32> to vector<17xf32>
    %214 = vector.shape_cast %213 : vector<17xf32> to vector<17x1xf32>
    %215 = vector.broadcast %214 : vector<17x1xf32> to vector<17x17xf32>
    %216 = arith.divf %212, %215 : vector<17x17xf32>
    %cst_83 = arith.constant dense<0.000000e+00> : vector<17x8xf32>
    %217 = tpu.matmul %216, %204, %cst_83 {dimension_numbers = #tpu.dot_dimension_numbers<[1], [0], [0], [1], [0, 0, 1, 1], [], []>} : vector<17x17xf32>, vector<17x8xf32>, vector<17x8xf32> -> vector<17x8xf32>
    %218 = vector.extract_strided_slice %201 {offsets = [0, 8], sizes = [17, 8], strides = [1, 1]} : vector<17x96xf32> to vector<17x8xf32>
    %219 = vector.extract_strided_slice %201 {offsets = [0, 40], sizes = [17, 8], strides = [1, 1]} : vector<17x96xf32> to vector<17x8xf32>
    %220 = vector.extract_strided_slice %201 {offsets = [0, 72], sizes = [17, 8], strides = [1, 1]} : vector<17x96xf32> to vector<17x8xf32>
    %cst_84 = arith.constant dense<0.000000e+00> : vector<17x17xf32>
    %221 = tpu.matmul %218, %219, %cst_84 {dimension_numbers = #tpu.dot_dimension_numbers<[1], [1], [0], [0], [0, 0, 1, 0], [], []>} : vector<17x8xf32>, vector<17x8xf32>, vector<17x17xf32> -> vector<17x17xf32>
    %cst_85 = arith.constant 0.353553385 : f32
    %222 = vector.broadcast %cst_85 : f32 to vector<17x17xf32>
    %223 = arith.mulf %221, %222 : vector<17x17xf32>
    %cst_86 = arith.constant dense<0xFF800000> : vector<17xf32>
    %224 = vector.multi_reduction <maximumf>, %223, %cst_86 [1] : vector<17x17xf32> to vector<17xf32>
    %225 = vector.shape_cast %224 : vector<17xf32> to vector<17x1xf32>
    %226 = vector.broadcast %225 : vector<17x1xf32> to vector<17x17xf32>
    %227 = arith.subf %223, %226 : vector<17x17xf32>
    %228 = math.exp %227 : vector<17x17xf32>
    %cst_87 = arith.constant dense<0.000000e+00> : vector<17xf32>
    %229 = vector.multi_reduction <add>, %228, %cst_87 [1] : vector<17x17xf32> to vector<17xf32>
    %230 = vector.shape_cast %229 : vector<17xf32> to vector<17x1xf32>
    %231 = vector.broadcast %230 : vector<17x1xf32> to vector<17x17xf32>
    %232 = arith.divf %228, %231 : vector<17x17xf32>
    %cst_88 = arith.constant dense<0.000000e+00> : vector<17x8xf32>
    %233 = tpu.matmul %232, %220, %cst_88 {dimension_numbers = #tpu.dot_dimension_numbers<[1], [0], [0], [1], [0, 0, 1, 1], [], []>} : vector<17x17xf32>, vector<17x8xf32>, vector<17x8xf32> -> vector<17x8xf32>
    %234 = vector.extract_strided_slice %201 {offsets = [0, 16], sizes = [17, 8], strides = [1, 1]} : vector<17x96xf32> to vector<17x8xf32>
    %235 = vector.extract_strided_slice %201 {offsets = [0, 48], sizes = [17, 8], strides = [1, 1]} : vector<17x96xf32> to vector<17x8xf32>
    %236 = vector.extract_strided_slice %201 {offsets = [0, 80], sizes = [17, 8], strides = [1, 1]} : vector<17x96xf32> to vector<17x8xf32>
    %cst_89 = arith.constant dense<0.000000e+00> : vector<17x17xf32>
    %237 = tpu.matmul %234, %235, %cst_89 {dimension_numbers = #tpu.dot_dimension_numbers<[1], [1], [0], [0], [0, 0, 1, 0], [], []>} : vector<17x8xf32>, vector<17x8xf32>, vector<17x17xf32> -> vector<17x17xf32>
    %cst_90 = arith.constant 0.353553385 : f32
    %238 = vector.broadcast %cst_90 : f32 to vector<17x17xf32>
    %239 = arith.mulf %237, %238 : vector<17x17xf32>
    %cst_91 = arith.constant dense<0xFF800000> : vector<17xf32>
    %240 = vector.multi_reduction <maximumf>, %239, %cst_91 [1] : vector<17x17xf32> to vector<17xf32>
    %241 = vector.shape_cast %240 : vector<17xf32> to vector<17x1xf32>
    %242 = vector.broadcast %241 : vector<17x1xf32> to vector<17x17xf32>
    %243 = arith.subf %239, %242 : vector<17x17xf32>
    %244 = math.exp %243 : vector<17x17xf32>
    %cst_92 = arith.constant dense<0.000000e+00> : vector<17xf32>
    %245 = vector.multi_reduction <add>, %244, %cst_92 [1] : vector<17x17xf32> to vector<17xf32>
    %246 = vector.shape_cast %245 : vector<17xf32> to vector<17x1xf32>
    %247 = vector.broadcast %246 : vector<17x1xf32> to vector<17x17xf32>
    %248 = arith.divf %244, %247 : vector<17x17xf32>
    %cst_93 = arith.constant dense<0.000000e+00> : vector<17x8xf32>
    %249 = tpu.matmul %248, %236, %cst_93 {dimension_numbers = #tpu.dot_dimension_numbers<[1], [0], [0], [1], [0, 0, 1, 1], [], []>} : vector<17x17xf32>, vector<17x8xf32>, vector<17x8xf32> -> vector<17x8xf32>
    %250 = vector.extract_strided_slice %201 {offsets = [0, 24], sizes = [17, 8], strides = [1, 1]} : vector<17x96xf32> to vector<17x8xf32>
    %251 = vector.extract_strided_slice %201 {offsets = [0, 56], sizes = [17, 8], strides = [1, 1]} : vector<17x96xf32> to vector<17x8xf32>
    %252 = vector.extract_strided_slice %201 {offsets = [0, 88], sizes = [17, 8], strides = [1, 1]} : vector<17x96xf32> to vector<17x8xf32>
    %cst_94 = arith.constant dense<0.000000e+00> : vector<17x17xf32>
    %253 = tpu.matmul %250, %251, %cst_94 {dimension_numbers = #tpu.dot_dimension_numbers<[1], [1], [0], [0], [0, 0, 1, 0], [], []>} : vector<17x8xf32>, vector<17x8xf32>, vector<17x17xf32> -> vector<17x17xf32>
    %cst_95 = arith.constant 0.353553385 : f32
    %254 = vector.broadcast %cst_95 : f32 to vector<17x17xf32>
    %255 = arith.mulf %253, %254 : vector<17x17xf32>
    %cst_96 = arith.constant dense<0xFF800000> : vector<17xf32>
    %256 = vector.multi_reduction <maximumf>, %255, %cst_96 [1] : vector<17x17xf32> to vector<17xf32>
    %257 = vector.shape_cast %256 : vector<17xf32> to vector<17x1xf32>
    %258 = vector.broadcast %257 : vector<17x1xf32> to vector<17x17xf32>
    %259 = arith.subf %255, %258 : vector<17x17xf32>
    %260 = math.exp %259 : vector<17x17xf32>
    %cst_97 = arith.constant dense<0.000000e+00> : vector<17xf32>
    %261 = vector.multi_reduction <add>, %260, %cst_97 [1] : vector<17x17xf32> to vector<17xf32>
    %262 = vector.shape_cast %261 : vector<17xf32> to vector<17x1xf32>
    %263 = vector.broadcast %262 : vector<17x1xf32> to vector<17x17xf32>
    %264 = arith.divf %260, %263 : vector<17x17xf32>
    %cst_98 = arith.constant dense<0.000000e+00> : vector<17x8xf32>
    %265 = tpu.matmul %264, %252, %cst_98 {dimension_numbers = #tpu.dot_dimension_numbers<[1], [0], [0], [1], [0, 0, 1, 1], [], []>} : vector<17x17xf32>, vector<17x8xf32>, vector<17x8xf32> -> vector<17x8xf32>
    %266 = tpu.concatenate %217, %233, %249, %265 in 1 : vector<17x8xf32>, vector<17x8xf32>, vector<17x8xf32>, vector<17x8xf32> -> vector<17x32xf32>
    %c1_99 = arith.constant 1 : index
    %c0_100 = arith.constant 0 : index
    %c0_101 = arith.constant 0 : index
    %267 = vector.load %arg6[%c1_99, %c0_100, %c0_101] : memref<2x32x32xbf16, #tpu.memory_space<vmem>>, vector<1x32x32xbf16>
    %268 = vector.shape_cast %267 : vector<1x32x32xbf16> to vector<32x32xbf16>
    %269 = arith.truncf %266 : vector<17x32xf32> to vector<17x32xbf16>
    %cst_102 = arith.constant dense<0.000000e+00> : vector<17x32xf32>
    %270 = tpu.matmul %269, %268, %cst_102 {dimension_numbers = #tpu.dot_dimension_numbers<[1], [0], [0], [1], [0, 0, 1, 1], [], []>} : vector<17x32xbf16>, vector<32x32xbf16>, vector<17x32xf32> -> vector<17x32xf32>
    %271 = arith.addf %166, %270 : vector<17x32xf32>
    %272 = vector.extract_strided_slice %169 {offsets = [4, 0], sizes = [1, 32], strides = [1, 1]} : vector<6x32xf32> to vector<1x32xf32>
    %273 = vector.broadcast %272 : vector<1x32xf32> to vector<17x32xf32>
    %274 = arith.addf %271, %273 : vector<17x32xf32>
    %275 = vector.extract_strided_slice %169 {offsets = [2, 0], sizes = [1, 32], strides = [1, 1]} : vector<6x32xf32> to vector<1x32xf32>
    %276 = vector.extract_strided_slice %169 {offsets = [3, 0], sizes = [1, 32], strides = [1, 1]} : vector<6x32xf32> to vector<1x32xf32>
    %cst_103 = arith.constant dense<0.000000e+00> : vector<17xf32>
    %277 = vector.multi_reduction <add>, %274, %cst_103 [1] : vector<17x32xf32> to vector<17xf32>
    %278 = vector.shape_cast %277 : vector<17xf32> to vector<17x1xf32>
    %cst_104 = arith.constant 3.200000e+01 : f32
    %279 = vector.broadcast %cst_104 : f32 to vector<17x1xf32>
    %280 = arith.divf %278, %279 : vector<17x1xf32>
    %281 = vector.broadcast %280 : vector<17x1xf32> to vector<17x32xf32>
    %282 = arith.subf %274, %281 : vector<17x32xf32>
    %283 = arith.mulf %282, %282 : vector<17x32xf32>
    %cst_105 = arith.constant dense<0.000000e+00> : vector<17xf32>
    %284 = vector.multi_reduction <add>, %283, %cst_105 [1] : vector<17x32xf32> to vector<17xf32>
    %285 = vector.shape_cast %284 : vector<17xf32> to vector<17x1xf32>
    %cst_106 = arith.constant 3.200000e+01 : f32
    %286 = vector.broadcast %cst_106 : f32 to vector<17x1xf32>
    %287 = arith.divf %285, %286 : vector<17x1xf32>
    %288 = vector.broadcast %280 : vector<17x1xf32> to vector<17x32xf32>
    %289 = arith.subf %274, %288 : vector<17x32xf32>
    %cst_107 = arith.constant 9.99999974E-6 : f32
    %290 = vector.broadcast %cst_107 : f32 to vector<17x1xf32>
    %291 = arith.addf %287, %290 : vector<17x1xf32>
    %292 = math.rsqrt %291 : vector<17x1xf32>
    %293 = vector.broadcast %292 : vector<17x1xf32> to vector<17x32xf32>
    %294 = arith.mulf %289, %293 : vector<17x32xf32>
    %295 = vector.broadcast %275 : vector<1x32xf32> to vector<17x32xf32>
    %296 = arith.mulf %294, %295 : vector<17x32xf32>
    %297 = vector.broadcast %276 : vector<1x32xf32> to vector<17x32xf32>
    %298 = arith.addf %296, %297 : vector<17x32xf32>
    %c1_108 = arith.constant 1 : index
    %c0_109 = arith.constant 0 : index
    %c0_110 = arith.constant 0 : index
    %299 = vector.load %arg7[%c1_108, %c0_109, %c0_110] : memref<2x32x128xbf16, #tpu.memory_space<vmem>>, vector<1x32x128xbf16>
    %300 = vector.shape_cast %299 : vector<1x32x128xbf16> to vector<32x128xbf16>
    %c1_111 = arith.constant 1 : index
    %c0_112 = arith.constant 0 : index
    %c0_113 = arith.constant 0 : index
    %301 = vector.load %arg8[%c1_111, %c0_112, %c0_113] : memref<2x1x128xf32, #tpu.memory_space<vmem>>, vector<1x1x128xf32>
    %302 = vector.shape_cast %301 : vector<1x1x128xf32> to vector<1x128xf32>
    %303 = arith.truncf %298 : vector<17x32xf32> to vector<17x32xbf16>
    %cst_114 = arith.constant dense<0.000000e+00> : vector<17x128xf32>
    %304 = tpu.matmul %303, %300, %cst_114 {dimension_numbers = #tpu.dot_dimension_numbers<[1], [0], [0], [1], [0, 0, 1, 1], [], []>} : vector<17x32xbf16>, vector<32x128xbf16>, vector<17x128xf32> -> vector<17x128xf32>
    %305 = vector.broadcast %302 : vector<1x128xf32> to vector<17x128xf32>
    %306 = arith.addf %304, %305 : vector<17x128xf32>
    %307 = arith.mulf %306, %306 : vector<17x128xf32>
    %308 = arith.mulf %306, %307 : vector<17x128xf32>
    %cst_115 = arith.constant 4.471500e-02 : f32
    %309 = vector.broadcast %cst_115 : f32 to vector<17x128xf32>
    %310 = arith.mulf %309, %308 : vector<17x128xf32>
    %311 = arith.addf %306, %310 : vector<17x128xf32>
    %cst_116 = arith.constant 0.797884583 : f32
    %312 = vector.broadcast %cst_116 : f32 to vector<17x128xf32>
    %313 = arith.mulf %312, %311 : vector<17x128xf32>
    %314 = math.tanh %313 : vector<17x128xf32>
    %cst_117 = arith.constant 1.000000e+00 : f32
    %315 = vector.broadcast %cst_117 : f32 to vector<17x128xf32>
    %316 = arith.addf %315, %314 : vector<17x128xf32>
    %cst_118 = arith.constant 5.000000e-01 : f32
    %317 = vector.broadcast %cst_118 : f32 to vector<17x128xf32>
    %318 = arith.mulf %317, %316 : vector<17x128xf32>
    %319 = arith.mulf %306, %318 : vector<17x128xf32>
    %c1_119 = arith.constant 1 : index
    %c0_120 = arith.constant 0 : index
    %c0_121 = arith.constant 0 : index
    %320 = vector.load %arg9[%c1_119, %c0_120, %c0_121] : memref<2x128x32xbf16, #tpu.memory_space<vmem>>, vector<1x128x32xbf16>
    %321 = vector.shape_cast %320 : vector<1x128x32xbf16> to vector<128x32xbf16>
    %322 = arith.truncf %319 : vector<17x128xf32> to vector<17x128xbf16>
    %cst_122 = arith.constant dense<0.000000e+00> : vector<17x32xf32>
    %323 = tpu.matmul %322, %321, %cst_122 {dimension_numbers = #tpu.dot_dimension_numbers<[1], [0], [0], [1], [0, 0, 1, 1], [], []>} : vector<17x128xbf16>, vector<128x32xbf16>, vector<17x32xf32> -> vector<17x32xf32>
    %324 = arith.addf %274, %323 : vector<17x32xf32>
    %325 = vector.extract_strided_slice %169 {offsets = [5, 0], sizes = [1, 32], strides = [1, 1]} : vector<6x32xf32> to vector<1x32xf32>
    %326 = vector.broadcast %325 : vector<1x32xf32> to vector<17x32xf32>
    %327 = arith.addf %324, %326 : vector<17x32xf32>
    %c0_123 = arith.constant 0 : index
    %c0_124 = arith.constant 0 : index
    %328 = vector.load %arg11[%c0_123, %c0_124] : memref<2x32xf32, #tpu.memory_space<vmem>>, vector<2x32xf32>
    %329 = vector.extract_strided_slice %328 {offsets = [0, 0], sizes = [1, 32], strides = [1, 1]} : vector<2x32xf32> to vector<1x32xf32>
    %330 = vector.extract_strided_slice %328 {offsets = [1, 0], sizes = [1, 32], strides = [1, 1]} : vector<2x32xf32> to vector<1x32xf32>
    %cst_125 = arith.constant dense<0.000000e+00> : vector<17xf32>
    %331 = vector.multi_reduction <add>, %327, %cst_125 [1] : vector<17x32xf32> to vector<17xf32>
    %332 = vector.shape_cast %331 : vector<17xf32> to vector<17x1xf32>
    %cst_126 = arith.constant 3.200000e+01 : f32
    %333 = vector.broadcast %cst_126 : f32 to vector<17x1xf32>
    %334 = arith.divf %332, %333 : vector<17x1xf32>
    %335 = vector.broadcast %334 : vector<17x1xf32> to vector<17x32xf32>
    %336 = arith.subf %327, %335 : vector<17x32xf32>
    %337 = arith.mulf %336, %336 : vector<17x32xf32>
    %cst_127 = arith.constant dense<0.000000e+00> : vector<17xf32>
    %338 = vector.multi_reduction <add>, %337, %cst_127 [1] : vector<17x32xf32> to vector<17xf32>
    %339 = vector.shape_cast %338 : vector<17xf32> to vector<17x1xf32>
    %cst_128 = arith.constant 3.200000e+01 : f32
    %340 = vector.broadcast %cst_128 : f32 to vector<17x1xf32>
    %341 = arith.divf %339, %340 : vector<17x1xf32>
    %342 = vector.broadcast %334 : vector<17x1xf32> to vector<17x32xf32>
    %343 = arith.subf %327, %342 : vector<17x32xf32>
    %cst_129 = arith.constant 9.99999974E-6 : f32
    %344 = vector.broadcast %cst_129 : f32 to vector<17x1xf32>
    %345 = arith.addf %341, %344 : vector<17x1xf32>
    %346 = math.rsqrt %345 : vector<17x1xf32>
    %347 = vector.broadcast %346 : vector<17x1xf32> to vector<17x32xf32>
    %348 = arith.mulf %343, %347 : vector<17x32xf32>
    %349 = vector.broadcast %329 : vector<1x32xf32> to vector<17x32xf32>
    %350 = arith.mulf %348, %349 : vector<17x32xf32>
    %351 = vector.broadcast %330 : vector<1x32xf32> to vector<17x32xf32>
    %352 = arith.addf %350, %351 : vector<17x32xf32>
    %353 = vector.extract_strided_slice %352 {offsets = [1, 0], sizes = [16, 32], strides = [1, 1]} : vector<17x32xf32> to vector<16x32xf32>
    %354 = arith.addf %167, %353 : vector<16x32xf32>
    %cst_130 = arith.constant 5.000000e-01 : f32
    %355 = vector.broadcast %cst_130 : f32 to vector<16x32xf32>
    %356 = arith.mulf %354, %355 : vector<16x32xf32>
    %c0_131 = arith.constant 0 : index
    %c0_132 = arith.constant 0 : index
    %357 = vector.load %arg21[%c0_131, %c0_132] : memref<11x32xf32, #tpu.memory_space<vmem>>, vector<11x32xf32>
    %358 = vector.extract_strided_slice %357 {offsets = [0, 0], sizes = [1, 32], strides = [1, 1]} : vector<11x32xf32> to vector<1x32xf32>
    %359 = vector.extract_strided_slice %357 {offsets = [1, 0], sizes = [1, 32], strides = [1, 1]} : vector<11x32xf32> to vector<1x32xf32>
    %cst_133 = arith.constant dense<0.000000e+00> : vector<16xf32>
    %360 = vector.multi_reduction <add>, %356, %cst_133 [1] : vector<16x32xf32> to vector<16xf32>
    %361 = vector.shape_cast %360 : vector<16xf32> to vector<16x1xf32>
    %cst_134 = arith.constant 3.200000e+01 : f32
    %362 = vector.broadcast %cst_134 : f32 to vector<16x1xf32>
    %363 = arith.divf %361, %362 : vector<16x1xf32>
    %364 = vector.broadcast %363 : vector<16x1xf32> to vector<16x32xf32>
    %365 = arith.subf %356, %364 : vector<16x32xf32>
    %366 = arith.mulf %365, %365 : vector<16x32xf32>
    %cst_135 = arith.constant dense<0.000000e+00> : vector<16xf32>
    %367 = vector.multi_reduction <add>, %366, %cst_135 [1] : vector<16x32xf32> to vector<16xf32>
    %368 = vector.shape_cast %367 : vector<16xf32> to vector<16x1xf32>
    %cst_136 = arith.constant 3.200000e+01 : f32
    %369 = vector.broadcast %cst_136 : f32 to vector<16x1xf32>
    %370 = arith.divf %368, %369 : vector<16x1xf32>
    %371 = vector.broadcast %363 : vector<16x1xf32> to vector<16x32xf32>
    %372 = arith.subf %356, %371 : vector<16x32xf32>
    %cst_137 = arith.constant 9.99999974E-6 : f32
    %373 = vector.broadcast %cst_137 : f32 to vector<16x1xf32>
    %374 = arith.addf %370, %373 : vector<16x1xf32>
    %375 = math.rsqrt %374 : vector<16x1xf32>
    %376 = vector.broadcast %375 : vector<16x1xf32> to vector<16x32xf32>
    %377 = arith.mulf %372, %376 : vector<16x32xf32>
    %378 = vector.broadcast %358 : vector<1x32xf32> to vector<16x32xf32>
    %379 = arith.mulf %377, %378 : vector<16x32xf32>
    %380 = vector.broadcast %359 : vector<1x32xf32> to vector<16x32xf32>
    %381 = arith.addf %379, %380 : vector<16x32xf32>
    %c0_138 = arith.constant 0 : index
    %c0_139 = arith.constant 0 : index
    %c0_140 = arith.constant 0 : index
    %382 = vector.load %arg12[%c0_138, %c0_139, %c0_140] : memref<2x32x32xf32, #tpu.memory_space<vmem>>, vector<1x32x32xf32>
    %383 = vector.shape_cast %382 : vector<1x32x32xf32> to vector<32x32xf32>
    %384 = vector.extract_strided_slice %357 {offsets = [2, 0], sizes = [1, 32], strides = [1, 1]} : vector<11x32xf32> to vector<1x32xf32>
    %cst_141 = arith.constant dense<0.000000e+00> : vector<16x32xf32>
    %385 = tpu.matmul %381, %383, %cst_141 {dimension_numbers = #tpu.dot_dimension_numbers<[1], [0], [0], [1], [0, 0, 1, 1], [], []>} : vector<16x32xf32>, vector<32x32xf32>, vector<16x32xf32> -> vector<16x32xf32>
    %386 = vector.broadcast %384 : vector<1x32xf32> to vector<16x32xf32>
    %387 = arith.addf %385, %386 : vector<16x32xf32>
    %cst_142 = arith.constant 0.000000e+00 : f32
    %388 = vector.broadcast %cst_142 : f32 to vector<16x32xf32>
    %389 = arith.maximumf %387, %388 : vector<16x32xf32>
    %c1_143 = arith.constant 1 : index
    %c0_144 = arith.constant 0 : index
    %c0_145 = arith.constant 0 : index
    %390 = vector.load %arg12[%c1_143, %c0_144, %c0_145] : memref<2x32x32xf32, #tpu.memory_space<vmem>>, vector<1x32x32xf32>
    %391 = vector.shape_cast %390 : vector<1x32x32xf32> to vector<32x32xf32>
    %392 = vector.extract_strided_slice %357 {offsets = [3, 0], sizes = [1, 32], strides = [1, 1]} : vector<11x32xf32> to vector<1x32xf32>
    %cst_146 = arith.constant dense<0.000000e+00> : vector<16x32xf32>
    %393 = tpu.matmul %389, %391, %cst_146 {dimension_numbers = #tpu.dot_dimension_numbers<[1], [0], [0], [1], [0, 0, 1, 1], [], []>} : vector<16x32xf32>, vector<32x32xf32>, vector<16x32xf32> -> vector<16x32xf32>
    %394 = vector.broadcast %392 : vector<1x32xf32> to vector<16x32xf32>
    %395 = arith.addf %393, %394 : vector<16x32xf32>
    %396 = vector.extract_strided_slice %357 {offsets = [4, 0], sizes = [1, 32], strides = [1, 1]} : vector<11x32xf32> to vector<1x32xf32>
    %397 = vector.extract_strided_slice %357 {offsets = [5, 0], sizes = [1, 32], strides = [1, 1]} : vector<11x32xf32> to vector<1x32xf32>
    %cst_147 = arith.constant dense<0.000000e+00> : vector<16xf32>
    %398 = vector.multi_reduction <add>, %395, %cst_147 [1] : vector<16x32xf32> to vector<16xf32>
    %399 = vector.shape_cast %398 : vector<16xf32> to vector<16x1xf32>
    %cst_148 = arith.constant 3.200000e+01 : f32
    %400 = vector.broadcast %cst_148 : f32 to vector<16x1xf32>
    %401 = arith.divf %399, %400 : vector<16x1xf32>
    %402 = vector.broadcast %401 : vector<16x1xf32> to vector<16x32xf32>
    %403 = arith.subf %395, %402 : vector<16x32xf32>
    %404 = arith.mulf %403, %403 : vector<16x32xf32>
    %cst_149 = arith.constant dense<0.000000e+00> : vector<16xf32>
    %405 = vector.multi_reduction <add>, %404, %cst_149 [1] : vector<16x32xf32> to vector<16xf32>
    %406 = vector.shape_cast %405 : vector<16xf32> to vector<16x1xf32>
    %cst_150 = arith.constant 3.200000e+01 : f32
    %407 = vector.broadcast %cst_150 : f32 to vector<16x1xf32>
    %408 = arith.divf %406, %407 : vector<16x1xf32>
    %409 = vector.broadcast %401 : vector<16x1xf32> to vector<16x32xf32>
    %410 = arith.subf %395, %409 : vector<16x32xf32>
    %cst_151 = arith.constant 9.99999974E-6 : f32
    %411 = vector.broadcast %cst_151 : f32 to vector<16x1xf32>
    %412 = arith.addf %408, %411 : vector<16x1xf32>
    %413 = math.rsqrt %412 : vector<16x1xf32>
    %414 = vector.broadcast %413 : vector<16x1xf32> to vector<16x32xf32>
    %415 = arith.mulf %410, %414 : vector<16x32xf32>
    %416 = vector.broadcast %396 : vector<1x32xf32> to vector<16x32xf32>
    %417 = arith.mulf %415, %416 : vector<16x32xf32>
    %418 = vector.broadcast %397 : vector<1x32xf32> to vector<16x32xf32>
    %419 = arith.addf %417, %418 : vector<16x32xf32>
    %c0_152 = arith.constant 0 : index
    %c0_153 = arith.constant 0 : index
    %420 = vector.load %arg13[%c0_152, %c0_153] : memref<32x64xf32, #tpu.memory_space<vmem>>, vector<32x64xf32>
    %cst_154 = arith.constant dense<0.000000e+00> : vector<16x64xf32>
    %421 = tpu.matmul %419, %420, %cst_154 {dimension_numbers = #tpu.dot_dimension_numbers<[1], [0], [0], [1], [0, 0, 1, 1], [], []>} : vector<16x32xf32>, vector<32x64xf32>, vector<16x64xf32> -> vector<16x64xf32>
    %422 = vector.extract_strided_slice %421 {offsets = [0, 0], sizes = [16, 32], strides = [1, 1]} : vector<16x64xf32> to vector<16x32xf32>
    %423 = vector.extract_strided_slice %421 {offsets = [0, 32], sizes = [16, 32], strides = [1, 1]} : vector<16x64xf32> to vector<16x32xf32>
    %c0_155 = arith.constant 0 : index
    %c0_156 = arith.constant 0 : index
    %424 = vector.load %arg17[%c0_155, %c0_156] : memref<2x96xf32, #tpu.memory_space<vmem>>, vector<2x96xf32>
    %c0_157 = arith.constant 0 : index
    %c0_158 = arith.constant 0 : index
    %425 = vector.load %arg22[%c0_157, %c0_158] : memref<4x32xf32, #tpu.memory_space<vmem>>, vector<4x32xf32>
    %426 = vector.extract_strided_slice %357 {offsets = [6, 0], sizes = [1, 32], strides = [1, 1]} : vector<11x32xf32> to vector<1x32xf32>
    %427 = vector.extract_strided_slice %357 {offsets = [7, 0], sizes = [1, 32], strides = [1, 1]} : vector<11x32xf32> to vector<1x32xf32>
    %cst_159 = arith.constant dense<0.000000e+00> : vector<4xf32>
    %428 = vector.multi_reduction <add>, %425, %cst_159 [1] : vector<4x32xf32> to vector<4xf32>
    %429 = vector.shape_cast %428 : vector<4xf32> to vector<4x1xf32>
    %cst_160 = arith.constant 3.200000e+01 : f32
    %430 = vector.broadcast %cst_160 : f32 to vector<4x1xf32>
    %431 = arith.divf %429, %430 : vector<4x1xf32>
    %432 = vector.broadcast %431 : vector<4x1xf32> to vector<4x32xf32>
    %433 = arith.subf %425, %432 : vector<4x32xf32>
    %434 = arith.mulf %433, %433 : vector<4x32xf32>
    %cst_161 = arith.constant dense<0.000000e+00> : vector<4xf32>
    %435 = vector.multi_reduction <add>, %434, %cst_161 [1] : vector<4x32xf32> to vector<4xf32>
    %436 = vector.shape_cast %435 : vector<4xf32> to vector<4x1xf32>
    %cst_162 = arith.constant 3.200000e+01 : f32
    %437 = vector.broadcast %cst_162 : f32 to vector<4x1xf32>
    %438 = arith.divf %436, %437 : vector<4x1xf32>
    %439 = vector.broadcast %431 : vector<4x1xf32> to vector<4x32xf32>
    %440 = arith.subf %425, %439 : vector<4x32xf32>
    %cst_163 = arith.constant 9.99999974E-6 : f32
    %441 = vector.broadcast %cst_163 : f32 to vector<4x1xf32>
    %442 = arith.addf %438, %441 : vector<4x1xf32>
    %443 = math.rsqrt %442 : vector<4x1xf32>
    %444 = vector.broadcast %443 : vector<4x1xf32> to vector<4x32xf32>
    %445 = arith.mulf %440, %444 : vector<4x32xf32>
    %446 = vector.broadcast %426 : vector<1x32xf32> to vector<4x32xf32>
    %447 = arith.mulf %445, %446 : vector<4x32xf32>
    %448 = vector.broadcast %427 : vector<1x32xf32> to vector<4x32xf32>
    %449 = arith.addf %447, %448 : vector<4x32xf32>
    %c0_164 = arith.constant 0 : index
    %c0_165 = arith.constant 0 : index
    %450 = vector.load %arg14[%c0_164, %c0_165] : memref<32x32xf32, #tpu.memory_space<vmem>>, vector<32x32xf32>
    %cst_166 = arith.constant dense<0.000000e+00> : vector<4x32xf32>
    %451 = tpu.matmul %449, %450, %cst_166 {dimension_numbers = #tpu.dot_dimension_numbers<[1], [0], [0], [1], [0, 0, 1, 1], [], []>} : vector<4x32xf32>, vector<32x32xf32>, vector<4x32xf32> -> vector<4x32xf32>
    %cst_167 = arith.constant dense<0.000000e+00> : vector<4x16xf32>
    %452 = tpu.matmul %451, %422, %cst_167 {dimension_numbers = #tpu.dot_dimension_numbers<[1], [1], [0], [0], [0, 0, 1, 0], [], []>} : vector<4x32xf32>, vector<16x32xf32>, vector<4x16xf32> -> vector<4x16xf32>
    %cst_168 = arith.constant 0.176776692 : f32
    %453 = vector.broadcast %cst_168 : f32 to vector<4x16xf32>
    %454 = arith.mulf %452, %453 : vector<4x16xf32>
    %cst_169 = arith.constant dense<0xFF800000> : vector<16xf32>
    %455 = vector.multi_reduction <maximumf>, %454, %cst_169 [0] : vector<4x16xf32> to vector<16xf32>
    %456 = vector.shape_cast %455 : vector<16xf32> to vector<1x16xf32>
    %457 = vector.broadcast %456 : vector<1x16xf32> to vector<4x16xf32>
    %458 = arith.subf %454, %457 : vector<4x16xf32>
    %459 = math.exp %458 : vector<4x16xf32>
    %cst_170 = arith.constant dense<0.000000e+00> : vector<16xf32>
    %460 = vector.multi_reduction <add>, %459, %cst_170 [0] : vector<4x16xf32> to vector<16xf32>
    %461 = vector.shape_cast %460 : vector<16xf32> to vector<1x16xf32>
    %462 = vector.broadcast %461 : vector<1x16xf32> to vector<4x16xf32>
    %463 = arith.divf %459, %462 : vector<4x16xf32>
    %cst_171 = arith.constant 9.99999993E-9 : f32
    %464 = vector.broadcast %cst_171 : f32 to vector<4x16xf32>
    %465 = arith.addf %463, %464 : vector<4x16xf32>
    %cst_172 = arith.constant dense<0.000000e+00> : vector<4xf32>
    %466 = vector.multi_reduction <add>, %465, %cst_172 [1] : vector<4x16xf32> to vector<4xf32>
    %467 = vector.shape_cast %466 : vector<4xf32> to vector<4x1xf32>
    %468 = vector.broadcast %467 : vector<4x1xf32> to vector<4x16xf32>
    %469 = arith.divf %465, %468 : vector<4x16xf32>
    %cst_173 = arith.constant dense<0.000000e+00> : vector<4x32xf32>
    %470 = tpu.matmul %469, %423, %cst_173 {dimension_numbers = #tpu.dot_dimension_numbers<[1], [0], [0], [1], [0, 0, 1, 1], [], []>} : vector<4x16xf32>, vector<16x32xf32>, vector<4x32xf32> -> vector<4x32xf32>
    %c0_174 = arith.constant 0 : index
    %c0_175 = arith.constant 0 : index
    %471 = vector.load %arg15[%c0_174, %c0_175] : memref<32x96xf32, #tpu.memory_space<vmem>>, vector<32x96xf32>
    %cst_176 = arith.constant dense<0.000000e+00> : vector<4x96xf32>
    %472 = tpu.matmul %470, %471, %cst_176 {dimension_numbers = #tpu.dot_dimension_numbers<[1], [0], [0], [1], [0, 0, 1, 1], [], []>} : vector<4x32xf32>, vector<32x96xf32>, vector<4x96xf32> -> vector<4x96xf32>
    %473 = vector.extract_strided_slice %424 {offsets = [0, 0], sizes = [1, 96], strides = [1, 1]} : vector<2x96xf32> to vector<1x96xf32>
    %474 = vector.broadcast %473 : vector<1x96xf32> to vector<4x96xf32>
    %475 = arith.addf %472, %474 : vector<4x96xf32>
    %c0_177 = arith.constant 0 : index
    %c0_178 = arith.constant 0 : index
    %476 = vector.load %arg16[%c0_177, %c0_178] : memref<32x96xf32, #tpu.memory_space<vmem>>, vector<32x96xf32>
    %cst_179 = arith.constant dense<0.000000e+00> : vector<4x96xf32>
    %477 = tpu.matmul %425, %476, %cst_179 {dimension_numbers = #tpu.dot_dimension_numbers<[1], [0], [0], [1], [0, 0, 1, 1], [], []>} : vector<4x32xf32>, vector<32x96xf32>, vector<4x96xf32> -> vector<4x96xf32>
    %478 = vector.extract_strided_slice %424 {offsets = [1, 0], sizes = [1, 96], strides = [1, 1]} : vector<2x96xf32> to vector<1x96xf32>
    %479 = vector.broadcast %478 : vector<1x96xf32> to vector<4x96xf32>
    %480 = arith.addf %477, %479 : vector<4x96xf32>
    %481 = vector.extract_strided_slice %475 {offsets = [0, 0], sizes = [4, 32], strides = [1, 1]} : vector<4x96xf32> to vector<4x32xf32>
    %482 = vector.extract_strided_slice %480 {offsets = [0, 0], sizes = [4, 32], strides = [1, 1]} : vector<4x96xf32> to vector<4x32xf32>
    %483 = arith.addf %481, %482 : vector<4x32xf32>
    %484 = arith.negf %483 : vector<4x32xf32>
    %485 = math.exp %484 : vector<4x32xf32>
    %cst_180 = arith.constant 1.000000e+00 : f32
    %486 = vector.broadcast %cst_180 : f32 to vector<4x32xf32>
    %487 = arith.addf %486, %485 : vector<4x32xf32>
    %488 = arith.divf %486, %487 : vector<4x32xf32>
    %489 = vector.extract_strided_slice %475 {offsets = [0, 32], sizes = [4, 32], strides = [1, 1]} : vector<4x96xf32> to vector<4x32xf32>
    %490 = vector.extract_strided_slice %480 {offsets = [0, 32], sizes = [4, 32], strides = [1, 1]} : vector<4x96xf32> to vector<4x32xf32>
    %491 = arith.addf %489, %490 : vector<4x32xf32>
    %492 = arith.negf %491 : vector<4x32xf32>
    %493 = math.exp %492 : vector<4x32xf32>
    %cst_181 = arith.constant 1.000000e+00 : f32
    %494 = vector.broadcast %cst_181 : f32 to vector<4x32xf32>
    %495 = arith.addf %494, %493 : vector<4x32xf32>
    %496 = arith.divf %494, %495 : vector<4x32xf32>
    %497 = vector.extract_strided_slice %475 {offsets = [0, 64], sizes = [4, 32], strides = [1, 1]} : vector<4x96xf32> to vector<4x32xf32>
    %498 = vector.extract_strided_slice %480 {offsets = [0, 64], sizes = [4, 32], strides = [1, 1]} : vector<4x96xf32> to vector<4x32xf32>
    %499 = arith.mulf %488, %498 : vector<4x32xf32>
    %500 = arith.addf %497, %499 : vector<4x32xf32>
    %501 = math.tanh %500 : vector<4x32xf32>
    %cst_182 = arith.constant 1.000000e+00 : f32
    %502 = vector.broadcast %cst_182 : f32 to vector<4x32xf32>
    %503 = arith.subf %502, %496 : vector<4x32xf32>
    %504 = arith.mulf %503, %501 : vector<4x32xf32>
    %505 = arith.mulf %496, %425 : vector<4x32xf32>
    %506 = arith.addf %504, %505 : vector<4x32xf32>
    %507 = vector.extract_strided_slice %357 {offsets = [8, 0], sizes = [1, 32], strides = [1, 1]} : vector<11x32xf32> to vector<1x32xf32>
    %508 = vector.extract_strided_slice %357 {offsets = [9, 0], sizes = [1, 32], strides = [1, 1]} : vector<11x32xf32> to vector<1x32xf32>
    %cst_183 = arith.constant dense<0.000000e+00> : vector<4xf32>
    %509 = vector.multi_reduction <add>, %506, %cst_183 [1] : vector<4x32xf32> to vector<4xf32>
    %510 = vector.shape_cast %509 : vector<4xf32> to vector<4x1xf32>
    %cst_184 = arith.constant 3.200000e+01 : f32
    %511 = vector.broadcast %cst_184 : f32 to vector<4x1xf32>
    %512 = arith.divf %510, %511 : vector<4x1xf32>
    %513 = vector.broadcast %512 : vector<4x1xf32> to vector<4x32xf32>
    %514 = arith.subf %506, %513 : vector<4x32xf32>
    %515 = arith.mulf %514, %514 : vector<4x32xf32>
    %cst_185 = arith.constant dense<0.000000e+00> : vector<4xf32>
    %516 = vector.multi_reduction <add>, %515, %cst_185 [1] : vector<4x32xf32> to vector<4xf32>
    %517 = vector.shape_cast %516 : vector<4xf32> to vector<4x1xf32>
    %cst_186 = arith.constant 3.200000e+01 : f32
    %518 = vector.broadcast %cst_186 : f32 to vector<4x1xf32>
    %519 = arith.divf %517, %518 : vector<4x1xf32>
    %520 = vector.broadcast %512 : vector<4x1xf32> to vector<4x32xf32>
    %521 = arith.subf %506, %520 : vector<4x32xf32>
    %cst_187 = arith.constant 9.99999974E-6 : f32
    %522 = vector.broadcast %cst_187 : f32 to vector<4x1xf32>
    %523 = arith.addf %519, %522 : vector<4x1xf32>
    %524 = math.rsqrt %523 : vector<4x1xf32>
    %525 = vector.broadcast %524 : vector<4x1xf32> to vector<4x32xf32>
    %526 = arith.mulf %521, %525 : vector<4x32xf32>
    %527 = vector.broadcast %507 : vector<1x32xf32> to vector<4x32xf32>
    %528 = arith.mulf %526, %527 : vector<4x32xf32>
    %529 = vector.broadcast %508 : vector<1x32xf32> to vector<4x32xf32>
    %530 = arith.addf %528, %529 : vector<4x32xf32>
    %c0_188 = arith.constant 0 : index
    %c0_189 = arith.constant 0 : index
    %531 = vector.load %arg18[%c0_188, %c0_189] : memref<32x64xf32, #tpu.memory_space<vmem>>, vector<32x64xf32>
    %c0_190 = arith.constant 0 : index
    %c0_191 = arith.constant 0 : index
    %532 = vector.load %arg19[%c0_190, %c0_191] : memref<1x64xf32, #tpu.memory_space<vmem>>, vector<1x64xf32>
    %cst_192 = arith.constant dense<0.000000e+00> : vector<4x64xf32>
    %533 = tpu.matmul %530, %531, %cst_192 {dimension_numbers = #tpu.dot_dimension_numbers<[1], [0], [0], [1], [0, 0, 1, 1], [], []>} : vector<4x32xf32>, vector<32x64xf32>, vector<4x64xf32> -> vector<4x64xf32>
    %534 = vector.broadcast %532 : vector<1x64xf32> to vector<4x64xf32>
    %535 = arith.addf %533, %534 : vector<4x64xf32>
    %cst_193 = arith.constant 0.000000e+00 : f32
    %536 = vector.broadcast %cst_193 : f32 to vector<4x64xf32>
    %537 = arith.maximumf %535, %536 : vector<4x64xf32>
    %c0_194 = arith.constant 0 : index
    %c0_195 = arith.constant 0 : index
    %538 = vector.load %arg20[%c0_194, %c0_195] : memref<64x32xf32, #tpu.memory_space<vmem>>, vector<64x32xf32>
    %cst_196 = arith.constant dense<0.000000e+00> : vector<4x32xf32>
    %539 = tpu.matmul %537, %538, %cst_196 {dimension_numbers = #tpu.dot_dimension_numbers<[1], [0], [0], [1], [0, 0, 1, 1], [], []>} : vector<4x64xf32>, vector<64x32xf32>, vector<4x32xf32> -> vector<4x32xf32>
    %540 = arith.addf %506, %539 : vector<4x32xf32>
    %541 = vector.extract_strided_slice %357 {offsets = [10, 0], sizes = [1, 32], strides = [1, 1]} : vector<11x32xf32> to vector<1x32xf32>
    %542 = vector.broadcast %541 : vector<1x32xf32> to vector<4x32xf32>
    %543 = arith.addf %540, %542 : vector<4x32xf32>
    %544 = vector.extract_strided_slice %357 {offsets = [6, 0], sizes = [1, 32], strides = [1, 1]} : vector<11x32xf32> to vector<1x32xf32>
    %545 = vector.extract_strided_slice %357 {offsets = [7, 0], sizes = [1, 32], strides = [1, 1]} : vector<11x32xf32> to vector<1x32xf32>
    %cst_197 = arith.constant dense<0.000000e+00> : vector<4xf32>
    %546 = vector.multi_reduction <add>, %543, %cst_197 [1] : vector<4x32xf32> to vector<4xf32>
    %547 = vector.shape_cast %546 : vector<4xf32> to vector<4x1xf32>
    %cst_198 = arith.constant 3.200000e+01 : f32
    %548 = vector.broadcast %cst_198 : f32 to vector<4x1xf32>
    %549 = arith.divf %547, %548 : vector<4x1xf32>
    %550 = vector.broadcast %549 : vector<4x1xf32> to vector<4x32xf32>
    %551 = arith.subf %543, %550 : vector<4x32xf32>
    %552 = arith.mulf %551, %551 : vector<4x32xf32>
    %cst_199 = arith.constant dense<0.000000e+00> : vector<4xf32>
    %553 = vector.multi_reduction <add>, %552, %cst_199 [1] : vector<4x32xf32> to vector<4xf32>
    %554 = vector.shape_cast %553 : vector<4xf32> to vector<4x1xf32>
    %cst_200 = arith.constant 3.200000e+01 : f32
    %555 = vector.broadcast %cst_200 : f32 to vector<4x1xf32>
    %556 = arith.divf %554, %555 : vector<4x1xf32>
    %557 = vector.broadcast %549 : vector<4x1xf32> to vector<4x32xf32>
    %558 = arith.subf %543, %557 : vector<4x32xf32>
    %cst_201 = arith.constant 9.99999974E-6 : f32
    %559 = vector.broadcast %cst_201 : f32 to vector<4x1xf32>
    %560 = arith.addf %556, %559 : vector<4x1xf32>
    %561 = math.rsqrt %560 : vector<4x1xf32>
    %562 = vector.broadcast %561 : vector<4x1xf32> to vector<4x32xf32>
    %563 = arith.mulf %558, %562 : vector<4x32xf32>
    %564 = vector.broadcast %544 : vector<1x32xf32> to vector<4x32xf32>
    %565 = arith.mulf %563, %564 : vector<4x32xf32>
    %566 = vector.broadcast %545 : vector<1x32xf32> to vector<4x32xf32>
    %567 = arith.addf %565, %566 : vector<4x32xf32>
    %c0_202 = arith.constant 0 : index
    %c0_203 = arith.constant 0 : index
    %568 = vector.load %arg14[%c0_202, %c0_203] : memref<32x32xf32, #tpu.memory_space<vmem>>, vector<32x32xf32>
    %cst_204 = arith.constant dense<0.000000e+00> : vector<4x32xf32>
    %569 = tpu.matmul %567, %568, %cst_204 {dimension_numbers = #tpu.dot_dimension_numbers<[1], [0], [0], [1], [0, 0, 1, 1], [], []>} : vector<4x32xf32>, vector<32x32xf32>, vector<4x32xf32> -> vector<4x32xf32>
    %cst_205 = arith.constant dense<0.000000e+00> : vector<4x16xf32>
    %570 = tpu.matmul %569, %422, %cst_205 {dimension_numbers = #tpu.dot_dimension_numbers<[1], [1], [0], [0], [0, 0, 1, 0], [], []>} : vector<4x32xf32>, vector<16x32xf32>, vector<4x16xf32> -> vector<4x16xf32>
    %cst_206 = arith.constant 0.176776692 : f32
    %571 = vector.broadcast %cst_206 : f32 to vector<4x16xf32>
    %572 = arith.mulf %570, %571 : vector<4x16xf32>
    %cst_207 = arith.constant dense<0xFF800000> : vector<16xf32>
    %573 = vector.multi_reduction <maximumf>, %572, %cst_207 [0] : vector<4x16xf32> to vector<16xf32>
    %574 = vector.shape_cast %573 : vector<16xf32> to vector<1x16xf32>
    %575 = vector.broadcast %574 : vector<1x16xf32> to vector<4x16xf32>
    %576 = arith.subf %572, %575 : vector<4x16xf32>
    %577 = math.exp %576 : vector<4x16xf32>
    %cst_208 = arith.constant dense<0.000000e+00> : vector<16xf32>
    %578 = vector.multi_reduction <add>, %577, %cst_208 [0] : vector<4x16xf32> to vector<16xf32>
    %579 = vector.shape_cast %578 : vector<16xf32> to vector<1x16xf32>
    %580 = vector.broadcast %579 : vector<1x16xf32> to vector<4x16xf32>
    %581 = arith.divf %577, %580 : vector<4x16xf32>
    %cst_209 = arith.constant 9.99999993E-9 : f32
    %582 = vector.broadcast %cst_209 : f32 to vector<4x16xf32>
    %583 = arith.addf %581, %582 : vector<4x16xf32>
    %cst_210 = arith.constant dense<0.000000e+00> : vector<4xf32>
    %584 = vector.multi_reduction <add>, %583, %cst_210 [1] : vector<4x16xf32> to vector<4xf32>
    %585 = vector.shape_cast %584 : vector<4xf32> to vector<4x1xf32>
    %586 = vector.broadcast %585 : vector<4x1xf32> to vector<4x16xf32>
    %587 = arith.divf %583, %586 : vector<4x16xf32>
    %cst_211 = arith.constant dense<0.000000e+00> : vector<4x32xf32>
    %588 = tpu.matmul %587, %423, %cst_211 {dimension_numbers = #tpu.dot_dimension_numbers<[1], [0], [0], [1], [0, 0, 1, 1], [], []>} : vector<4x16xf32>, vector<16x32xf32>, vector<4x32xf32> -> vector<4x32xf32>
    %c0_212 = arith.constant 0 : index
    %c0_213 = arith.constant 0 : index
    %589 = vector.load %arg15[%c0_212, %c0_213] : memref<32x96xf32, #tpu.memory_space<vmem>>, vector<32x96xf32>
    %cst_214 = arith.constant dense<0.000000e+00> : vector<4x96xf32>
    %590 = tpu.matmul %588, %589, %cst_214 {dimension_numbers = #tpu.dot_dimension_numbers<[1], [0], [0], [1], [0, 0, 1, 1], [], []>} : vector<4x32xf32>, vector<32x96xf32>, vector<4x96xf32> -> vector<4x96xf32>
    %591 = vector.extract_strided_slice %424 {offsets = [0, 0], sizes = [1, 96], strides = [1, 1]} : vector<2x96xf32> to vector<1x96xf32>
    %592 = vector.broadcast %591 : vector<1x96xf32> to vector<4x96xf32>
    %593 = arith.addf %590, %592 : vector<4x96xf32>
    %c0_215 = arith.constant 0 : index
    %c0_216 = arith.constant 0 : index
    %594 = vector.load %arg16[%c0_215, %c0_216] : memref<32x96xf32, #tpu.memory_space<vmem>>, vector<32x96xf32>
    %cst_217 = arith.constant dense<0.000000e+00> : vector<4x96xf32>
    %595 = tpu.matmul %543, %594, %cst_217 {dimension_numbers = #tpu.dot_dimension_numbers<[1], [0], [0], [1], [0, 0, 1, 1], [], []>} : vector<4x32xf32>, vector<32x96xf32>, vector<4x96xf32> -> vector<4x96xf32>
    %596 = vector.extract_strided_slice %424 {offsets = [1, 0], sizes = [1, 96], strides = [1, 1]} : vector<2x96xf32> to vector<1x96xf32>
    %597 = vector.broadcast %596 : vector<1x96xf32> to vector<4x96xf32>
    %598 = arith.addf %595, %597 : vector<4x96xf32>
    %599 = vector.extract_strided_slice %593 {offsets = [0, 0], sizes = [4, 32], strides = [1, 1]} : vector<4x96xf32> to vector<4x32xf32>
    %600 = vector.extract_strided_slice %598 {offsets = [0, 0], sizes = [4, 32], strides = [1, 1]} : vector<4x96xf32> to vector<4x32xf32>
    %601 = arith.addf %599, %600 : vector<4x32xf32>
    %602 = arith.negf %601 : vector<4x32xf32>
    %603 = math.exp %602 : vector<4x32xf32>
    %cst_218 = arith.constant 1.000000e+00 : f32
    %604 = vector.broadcast %cst_218 : f32 to vector<4x32xf32>
    %605 = arith.addf %604, %603 : vector<4x32xf32>
    %606 = arith.divf %604, %605 : vector<4x32xf32>
    %607 = vector.extract_strided_slice %593 {offsets = [0, 32], sizes = [4, 32], strides = [1, 1]} : vector<4x96xf32> to vector<4x32xf32>
    %608 = vector.extract_strided_slice %598 {offsets = [0, 32], sizes = [4, 32], strides = [1, 1]} : vector<4x96xf32> to vector<4x32xf32>
    %609 = arith.addf %607, %608 : vector<4x32xf32>
    %610 = arith.negf %609 : vector<4x32xf32>
    %611 = math.exp %610 : vector<4x32xf32>
    %cst_219 = arith.constant 1.000000e+00 : f32
    %612 = vector.broadcast %cst_219 : f32 to vector<4x32xf32>
    %613 = arith.addf %612, %611 : vector<4x32xf32>
    %614 = arith.divf %612, %613 : vector<4x32xf32>
    %615 = vector.extract_strided_slice %593 {offsets = [0, 64], sizes = [4, 32], strides = [1, 1]} : vector<4x96xf32> to vector<4x32xf32>
    %616 = vector.extract_strided_slice %598 {offsets = [0, 64], sizes = [4, 32], strides = [1, 1]} : vector<4x96xf32> to vector<4x32xf32>
    %617 = arith.mulf %606, %616 : vector<4x32xf32>
    %618 = arith.addf %615, %617 : vector<4x32xf32>
    %619 = math.tanh %618 : vector<4x32xf32>
    %cst_220 = arith.constant 1.000000e+00 : f32
    %620 = vector.broadcast %cst_220 : f32 to vector<4x32xf32>
    %621 = arith.subf %620, %614 : vector<4x32xf32>
    %622 = arith.mulf %621, %619 : vector<4x32xf32>
    %623 = arith.mulf %614, %543 : vector<4x32xf32>
    %624 = arith.addf %622, %623 : vector<4x32xf32>
    %625 = vector.extract_strided_slice %357 {offsets = [8, 0], sizes = [1, 32], strides = [1, 1]} : vector<11x32xf32> to vector<1x32xf32>
    %626 = vector.extract_strided_slice %357 {offsets = [9, 0], sizes = [1, 32], strides = [1, 1]} : vector<11x32xf32> to vector<1x32xf32>
    %cst_221 = arith.constant dense<0.000000e+00> : vector<4xf32>
    %627 = vector.multi_reduction <add>, %624, %cst_221 [1] : vector<4x32xf32> to vector<4xf32>
    %628 = vector.shape_cast %627 : vector<4xf32> to vector<4x1xf32>
    %cst_222 = arith.constant 3.200000e+01 : f32
    %629 = vector.broadcast %cst_222 : f32 to vector<4x1xf32>
    %630 = arith.divf %628, %629 : vector<4x1xf32>
    %631 = vector.broadcast %630 : vector<4x1xf32> to vector<4x32xf32>
    %632 = arith.subf %624, %631 : vector<4x32xf32>
    %633 = arith.mulf %632, %632 : vector<4x32xf32>
    %cst_223 = arith.constant dense<0.000000e+00> : vector<4xf32>
    %634 = vector.multi_reduction <add>, %633, %cst_223 [1] : vector<4x32xf32> to vector<4xf32>
    %635 = vector.shape_cast %634 : vector<4xf32> to vector<4x1xf32>
    %cst_224 = arith.constant 3.200000e+01 : f32
    %636 = vector.broadcast %cst_224 : f32 to vector<4x1xf32>
    %637 = arith.divf %635, %636 : vector<4x1xf32>
    %638 = vector.broadcast %630 : vector<4x1xf32> to vector<4x32xf32>
    %639 = arith.subf %624, %638 : vector<4x32xf32>
    %cst_225 = arith.constant 9.99999974E-6 : f32
    %640 = vector.broadcast %cst_225 : f32 to vector<4x1xf32>
    %641 = arith.addf %637, %640 : vector<4x1xf32>
    %642 = math.rsqrt %641 : vector<4x1xf32>
    %643 = vector.broadcast %642 : vector<4x1xf32> to vector<4x32xf32>
    %644 = arith.mulf %639, %643 : vector<4x32xf32>
    %645 = vector.broadcast %625 : vector<1x32xf32> to vector<4x32xf32>
    %646 = arith.mulf %644, %645 : vector<4x32xf32>
    %647 = vector.broadcast %626 : vector<1x32xf32> to vector<4x32xf32>
    %648 = arith.addf %646, %647 : vector<4x32xf32>
    %c0_226 = arith.constant 0 : index
    %c0_227 = arith.constant 0 : index
    %649 = vector.load %arg18[%c0_226, %c0_227] : memref<32x64xf32, #tpu.memory_space<vmem>>, vector<32x64xf32>
    %c0_228 = arith.constant 0 : index
    %c0_229 = arith.constant 0 : index
    %650 = vector.load %arg19[%c0_228, %c0_229] : memref<1x64xf32, #tpu.memory_space<vmem>>, vector<1x64xf32>
    %cst_230 = arith.constant dense<0.000000e+00> : vector<4x64xf32>
    %651 = tpu.matmul %648, %649, %cst_230 {dimension_numbers = #tpu.dot_dimension_numbers<[1], [0], [0], [1], [0, 0, 1, 1], [], []>} : vector<4x32xf32>, vector<32x64xf32>, vector<4x64xf32> -> vector<4x64xf32>
    %652 = vector.broadcast %650 : vector<1x64xf32> to vector<4x64xf32>
    %653 = arith.addf %651, %652 : vector<4x64xf32>
    %cst_231 = arith.constant 0.000000e+00 : f32
    %654 = vector.broadcast %cst_231 : f32 to vector<4x64xf32>
    %655 = arith.maximumf %653, %654 : vector<4x64xf32>
    %c0_232 = arith.constant 0 : index
    %c0_233 = arith.constant 0 : index
    %656 = vector.load %arg20[%c0_232, %c0_233] : memref<64x32xf32, #tpu.memory_space<vmem>>, vector<64x32xf32>
    %cst_234 = arith.constant dense<0.000000e+00> : vector<4x32xf32>
    %657 = tpu.matmul %655, %656, %cst_234 {dimension_numbers = #tpu.dot_dimension_numbers<[1], [0], [0], [1], [0, 0, 1, 1], [], []>} : vector<4x64xf32>, vector<64x32xf32>, vector<4x32xf32> -> vector<4x32xf32>
    %658 = arith.addf %624, %657 : vector<4x32xf32>
    %659 = vector.extract_strided_slice %357 {offsets = [10, 0], sizes = [1, 32], strides = [1, 1]} : vector<11x32xf32> to vector<1x32xf32>
    %660 = vector.broadcast %659 : vector<1x32xf32> to vector<4x32xf32>
    %661 = arith.addf %658, %660 : vector<4x32xf32>
    %c0_235 = arith.constant 0 : index
    %c0_236 = arith.constant 0 : index
    %662 = vector.load %arg27[%c0_235, %c0_236] : memref<3x64xf32, #tpu.memory_space<vmem>>, vector<3x64xf32>
    %c0_237 = arith.constant 0 : index
    %c0_238 = arith.constant 0 : index
    %663 = vector.load %arg23[%c0_237, %c0_238] : memref<16x32xf32, #tpu.memory_space<vmem>>, vector<16x32xf32>
    %664 = vector.extract_strided_slice %661 {offsets = [0, 0], sizes = [1, 32], strides = [1, 1]} : vector<4x32xf32> to vector<1x32xf32>
    %665 = vector.broadcast %664 : vector<1x32xf32> to vector<16x32xf32>
    %666 = arith.addf %665, %663 : vector<16x32xf32>
    %667 = vector.extract_strided_slice %661 {offsets = [1, 0], sizes = [1, 32], strides = [1, 1]} : vector<4x32xf32> to vector<1x32xf32>
    %668 = vector.broadcast %667 : vector<1x32xf32> to vector<16x32xf32>
    %669 = arith.addf %668, %663 : vector<16x32xf32>
    %670 = vector.extract_strided_slice %661 {offsets = [2, 0], sizes = [1, 32], strides = [1, 1]} : vector<4x32xf32> to vector<1x32xf32>
    %671 = vector.broadcast %670 : vector<1x32xf32> to vector<16x32xf32>
    %672 = arith.addf %671, %663 : vector<16x32xf32>
    %673 = vector.extract_strided_slice %661 {offsets = [3, 0], sizes = [1, 32], strides = [1, 1]} : vector<4x32xf32> to vector<1x32xf32>
    %674 = vector.broadcast %673 : vector<1x32xf32> to vector<16x32xf32>
    %675 = arith.addf %674, %663 : vector<16x32xf32>
    %676 = tpu.concatenate %666, %669, %672, %675 in 0 : vector<16x32xf32>, vector<16x32xf32>, vector<16x32xf32>, vector<16x32xf32> -> vector<64x32xf32>
    %c0_239 = arith.constant 0 : index
    %c0_240 = arith.constant 0 : index
    %677 = vector.load %arg24[%c0_239, %c0_240] : memref<32x64xbf16, #tpu.memory_space<vmem>>, vector<32x64xbf16>
    %678 = arith.truncf %676 : vector<64x32xf32> to vector<64x32xbf16>
    %cst_241 = arith.constant dense<0.000000e+00> : vector<64x64xf32>
    %679 = tpu.matmul %678, %677, %cst_241 {dimension_numbers = #tpu.dot_dimension_numbers<[1], [0], [0], [1], [0, 0, 1, 1], [], []>} : vector<64x32xbf16>, vector<32x64xbf16>, vector<64x64xf32> -> vector<64x64xf32>
    %680 = vector.extract_strided_slice %662 {offsets = [0, 0], sizes = [1, 64], strides = [1, 1]} : vector<3x64xf32> to vector<1x64xf32>
    %681 = vector.broadcast %680 : vector<1x64xf32> to vector<64x64xf32>
    %682 = arith.addf %679, %681 : vector<64x64xf32>
    %cst_242 = arith.constant 0.000000e+00 : f32
    %683 = vector.broadcast %cst_242 : f32 to vector<64x64xf32>
    %684 = arith.maximumf %682, %683 : vector<64x64xf32>
    %c0_243 = arith.constant 0 : index
    %c0_244 = arith.constant 0 : index
    %685 = vector.load %arg25[%c0_243, %c0_244] : memref<64x64xbf16, #tpu.memory_space<vmem>>, vector<64x64xbf16>
    %686 = arith.truncf %684 : vector<64x64xf32> to vector<64x64xbf16>
    %cst_245 = arith.constant dense<0.000000e+00> : vector<64x64xf32>
    %687 = tpu.matmul %686, %685, %cst_245 {dimension_numbers = #tpu.dot_dimension_numbers<[1], [0], [0], [1], [0, 0, 1, 1], [], []>} : vector<64x64xbf16>, vector<64x64xbf16>, vector<64x64xf32> -> vector<64x64xf32>
    %688 = vector.extract_strided_slice %662 {offsets = [1, 0], sizes = [1, 64], strides = [1, 1]} : vector<3x64xf32> to vector<1x64xf32>
    %689 = vector.broadcast %688 : vector<1x64xf32> to vector<64x64xf32>
    %690 = arith.addf %687, %689 : vector<64x64xf32>
    %cst_246 = arith.constant 0.000000e+00 : f32
    %691 = vector.broadcast %cst_246 : f32 to vector<64x64xf32>
    %692 = arith.maximumf %690, %691 : vector<64x64xf32>
    %c0_247 = arith.constant 0 : index
    %c0_248 = arith.constant 0 : index
    %693 = vector.load %arg26[%c0_247, %c0_248] : memref<64x64xbf16, #tpu.memory_space<vmem>>, vector<64x64xbf16>
    %694 = arith.truncf %692 : vector<64x64xf32> to vector<64x64xbf16>
    %cst_249 = arith.constant dense<0.000000e+00> : vector<64x64xf32>
    %695 = tpu.matmul %694, %693, %cst_249 {dimension_numbers = #tpu.dot_dimension_numbers<[1], [0], [0], [1], [0, 0, 1, 1], [], []>} : vector<64x64xbf16>, vector<64x64xbf16>, vector<64x64xf32> -> vector<64x64xf32>
    %696 = vector.extract_strided_slice %662 {offsets = [2, 0], sizes = [1, 64], strides = [1, 1]} : vector<3x64xf32> to vector<1x64xf32>
    %697 = vector.broadcast %696 : vector<1x64xf32> to vector<64x64xf32>
    %698 = arith.addf %695, %697 : vector<64x64xf32>
    %699 = vector.extract_strided_slice %698 {offsets = [0, 0], sizes = [16, 32], strides = [1, 1]} : vector<64x64xf32> to vector<16x32xf32>
    %700 = vector.extract_strided_slice %698 {offsets = [16, 0], sizes = [16, 32], strides = [1, 1]} : vector<64x64xf32> to vector<16x32xf32>
    %701 = vector.extract_strided_slice %698 {offsets = [32, 0], sizes = [16, 32], strides = [1, 1]} : vector<64x64xf32> to vector<16x32xf32>
    %702 = vector.extract_strided_slice %698 {offsets = [48, 0], sizes = [16, 32], strides = [1, 1]} : vector<64x64xf32> to vector<16x32xf32>
    %703 = vector.extract_strided_slice %698 {offsets = [0, 32], sizes = [16, 1], strides = [1, 1]} : vector<64x64xf32> to vector<16x1xf32>
    %704 = vector.extract_strided_slice %698 {offsets = [16, 32], sizes = [16, 1], strides = [1, 1]} : vector<64x64xf32> to vector<16x1xf32>
    %705 = vector.extract_strided_slice %698 {offsets = [32, 32], sizes = [16, 1], strides = [1, 1]} : vector<64x64xf32> to vector<16x1xf32>
    %706 = vector.extract_strided_slice %698 {offsets = [48, 32], sizes = [16, 1], strides = [1, 1]} : vector<64x64xf32> to vector<16x1xf32>
    %707 = arith.maximumf %703, %704 : vector<16x1xf32>
    %708 = arith.maximumf %707, %705 : vector<16x1xf32>
    %709 = arith.maximumf %708, %706 : vector<16x1xf32>
    %710 = arith.subf %703, %709 : vector<16x1xf32>
    %711 = math.exp %710 : vector<16x1xf32>
    %712 = arith.subf %704, %709 : vector<16x1xf32>
    %713 = math.exp %712 : vector<16x1xf32>
    %714 = arith.subf %705, %709 : vector<16x1xf32>
    %715 = math.exp %714 : vector<16x1xf32>
    %716 = arith.subf %706, %709 : vector<16x1xf32>
    %717 = math.exp %716 : vector<16x1xf32>
    %718 = arith.addf %711, %713 : vector<16x1xf32>
    %719 = arith.addf %718, %715 : vector<16x1xf32>
    %720 = arith.addf %719, %717 : vector<16x1xf32>
    %721 = arith.divf %711, %720 : vector<16x1xf32>
    %722 = arith.divf %713, %720 : vector<16x1xf32>
    %723 = arith.divf %715, %720 : vector<16x1xf32>
    %724 = arith.divf %717, %720 : vector<16x1xf32>
    %cst_250 = arith.constant 0.000000e+00 : f32
    %725 = vector.broadcast %cst_250 : f32 to vector<16x32xf32>
    %726 = vector.broadcast %721 : vector<16x1xf32> to vector<16x32xf32>
    %727 = arith.mulf %699, %726 : vector<16x32xf32>
    %728 = arith.addf %725, %727 : vector<16x32xf32>
    %729 = vector.broadcast %722 : vector<16x1xf32> to vector<16x32xf32>
    %730 = arith.mulf %700, %729 : vector<16x32xf32>
    %731 = arith.addf %728, %730 : vector<16x32xf32>
    %732 = vector.broadcast %723 : vector<16x1xf32> to vector<16x32xf32>
    %733 = arith.mulf %701, %732 : vector<16x32xf32>
    %734 = arith.addf %731, %733 : vector<16x32xf32>
    %735 = vector.broadcast %724 : vector<16x1xf32> to vector<16x32xf32>
    %736 = arith.mulf %702, %735 : vector<16x32xf32>
    %737 = arith.addf %734, %736 : vector<16x32xf32>
    %738 = tpu.concatenate %721, %722, %723, %724 in 1 : vector<16x1xf32>, vector<16x1xf32>, vector<16x1xf32>, vector<16x1xf32> -> vector<16x4xf32>
    %739 = tpu.transpose %738, [1, 0] : vector<16x4xf32> -> vector<4x16xf32>
    %740 = arith.subf %353, %737 : vector<16x32xf32>
    %741 = arith.mulf %740, %740 : vector<16x32xf32>
    %742 = vector.shape_cast %741 : vector<16x32xf32> to vector<1x16x32xf32>
    %cst_251 = arith.constant dense<0.000000e+00> : vector<1xf32>
    %743 = vector.multi_reduction <add>, %742, %cst_251 [1, 2] : vector<1x16x32xf32> to vector<1xf32>
    %744 = vector.shape_cast %743 : vector<1xf32> to vector<1x1x1xf32>
    %745 = vector.extract %744[0, 0, 0] : f32 from vector<1x1x1xf32>
    %746 = vector.broadcast %745 : f32 to vector<1x1xf32>
    %cst_252 = arith.constant 1.000000e+00 : f32
    %747 = vector.broadcast %cst_252 : f32 to vector<4x16xf32>
    %748 = vector.broadcast %746 : vector<1x1xf32> to vector<4x16xf32>
    %749 = arith.mulf %748, %747 : vector<4x16xf32>
    %c0_253 = arith.constant 0 : index
    %c0_254 = arith.constant 0 : index
    %c0_255 = arith.constant 0 : index
    %750 = vector.load %arg28[%c0_253, %c0_254, %c0_255] : memref<1x28x32xf32, #tpu.memory_space<vmem>>, vector<1x16x32xf32>
    %751 = vector.shape_cast %750 : vector<1x16x32xf32> to vector<16x32xf32>
    %752 = vector.shape_cast %737 : vector<16x32xf32> to vector<1x16x32xf32>
    tpu.vector_store %arg28[%c0_253, %c0_254, %c0_255], %752 {strides = array<i32>} : memref<1x28x32xf32, #tpu.memory_space<vmem>>, vector<1x16x32xf32>,
    %c0_256 = arith.constant 0 : index
    %c16 = arith.constant 16 : index
    %c0_257 = arith.constant 0 : index
    %753 = vector.load %arg28[%c0_256, %c16, %c0_257] : memref<1x28x32xf32, #tpu.memory_space<vmem>>, vector<1x4x32xf32>
    %754 = vector.shape_cast %753 : vector<1x4x32xf32> to vector<4x32xf32>
    %755 = vector.shape_cast %661 : vector<4x32xf32> to vector<1x4x32xf32>
    tpu.vector_store %arg28[%c0_256, %c16, %c0_257], %755 {strides = array<i32>} : memref<1x28x32xf32, #tpu.memory_space<vmem>>, vector<1x4x32xf32>,
    %756 = tpu.concatenate %581, %572 in 1 : vector<4x16xf32>, vector<4x16xf32> -> vector<4x32xf32>
    %c0_258 = arith.constant 0 : index
    %c20 = arith.constant 20 : index
    %c0_259 = arith.constant 0 : index
    %757 = vector.load %arg28[%c0_258, %c20, %c0_259] : memref<1x28x32xf32, #tpu.memory_space<vmem>>, vector<1x4x32xf32>
    %758 = vector.shape_cast %757 : vector<1x4x32xf32> to vector<4x32xf32>
    %759 = vector.shape_cast %756 : vector<4x32xf32> to vector<1x4x32xf32>
    tpu.vector_store %arg28[%c0_258, %c20, %c0_259], %759 {strides = array<i32>} : memref<1x28x32xf32, #tpu.memory_space<vmem>>, vector<1x4x32xf32>,
    %760 = tpu.concatenate %739, %749 in 1 : vector<4x16xf32>, vector<4x16xf32> -> vector<4x32xf32>
    %c0_260 = arith.constant 0 : index
    %c24 = arith.constant 24 : index
    %c0_261 = arith.constant 0 : index
    %761 = vector.load %arg28[%c0_260, %c24, %c0_261] : memref<1x28x32xf32, #tpu.memory_space<vmem>>, vector<1x4x32xf32>
    %762 = vector.shape_cast %761 : vector<1x4x32xf32> to vector<4x32xf32>
    %763 = vector.shape_cast %760 : vector<4x32xf32> to vector<1x4x32xf32>
    tpu.vector_store %arg28[%c0_260, %c24, %c0_261], %763 {strides = array<i32>} : memref<1x28x32xf32, #tpu.memory_space<vmem>>, vector<1x4x32xf32>,
    return
  }
  func.func @transform_0(%arg0: i32) -> (i32, i32, i32) {
    %c0_i32 = arith.constant 0 : i32
    %c0_i32_0 = arith.constant 0 : i32
    %c0_i32_1 = arith.constant 0 : i32
    return %arg0, %c0_i32, %c0_i32_0 : i32, i32, i32
  }
  func.func @transform_1(%arg0: i32) -> (i32, i32) {
    %c0_i32 = arith.constant 0 : i32
    %c0_i32_0 = arith.constant 0 : i32
    %c0_i32_1 = arith.constant 0 : i32
    return %c0_i32, %c0_i32_0 : i32, i32
  }
  func.func @transform_2(%arg0: i32) -> (i32, i32) {
    %c0_i32 = arith.constant 0 : i32
    %c0_i32_0 = arith.constant 0 : i32
    %c0_i32_1 = arith.constant 0 : i32
    return %c0_i32, %c0_i32_0 : i32, i32
  }
  func.func @transform_3(%arg0: i32) -> (i32, i32, i32) {
    %c0_i32 = arith.constant 0 : i32
    %c0_i32_0 = arith.constant 0 : i32
    %c0_i32_1 = arith.constant 0 : i32
    %c0_i32_2 = arith.constant 0 : i32
    return %c0_i32, %c0_i32_0, %c0_i32_1 : i32, i32, i32
  }
  func.func @transform_4(%arg0: i32) -> (i32, i32, i32) {
    %c0_i32 = arith.constant 0 : i32
    %c0_i32_0 = arith.constant 0 : i32
    %c0_i32_1 = arith.constant 0 : i32
    %c0_i32_2 = arith.constant 0 : i32
    return %c0_i32, %c0_i32_0, %c0_i32_1 : i32, i32, i32
  }
  func.func @transform_5(%arg0: i32) -> (i32, i32, i32) {
    %c0_i32 = arith.constant 0 : i32
    %c0_i32_0 = arith.constant 0 : i32
    %c0_i32_1 = arith.constant 0 : i32
    %c0_i32_2 = arith.constant 0 : i32
    return %c0_i32, %c0_i32_0, %c0_i32_1 : i32, i32, i32
  }
  func.func @transform_6(%arg0: i32) -> (i32, i32, i32) {
    %c0_i32 = arith.constant 0 : i32
    %c0_i32_0 = arith.constant 0 : i32
    %c0_i32_1 = arith.constant 0 : i32
    %c0_i32_2 = arith.constant 0 : i32
    return %c0_i32, %c0_i32_0, %c0_i32_1 : i32, i32, i32
  }
  func.func @transform_7(%arg0: i32) -> (i32, i32, i32) {
    %c0_i32 = arith.constant 0 : i32
    %c0_i32_0 = arith.constant 0 : i32
    %c0_i32_1 = arith.constant 0 : i32
    %c0_i32_2 = arith.constant 0 : i32
    return %c0_i32, %c0_i32_0, %c0_i32_1 : i32, i32, i32
  }
  func.func @transform_8(%arg0: i32) -> (i32, i32, i32) {
    %c0_i32 = arith.constant 0 : i32
    %c0_i32_0 = arith.constant 0 : i32
    %c0_i32_1 = arith.constant 0 : i32
    %c0_i32_2 = arith.constant 0 : i32
    return %c0_i32, %c0_i32_0, %c0_i32_1 : i32, i32, i32
  }
  func.func @transform_9(%arg0: i32) -> (i32, i32, i32) {
    %c0_i32 = arith.constant 0 : i32
    %c0_i32_0 = arith.constant 0 : i32
    %c0_i32_1 = arith.constant 0 : i32
    %c0_i32_2 = arith.constant 0 : i32
    return %c0_i32, %c0_i32_0, %c0_i32_1 : i32, i32, i32
  }
  func.func @transform_10(%arg0: i32) -> (i32, i32) {
    %c0_i32 = arith.constant 0 : i32
    %c0_i32_0 = arith.constant 0 : i32
    %c0_i32_1 = arith.constant 0 : i32
    return %c0_i32, %c0_i32_0 : i32, i32
  }
  func.func @transform_11(%arg0: i32) -> (i32, i32, i32) {
    %c0_i32 = arith.constant 0 : i32
    %c0_i32_0 = arith.constant 0 : i32
    %c0_i32_1 = arith.constant 0 : i32
    %c0_i32_2 = arith.constant 0 : i32
    return %c0_i32, %c0_i32_0, %c0_i32_1 : i32, i32, i32
  }
  func.func @transform_12(%arg0: i32) -> (i32, i32) {
    %c0_i32 = arith.constant 0 : i32
    %c0_i32_0 = arith.constant 0 : i32
    %c0_i32_1 = arith.constant 0 : i32
    return %c0_i32, %c0_i32_0 : i32, i32
  }
  func.func @transform_13(%arg0: i32) -> (i32, i32) {
    %c0_i32 = arith.constant 0 : i32
    %c0_i32_0 = arith.constant 0 : i32
    %c0_i32_1 = arith.constant 0 : i32
    return %c0_i32, %c0_i32_0 : i32, i32
  }
  func.func @transform_14(%arg0: i32) -> (i32, i32) {
    %c0_i32 = arith.constant 0 : i32
    %c0_i32_0 = arith.constant 0 : i32
    %c0_i32_1 = arith.constant 0 : i32
    return %c0_i32, %c0_i32_0 : i32, i32
  }
  func.func @transform_15(%arg0: i32) -> (i32, i32) {
    %c0_i32 = arith.constant 0 : i32
    %c0_i32_0 = arith.constant 0 : i32
    %c0_i32_1 = arith.constant 0 : i32
    return %c0_i32, %c0_i32_0 : i32, i32
  }
  func.func @transform_16(%arg0: i32) -> (i32, i32) {
    %c0_i32 = arith.constant 0 : i32
    %c0_i32_0 = arith.constant 0 : i32
    %c0_i32_1 = arith.constant 0 : i32
    return %c0_i32, %c0_i32_0 : i32, i32
  }
  func.func @transform_17(%arg0: i32) -> (i32, i32) {
    %c0_i32 = arith.constant 0 : i32
    %c0_i32_0 = arith.constant 0 : i32
    %c0_i32_1 = arith.constant 0 : i32
    return %c0_i32, %c0_i32_0 : i32, i32
  }
  func.func @transform_18(%arg0: i32) -> (i32, i32) {
    %c0_i32 = arith.constant 0 : i32
    %c0_i32_0 = arith.constant 0 : i32
    %c0_i32_1 = arith.constant 0 : i32
    return %c0_i32, %c0_i32_0 : i32, i32
  }
  func.func @transform_19(%arg0: i32) -> (i32, i32) {
    %c0_i32 = arith.constant 0 : i32
    %c0_i32_0 = arith.constant 0 : i32
    %c0_i32_1 = arith.constant 0 : i32
    return %c0_i32, %c0_i32_0 : i32, i32
  }
  func.func @transform_20(%arg0: i32) -> (i32, i32) {
    %c0_i32 = arith.constant 0 : i32
    %c0_i32_0 = arith.constant 0 : i32
    %c0_i32_1 = arith.constant 0 : i32
    return %c0_i32, %c0_i32_0 : i32, i32
  }
  func.func @transform_21(%arg0: i32) -> (i32, i32) {
    %c0_i32 = arith.constant 0 : i32
    %c0_i32_0 = arith.constant 0 : i32
    %c0_i32_1 = arith.constant 0 : i32
    return %c0_i32, %c0_i32_0 : i32, i32
  }
  func.func @transform_22(%arg0: i32) -> (i32, i32) {
    %c0_i32 = arith.constant 0 : i32
    %c0_i32_0 = arith.constant 0 : i32
    %c0_i32_1 = arith.constant 0 : i32
    return %c0_i32, %c0_i32_0 : i32, i32
  }
  func.func @transform_23(%arg0: i32) -> (i32, i32) {
    %c0_i32 = arith.constant 0 : i32
    %c0_i32_0 = arith.constant 0 : i32
    %c0_i32_1 = arith.constant 0 : i32
    return %c0_i32, %c0_i32_0 : i32, i32
  }
  func.func @transform_24(%arg0: i32) -> (i32, i32) {
    %c0_i32 = arith.constant 0 : i32
    %c0_i32_0 = arith.constant 0 : i32
    %c0_i32_1 = arith.constant 0 : i32
    return %c0_i32, %c0_i32_0 : i32, i32
  }
  func.func @transform_25(%arg0: i32) -> (i32, i32) {
    %c0_i32 = arith.constant 0 : i32
    %c0_i32_0 = arith.constant 0 : i32
    %c0_i32_1 = arith.constant 0 : i32
    return %c0_i32, %c0_i32_0 : i32, i32
  }
  func.func @transform_26(%arg0: i32) -> (i32, i32) {
    %c0_i32 = arith.constant 0 : i32
    %c0_i32_0 = arith.constant 0 : i32
    %c0_i32_1 = arith.constant 0 : i32
    return %c0_i32, %c0_i32_0 : i32, i32
  }
  func.func @transform_27(%arg0: i32) -> (i32, i32, i32) {
    %c0_i32 = arith.constant 0 : i32
    %c0_i32_0 = arith.constant 0 : i32
    %c0_i32_1 = arith.constant 0 : i32
    return %arg0, %c0_i32, %c0_i32_0 : i32, i32, i32
  }
}

</mosaic_0001>

<bundles_post_ra>
// kernel: _lambda_.1
= control target key start
LH: loop header
LB: loop body
LE: loop exit
PB: predicated region body
PF: predicated region fallthrough
CT: control target
= control target key end

     0   :  { %s9513_s0 = inlined_call_operand.vmem [shape: f32[2,17,48], index: 0, kind: input, shape index: {}]   ;;  %s9514_s1 = inlined_call_operand.vmem [shape: bf16[48,32], index: 1, kind: input, shape index: {}]   ;;  %s9515_s2 = inlined_call_operand.vmem [shape: f32[17,32], index: 2, kind: input, shape index: {}]   ;;  %s9516_s3 = inlined_call_operand.vmem [shape: bf16[2,32,96], index: 3, kind: input, shape index: {}]   ;;  %s9517_s4 = inlined_call_operand.vmem [shape: f32[2,1,96], index: 4, kind: input, shape index: {}]   ;;  %s9518_s5 = inlined_call_operand.vmem [shape: bf16[2,32,32], index: 5, kind: input, shape index: {}]   ;;  %s9519_s6 = inlined_call_operand.vmem [shape: bf16[2,32,128], index: 6, kind: input, shape index: {}]   ;;  %s9520_s7 = inlined_call_operand.vmem [shape: f32[2,1,128], index: 7, kind: input, shape index: {}]   ;;  %s9521_s8 = inlined_call_operand.vmem [shape: bf16[2,128,32], index: 8, kind: input, shape index: {}]   ;;  %s9522_s9 = inlined_call_operand.vmem [shape: f32[2,6,32], index: 9, kind: input, shape index: {}]   ;;  %s9523_s10 = inlined_call_operand.vmem [shape: f32[2,32], index: 10, kind: input, shape index: {}]   ;;  %s9524_s11 = inlined_call_operand.vmem [shape: f32[2,32,32], index: 11, kind: input, shape index: {}]   ;;  %s9525_s12 = inlined_call_operand.vmem [shape: f32[32,64], index: 12, kind: input, shape index: {}]   ;;  %s9526_s13 = inlined_call_operand.vmem [shape: f32[32,32], index: 13, kind: input, shape index: {}]   ;;  %s9527_s14 = inlined_call_operand.vmem [shape: f32[32,96], index: 14, kind: input, shape index: {}]   ;;  %s9528_s15 = inlined_call_operand.vmem [shape: f32[32,96], index: 15, kind: input, shape index: {}]   ;;  %s9529_s16 = inlined_call_operand.vmem [shape: f32[2,96], index: 16, kind: input, shape index: {}]   ;;  %s9530_s17 = inlined_call_operand.vmem [shape: f32[32,64], index: 17, kind: input, shape index: {}]   ;;  %s9531_s18 = inlined_call_operand.vmem [shape: f32[1,64], index: 18, kind: input, shape index: {}]   ;;  %s9532_s19 = inlined_call_operand.vmem [shape: f32[64,32], index: 19, kind: input, shape index: {}]   ;;  %s9533_s20 = inlined_call_operand.vmem [shape: f32[11,32], index: 20, kind: input, shape index: {}]   ;;  %s9534_s21 = inlined_call_operand.vmem [shape: f32[4,32], index: 21, kind: input, shape index: {}]   ;;  %s9535_s22 = inlined_call_operand.vmem [shape: f32[16,32], index: 22, kind: input, shape index: {}]   ;;  %s9536_s23 = inlined_call_operand.vmem [shape: bf16[32,64], index: 23, kind: input, shape index: {}]   ;;  %s9537_s24 = inlined_call_operand.vmem [shape: bf16[64,64], index: 24, kind: input, shape index: {}]   ;;  %s9538_s25 = inlined_call_operand.vmem [shape: bf16[64,64], index: 25, kind: input, shape index: {}]   ;;  %s9539_s26 = inlined_call_operand.vmem [shape: f32[3,64], index: 26, kind: input, shape index: {}]   ;;  %s9540_s27 = inlined_call_operand.vmem [shape: f32[2,28,32], index: 27, kind: output, shape index: {}]  }
   0x1   :  { %9588 = sst [smem:[#allocation3_spill]] %s9513_s0 }
   0x2   :  { %9589 = sst [smem:[#allocation4_spill]] %s9514_s1 }
   0x3   :  { %9590 = sst [smem:[#allocation5_spill]] %s9515_s2 }
   0x4   :  { %9591 = sst [smem:[#allocation6_spill]] %s9516_s3 }
   0x5   :  { %9592 = sst [smem:[#allocation7_spill]] %s9517_s4 }
   0x6   :  { %9593 = sst [smem:[#allocation8_spill]] %s9518_s5 }
   0x7   :  { %9594 = sst [smem:[#allocation9_spill]] %s9519_s6 }
   0x8   :  { %9595 = sst [smem:[#allocation10_spill]] %s9520_s7  ;;  %s8119_s7 = smov 0  }
   0x9   :  { %9596 = sst [smem:[#allocation11_spill]] %s9521_s8 }
   0xa   :  { %9597 = sst [smem:[#allocation12_spill]] %s9522_s9 }
   0xb   :  { %9598 = sst [smem:[#allocation13_spill]] %s9523_s10 }
   0xc   :  { %9599 = sst [smem:[#allocation14_spill]] %s9524_s11 }
   0xd LB: > { %9600 = sst [smem:[#allocation2_spill]] %s7955_s7  ;;  %s6342_s4 = sadd.s32 4294967295, %s7955_s7   ;;  %s7955_s7 = sphi %s8119_s7, %s37_s7  }
   0xe   : > { %p6346_p0 = scmp.ge.s32.totalorder %s7955_s7, 1  ;;  %p737_p1 = scmp.lt.s32.totalorder %s7955_s7, 3 }
  0x10   : > { %p738_p2 = pnand %p6346_p0, %p737_p1 }
  0x11   : > { %s9601_s9 = sld [smem:[#allocation4_spill]] (!%p738_p2)  ;;  %p809_p3 = scmp.lt.s32.totalorder (!%p738_p2), %s6342_s4, 1  ;;  %vm852_vm0 = vcmask (!%p738_p2), 392192   ;;  %vm915_vm1 = vcmask (!%p738_p2), 253952   ;;  %vm908_vm2 = vcmask (!%p738_p2), 261120   ;;  %v950_v45 = vlaneseq (!%p738_p2) }
  0x12   : > { %741 = sbr.rel (%p738_p2) target bundleno = 14408 (0x3848), region = 128  ;;  %s9602_s11 = sld [smem:[#allocation3_spill]] (!%p738_p2)  ;;  %vm7959_vm3 = vmmov (!%p738_p2), 0   ;;  %vm1052_vm4 = vcmask (!%p738_p2), 64512   ;;  %vm1148_vm6 = vcmask (!%p738_p2), 138240   ;;  %vm1155_vm7 = vcmask (!%p738_p2), 131072   ;;  %vm9085_vm14 = vmpackc.low (!%p738_p2), %vm908_vm2, %vm908_vm2 }
  0x13   : > { %s9603_s30 = sld [smem:[#allocation5_spill]] (!%p738_p2)  ;;  %s9604_s6 = sld [smem:[#allocation6_spill]] (!%p738_p2)  ;;  %v8175_v48 = vshrl.u32 (!%p738_p2), %v950_v45, 7  ;;  %vm8219_vm5 = vmpackc.low (!%p738_p2), %vm1052_vm4, %vm1052_vm4  ;;  %vm1200_vm8 = vcmask (!%p738_p2), 1040384   ;;  %vm2039_vm9 = vcmask (!%p738_p2), 130048   ;;  %vm2043_vm10 = vcmask (!%p738_p2), 195584  }
  0x14   : > { %s9605_s5 = sld [smem:[#allocation12_spill]] (!%p738_p2)  ;;  %s9606_s10 = sld [smem:[#allocation7_spill]] (!%p738_p2)  ;;  %vm3977_vm11 = vcmask (!%p738_p2), 261121   ;;  %vm4042_vm12 = vcmask (!%p738_p2), 1046528   ;;  %vm4344_vm13 = vcmask (!%p738_p2), 257024   ;;  %vm4525_vm15 = vcmask (!%p738_p2), 125952  }
  0x15   : > { %v8178_v49 = vsub.s32 (!%p738_p2), 0, %v8175_v48  ;;  %v8188_v54 = vsub.s32 (!%p738_p2), 1, %v8175_v48  ;;  %s9551_s1 = smov (!%p738_p2), 64   ;;  %s9569_s3 = smov (!%p738_p2), 120  }
  0x16   : > { %s9563_s8 = smov (!%p738_p2), 112   ;;  %s9553_s28 = smov (!%p738_p2), 104  }
  0x17   : > { %v7706_v0 = vld [vmem:[%s9601_s9] sm:$0xff] (!%p738_p2)   ;;  %v7707_v1 = vld [vmem:[%s9601_s9 + $0x8] sm:$0xff] (!%p738_p2)   ;;  %v7708_v2 = vld [vmem:[%s9601_s9 + $0x10] sm:$0xff] (!%p738_p2)   ;;  %s9565_s0 = smov (!%p738_p2), 72   ;;  %s9613_s9 = smov (!%p738_p2), 96  }
  0x18   : > { %6821 = vmatprep.subr.bf16.mxu0 (!%p738_p2), %v7706_v0  ;;  %s9615_s7 = smov (!%p738_p2), 88  }
  0x19   : > { %s9633_s4 = smov (!%p809_p3, %s6342_s4), 1  ;;  %6822 = vmatpush3.bf16.msra.mxu0 %v7706_v0  ;;  %v833_v8 = vld [vmem:[%s9603_s30 + $0x10] sm:$0x1]  ;;  %v831_v9 = vld [vmem:[%s9603_s30] sm:$0xff]  ;;  %v832_v13 = vld [vmem:[%s9603_s30 + $0x8] sm:$0xff]  ;;  %s9616_s30 = smov 72  }
  0x1a   : > { %6823 = vmatprep.subr.bf16.mxu0 %v7707_v1  ;;  %s7556_s29 = smul.u32 24, %s9633_s4  ;;  %v7709_v36 = vld [vmem:[%s9604_s6] sm:$0xff]   ;;  %v7710_v37 = vld [vmem:[%s9604_s6 + $0x8] sm:$0xff]  }
  0x1b   : > { %6831 = vmatprep.subr.bf16.mxu1 %v7709_v36  ;;  %v8183_v50 = vld [vmem:[%s9605_s5] sm:$0x3f] }
  0x1c   : > { %s813_s2 = scalar_lea.vmem %s9602_s11, %s7556_s29  ;;  %6832 = vmatpush3.bf16.msra.mxu1 %v7709_v36  ;;  %v953_v53 = vrot.slane %v8183_v50, %v8178_v49  ;;  %v960_v60 = vrot.slane %v8183_v50, %v8188_v54  ;;  %s9577_s29 = smov 96  }
  0x1d   : > { %6824 = vmatpush3.bf16.msra.mxu0 %v7707_v1  ;;  %v820_v3 = vld [vmem:[%s813_s2] sm:$0xff]  ;;  %v821_v4 = vld [vmem:[%s813_s2 + $0x8] sm:$0xff]  ;;  %v822_v5 = vld [vmem:[%s813_s2 + $0x10] sm:$0x1]  ;;  %6833 = vmatprep.subr.bf16.mxu1 %v7710_v37  ;;  %s9567_s11 = smov 88   ;;  %s9561_s2 = smov 80  }
  0x1e   : > { %6825 = vmatprep.subr.bf16.mxu0 %v7708_v2  ;;  %v829_v6 = vpack.c.bf16 %v821_v4, %v820_v3  ;;  %v830_v7 = vpack.c.bf16 %v822_v5, %v822_v5  ;;  %v6355_v4 = vld [vmem:[%s9606_s10] ss:$0 sm:$0xff]  ;;  %v7957_v5 = vmov 0.0|0.0  }
  0x20   : > { %6827 = vmatprep.mubr.msk.bf16.mxu0 %vm852_vm0, %v829_v6  ;;  %6834 = vmatpush3.bf16.msra.mxu1 %v7710_v37 }
  0x21   : > { %6826 = vmatpush3.bf16.msra.mxu0 %v7708_v2  ;;  %7390 = vmatprep.subr.bf16.mxu1 %v7957_v5 }
  0x22   : > { %7394 = vmatprep.subr.bf16.mxu0 %v7957_v5 }
  0x24   : > { %6828 = vmatmul.mubr.msk.bf16.vlgmr.msra.gmra.mrb[0].mxu0 %vm852_vm0, %v830_v7  ;;  %vm4955_vm0 = vcmask 523264  }
  0xf7   : > { %v6829_v10 = vpop.f32.mrb[0].mxu0 }
  0xf8   : > { %v8148_v11 = vadd.f32 %v6829_v10, %v833_v8  ;;  %v893_v12 = vpop.f32.mrb[1].mxu0 }
  0xf9   : > { %v8153_v14 = vadd.f32 %v893_v12, %v831_v9  ;;  %v6830_v15 = vpop.f32.mrb[2].mxu0 }
  0xfa   : > { %v896_v16 = vpop.f32.mrb[3].mxu0  ;;  %v916_v17 = vsel %vm915_vm1, %v8148_v11, 0.0 }
  0xfb   : > { %v8157_v18 = vadd.f32 %v896_v16, %v832_v13  ;;  %917 = vadd.xlane.f32.xlu1 %v916_v17  ;;  %v909_v19 = vsel %vm908_vm2, %v8153_v14, 0.0  ;;  %v7960_v16 = vmov 0.0  }
  0xfc   : > { %910 = vadd.xlane.f32.xlu0 %v909_v19  ;;  %6860 = vmatprep.mubr.msk.f32.mxu0 %vm7959_vm3, %v7960_v16 }
  0xfd   : > { %v912_v20 = vsel %vm908_vm2, %v8157_v18, 0.0 }
 0x100   : > { %913 = vadd.xlane.f32.xlu0 %v912_v20 }
 0x188   : > { %v918_v21 = vpop.xlane.xlu1 %917 }
 0x189   : > { %v922_v22 = vmul.f32 0.03125, %v918_v21  ;;  %v911_v23 = vpop.xlane.xlu0 %910 }
 0x18a   : > { %v920_v24 = vmul.f32 0.03125, %v911_v23 }
 0x18b   : > { %v925_v25 = vsub.f32 %v8148_v11, %v922_v22 }
 0x18c   : > { %v923_v26 = vsub.f32 %v8153_v14, %v920_v24 }
 0x18d   : > { %v914_v27 = vpop.xlane.xlu0 %913  ;;  %v928_v32 = vmul.f32 %v925_v25, %v925_v25 }
 0x18e   : > { %v921_v28 = vmul.f32 0.03125, %v914_v27  ;;  %v926_v29 = vmul.f32 %v923_v26, %v923_v26 }
 0x18f   : > { %v935_v34 = vsel %vm915_vm1, %v928_v32, 0.0 }
 0x190   : > { %v924_v30 = vsub.f32 %v8157_v18, %v921_v28  ;;  %v929_v31 = vsel %vm908_vm2, %v926_v29, 0.0 }
 0x191   : > { %930 = vadd.xlane.f32.xlu1 %v929_v31 }
 0x192   : > { %v927_v33 = vmul.f32 %v924_v30, %v924_v30 }
 0x194   : > { %v932_v35 = vsel %vm908_vm2, %v927_v33, 0.0 }
 0x195   : > { %936 = vadd.xlane.f32.xlu1 %v935_v34  ;;  %933 = vadd.xlane.f32.xlu0 %v932_v35 }
 0x21e   : > { %v931_v38 = vpop.xlane.xlu1 %930 }
 0x21f   : > { %v938_v39 = vmul.f32 0.03125, %v931_v38 }
 0x221   : > { %v941_v40 = vadd.f32 1e-05, %v938_v39 }
 0x222   : > { %v937_v41 = vpop.xlane.xlu1 %936  ;;  %v934_v42 = vpop.xlane.xlu0 %933 }
 0x223   : > { %7747 = vrsqrt.f32 %v941_v40  ;;  %v940_v43 = vmul.f32 0.03125, %v937_v41  ;;  %v939_v44 = vmul.f32 0.03125, %v934_v42 }
 0x225   : > { %v943_v46 = vadd.f32 1e-05, %v940_v43  ;;  %v942_v47 = vadd.f32 1e-05, %v939_v44 }
 0x227   : > { %7749 = vrsqrt.f32 %v943_v46 }
 0x228   : > { %7751 = vrsqrt.f32 %v942_v47 }
 0x22d   : > { %v7748_v51 = vpop.eup %7747 }
 0x22e   : > { %v947_v52 = vmul.f32 %v7748_v51, %v923_v26 }
 0x230   : > { %v954_v59 = vmul.f32 %v953_v53, %v947_v52 }
 0x231   : > { %v7750_v55 = vpop.eup %7749 }
 0x232   : > { %v7752_v56 = vpop.eup %7751  ;;  %v949_v57 = vmul.f32 %v7750_v55, %v925_v25  ;;  %v961_v0 = vadd.f32 %v960_v60, %v954_v59 }
 0x233   : > { %v948_v58 = vmul.f32 %v7752_v56, %v924_v30 }
 0x234   : > { %v956_v61 = vmul.f32 %v953_v53, %v949_v57 }
 0x235   : > { %v955_v62 = vmul.f32 %v953_v53, %v948_v58 }
 0x236   : > { %v963_v63 = vadd.f32 %v960_v60, %v956_v61 }
 0x237   : > { %v962_v1 = vadd.f32 %v960_v60, %v955_v62 }
 0x238   : > { %v970_v2 = vpack.c.bf16 %v963_v63, %v963_v63 }
 0x239   : > { %v969_v3 = vpack.c.bf16 %v962_v1, %v961_v0 }
 0x23b   : > { %6835 = vmatprep.mubr.msk.bf16.mxu1 %vm908_vm2, %v969_v3 }
 0x23c   : > { %6836 = vmatmul.mubr.msk.bf16.vlgmr.msra.gmra.mrb[0].mxu1 %vm908_vm2, %v970_v2 }
 0x23d   : > { %6845 = vmatprep.mubr.msk.f32.mxu1 %vm7959_vm3, %v7960_v16 }
 0x30f   : > { %v6837_v6 = vpop.f32.mrb[0].mxu1 }
 0x310   : > { %v8199_v7 = vadd.f32 %v6837_v6, %v6355_v4  ;;  %v1029_v8 = vpop.f32.mrb[1].mxu1 }
 0x311   : > { %v6838_v9 = vpop.f32.mrb[2].mxu1  ;;  %v8203_v12 = vadd.f32 %v6355_v4, %v1029_v8 }
 0x312   : > { %1050 = vrot.lane.b32.xlu1 %v8199_v7, %s9577_s29  ;;  %v1032_v10 = vpop.f32.mrb[3].mxu1 }
 0x313   : > { %v8205_v13 = vadd.f32 %v6355_v4, %v1032_v10 }
 0x315   : > { %v8209_v15 = vpack.i.bf16 %v8205_v13, %v8203_v12 }
 0x317   : > { %7590 = vrot.lane.b32.xlu0 %v8209_v15, %s9577_s29  ;;  %s9614_s29 = smov 120  }
 0x384   : > { %v1051_v23 = vpop.permute.xlu1 %1050 }
 0x389   : > { %v7591_v17 = vpop.permute.xlu0 %7590 }
 0x38a   : > { %v7593_v19 = vunpack.i.h.bf16 %v7591_v17  ;;  %v7592_v20 = vunpack.i.l.bf16 %v7591_v17 }
 0x38c   : > { %v7391_v22 = vpack.c.bf16 %v7593_v19, %v7592_v20 }
 0x38e   : > { %7393 = vmatpush3.bf16.xpose.msk.msra.mxu1 %vm8219_vm5, %v7391_v22 }
 0x38f   : > { %6843 = vmatprep.subr.mxu1 %v7960_v16 }
 0x396   : > { %6844 = vmatpush3.xpose.msk.msra.mxu1 %vm1052_vm4, %v1051_v23 }
 0x397   : > { %7401 = vmatprep.subr.bf16.mxu1 %v7957_v5 }
 0x399   : > { %6846 = vmatmul.mubr.msk.f32.vlgmr.msra.gmra.mrb[4].mxu1 %vm1052_vm4, %v8203_v12 }
 0x39a   : > { %6848 = vmatprep.mubr.msk.f32.mxu1 %vm7959_vm3, %v7960_v16 }
 0x39d   : > { %6849 = vmatmul.mubr.msk.f32.gmra.mrb[6].mxu1 %vm1052_vm4, %v8205_v13 }
 0x39e   : > { %6851 = vmatprep.mubr.msk.f32.mxu1 %vm7959_vm3, %v7960_v16 }
 0x3a1   : > { %6852 = vmatmul.mubr.msk.f32.gmra.mrb[8].mxu1 %vm1052_vm4, %v8199_v7 }
 0x3a2   : > { %6890 = vmatprep.mubr.msk.f32.mxu1 %vm7959_vm3, %v7960_v16 }
 0x46c   : > { %v1131_v24 = vpop.f32.mrb[4].mxu1 }
 0x46d   : > { %v1145_v25 = vmul.f32 0.35355338, %v1131_v24  ;;  %v6847_v26 = vpop.f32.mrb[5].mxu1 }
 0x46f   : > { %v1149_v27 = vsel %vm1148_vm6, %v1145_v25, -inf }
 0x470   : > { %1150 = vmax.xlane.f32.xlu1 %v1149_v27  ;;  %v1136_v28 = vpop.f32.mrb[6].mxu1 }
 0x471   : > { %v1146_v29 = vmul.f32 0.35355338, %v1136_v28  ;;  %v6850_v30 = vpop.f32.mrb[7].mxu1 }
 0x473   : > { %v1152_v31 = vsel %vm1148_vm6, %v1146_v29, -inf }
 0x474   : > { %1153 = vmax.xlane.f32.xlu0 %v1152_v31  ;;  %v1141_v32 = vpop.f32.mrb[8].mxu1 }
 0x475   : > { %v1147_v33 = vmul.f32 0.35355338, %v1141_v32  ;;  %v6853_v34 = vpop.f32.mrb[9].mxu1 }
 0x477   : > { %v1156_v35 = vsel %vm1155_vm7, %v1147_v33, -inf }
 0x478   : > { %1157 = vmax.xlane.f32.xlu0 %v1156_v35 }
 0x4fd   : > { %v1151_v36 = vpop.xlane.xlu1 %1150 }
 0x4fe   : > { %v1159_v37 = vsub.f32 %v1145_v25, %v1151_v36 }
 0x500   : > { %v1162_v38 = vmul.f32 1.442695, %v1159_v37 }
 0x501   : > { %v1154_v39 = vpop.xlane.xlu0 %1153 }
 0x502   : > { %7753 = vpow2.f32 %v1162_v38  ;;  %v1160_v40 = vsub.f32 %v1146_v29, %v1154_v39 }
 0x504   : > { %v1164_v41 = vmul.f32 1.442695, %v1160_v40 }
 0x505   : > { %v1158_v46 = vpop.xlane.xlu0 %1157 }
 0x506   : > { %7755 = vpow2.f32 %v1164_v41  ;;  %v1161_v47 = vsub.f32 %v1147_v33, %v1158_v46 }
 0x508   : > { %v1166_v51 = vmul.f32 1.442695, %v1161_v47 }
 0x50a   : > { %7757 = vpow2.f32 %v1166_v51 }
 0x50c   : > { %v7754_v42 = vpop.eup %7753 }
 0x50d   : > { %v1168_v43 = vsel %vm1148_vm6, %v7754_v42, 0.0 }
 0x50e   : > { %1169 = vadd.xlane.f32.xlu1 %v1168_v43 }
 0x510   : > { %v7756_v44 = vpop.eup %7755 }
 0x511   : > { %v1171_v45 = vsel %vm1148_vm6, %v7756_v44, 0.0 }
 0x512   : > { %1172 = vadd.xlane.f32.xlu0 %v1171_v45 }
 0x514   : > { %v7758_v52 = vpop.eup %7757 }
 0x515   : > { %v1174_v53 = vsel %vm1155_vm7, %v7758_v52, 0.0 }
 0x51f   : > { %1187 = vrot.lane.b32.xlu1 %v8199_v7, %s9551_s1 }
 0x523   : > { %7600 = vrot.lane.b32.xlu1 %v8209_v15, %s9567_s11 }
 0x527   : > { %1293 = vrot.lane.b32.xlu1 %v8199_v7, %s9567_s11  ;;  %s9617_s11 = smov 112  }
 0x528   : > { %7595 = vrot.lane.b32.xlu0 %v8209_v15, %s9551_s1  ;;  %s9559_s1 = smov 56  }
 0x52c   : > { %7605 = vrot.lane.b32.xlu0 %v8209_v15, %s9561_s2 }
 0x530   : > { %1285 = vrot.lane.b32.xlu0 %v8205_v13, %s9569_s3 }
 0x534   : > { %1532 = vrot.lane.b32.xlu0 %v8199_v7, %s9561_s2  ;;  %s9618_s2 = smov 80  }
 0x538   : > { %1522 = vrot.lane.b32.xlu0 %v8203_v12, %s9563_s8 }
 0x53c   : > { %1526 = vrot.lane.b32.xlu0 %v8199_v7, %s9563_s8 }
 0x540   : > { %1761 = vrot.lane.b32.xlu0 %v8203_v12, %s9553_s28 }
 0x544   : > { %1765 = vrot.lane.b32.xlu0 %v8199_v7, %s9553_s28 }
 0x54b   : > { %1175 = vadd.xlane.f32.xlu1 %v1174_v53 }
 0x55c   : > { %1283 = vrot.lane.b32.xlu1 %v8203_v12, %s9569_s3 }
 0x560   : > { %1287 = vrot.lane.b32.xlu1 %v8199_v7, %s9569_s3  ;;  %s9610_s3 = sld [smem:[#allocation9_spill]] }
 0x564   : > { %7610 = vrot.lane.b32.xlu1 %v8209_v15, %s9565_s0 }
 0x568   : > { %1524 = vrot.lane.b32.xlu1 %v8205_v13, %s9563_s8  ;;  %s9609_s8 = sld [smem:[#allocation8_spill]] }
 0x56c   : > { %1771 = vrot.lane.b32.xlu1 %v8199_v7, %s9565_s0  ;;  %s9573_s0 = smov 16  }
 0x570   : > { %1763 = vrot.lane.b32.xlu1 %v8205_v13, %s9553_s28  ;;  %s9555_s28 = smov 48  }
 0x59b   : > { %v1170_v55 = vpop.xlane.xlu1 %1169 }
 0x59c   : > { %7759 = vrcp.f32 %v1170_v55 }
 0x59f   : > { %v1173_v56 = vpop.xlane.xlu0 %1172  ;;  %v1188_v58 = vpop.permute.xlu1 %1187 }
 0x5a0   : > { %7761 = vrcp.f32 %v1173_v56 }
 0x5a3   : > { %v7596_v57 = vpop.permute.xlu0 %7595  ;;  %v7601_v63 = vpop.permute.xlu1 %7600 }
 0x5a4   : > { %v7598_v59 = vunpack.i.h.bf16 %v7596_v57  ;;  %v7597_v60 = vunpack.i.l.bf16 %v7596_v57  ;;  %v7603_v2 = vunpack.i.h.bf16 %v7601_v63  ;;  %v7602_v3 = vunpack.i.l.bf16 %v7601_v63 }
 0x5a6   : > { %v7395_v61 = vpack.c.bf16 %v7598_v59, %v7597_v60  ;;  %v7760_v62 = vpop.eup %7759  ;;  %v7398_v6 = vpack.c.bf16 %v7603_v2, %v7602_v3 }
 0x5a7   : > { %v1178_v0 = vmul.f32 %v7760_v62, %v7754_v42  ;;  %v1294_v8 = vpop.permute.xlu1 %1293  ;;  %v7606_v10 = vpop.permute.xlu0 %7605 }
 0x5a8   : > { %7396 = vmatpush3.bf16.msra.mxu0 %v7395_v61  ;;  %v7608_v19 = vunpack.i.h.bf16 %v7606_v10  ;;  %v7607_v20 = vunpack.i.l.bf16 %v7606_v10 }
 0x5a9   : > { %6858 = vmatprep.subr.mxu0 %v7960_v16 }
 0x5aa   : > { %v7762_v1 = vpop.eup %7761  ;;  %v7405_v23 = vpack.c.bf16 %v7608_v19, %v7607_v20 }
 0x5ab   : > { %v1180_v4 = vmul.f32 %v7762_v1, %v7756_v44  ;;  %v1286_v24 = vpop.permute.xlu0 %1285 }
 0x5ac   : > { %6859 = vmatpush3.msk.msra.mxu0 %vm1200_vm8, %v1188_v58 }
 0x5ad   : > { %6861 = vmatmul.mubr.msk.f32.vlgmr.msra.gmra.mrb[4].mxu0 %vm1148_vm6, %v1178_v0  ;;  %7397 = vmatprep.subr.bf16.mxu0 %v7957_v5 }
 0x5ae   : > { %6863 = vmatprep.mubr.msk.f32.mxu0 %vm7959_vm3, %v7960_v16 }
 0x5af   : > { %v1533_v26 = vpop.permute.xlu0 %1532 }
 0x5b1   : > { %6864 = vmatmul.mubr.msk.f32.gmra.mrb[6].mxu0 %vm1148_vm6, %v1180_v4 }
 0x5b2   : > { %6866 = vmatprep.mubr.msk.f32.mxu0 %vm7959_vm3, %v7960_v16 }
 0x5b3   : > { %7400 = vmatpush3.bf16.xpose.msk.msra.mxu0 %vm8219_vm5, %v7398_v6  ;;  %v1523_v29 = vpop.permute.xlu0 %1522 }
 0x5b4   : > { %6873 = vmatprep.subr.mxu0 %v7960_v16 }
 0x5b7   : > { %v1527_v32 = vpop.permute.xlu0 %1526 }
 0x5bb   : > { %6874 = vmatpush3.xpose.msk.msra.mxu0 %vm1052_vm4, %v1294_v8  ;;  %v1762_v34 = vpop.permute.xlu0 %1761 }
 0x5bc   : > { %7404 = vmatprep.subr.bf16.mxu0 %v7957_v5 }
 0x5bf   : > { %v1766_v36 = vpop.permute.xlu0 %1765 }
 0x5d8   : > { %v1176_v9 = vpop.xlane.xlu1 %1175 }
 0x5d9   : > { %7763 = vrcp.f32 %v1176_v9 }
 0x5dc   : > { %v1284_v12 = vpop.permute.xlu1 %1283 }
 0x5e0   : > { %v1288_v22 = vpop.permute.xlu1 %1287 }
 0x5e3   : > { %v7764_v13 = vpop.eup %7763 }
 0x5e4   : > { %v1182_v17 = vmul.f32 %v7764_v13, %v7758_v52  ;;  %v7611_v25 = vpop.permute.xlu1 %7610 }
 0x5e5   : > { %v7613_v27 = vunpack.i.h.bf16 %v7611_v25  ;;  %v7612_v28 = vunpack.i.l.bf16 %v7611_v25 }
 0x5e6   : > { %6867 = vmatmul.mubr.msk.f32.gmra.mrb[8].mxu0 %vm1148_vm6, %v1182_v17 }
 0x5e7   : > { %6875 = vmatprep.mubr.msk.f32.mxu0 %vm7959_vm3, %v7960_v16  ;;  %v7412_v30 = vpack.c.bf16 %v7613_v27, %v7612_v28 }
 0x5e8   : > { %v1525_v31 = vpop.permute.xlu1 %1524 }
 0x5ea   : > { %6876 = vmatmul.mubr.msk.f32.vlgmr.msra.gmra.mrb[10].mxu0 %vm1052_vm4, %v1284_v12 }
 0x5eb   : > { %7407 = vmatpush3.bf16.xpose.msk.msra.mxu0 %vm8219_vm5, %v7405_v23  ;;  %6878 = vmatprep.mubr.msk.f32.mxu0 %vm7959_vm3, %v7960_v16 }
 0x5ec   : > { %6903 = vmatprep.subr.mxu0 %v7960_v16  ;;  %v1772_v33 = vpop.permute.xlu1 %1771 }
 0x5ee   : > { %6879 = vmatmul.mubr.msk.f32.gmra.mrb[12].mxu0 %vm1052_vm4, %v1286_v24 }
 0x5ef   : > { %6881 = vmatprep.mubr.msk.f32.mxu0 %vm7959_vm3, %v7960_v16 }
 0x5f0   : > { %v1764_v35 = vpop.permute.xlu1 %1763 }
 0x5f2   : > { %6882 = vmatmul.mubr.msk.f32.gmra.mrb[14].mxu0 %vm1052_vm4, %v1288_v22 }
 0x5f3   : > { %6904 = vmatpush3.xpose.msk.msra.mxu0 %vm1052_vm4, %v1533_v26  ;;  %6905 = vmatprep.mubr.msk.f32.mxu0 %vm7959_vm3, %v7960_v16 }
 0x5f4   : > { %7411 = vmatprep.subr.bf16.mxu0 %v7957_v5 }
 0x5f6   : > { %6906 = vmatmul.mubr.msk.f32.vlgmr.msra.gmra.mrb[16].mxu0 %vm1052_vm4, %v1523_v29 }
 0x5f7   : > { %7414 = vmatpush3.bf16.xpose.msk.msra.mxu0 %vm8219_vm5, %v7412_v30  ;;  %6908 = vmatprep.mubr.msk.f32.mxu0 %vm7959_vm3, %v7960_v16 }
 0x5f8   : > { %6933 = vmatprep.subr.mxu0 %v7960_v16 }
 0x5fa   : > { %6909 = vmatmul.mubr.msk.f32.gmra.mrb[18].mxu0 %vm1052_vm4, %v1525_v31 }
 0x5fb   : > { %6911 = vmatprep.mubr.msk.f32.mxu0 %vm7959_vm3, %v7960_v16 }
 0x5fe   : > { %6912 = vmatmul.mubr.msk.f32.gmra.mrb[20].mxu0 %vm1052_vm4, %v1527_v32 }
 0x5ff   : > { %6934 = vmatpush3.xpose.msk.msra.mxu0 %vm1052_vm4, %v1772_v33  ;;  %6935 = vmatprep.mubr.msk.f32.mxu0 %vm7959_vm3, %v7960_v16 }
 0x602   : > { %6936 = vmatmul.mubr.msk.f32.vlgmr.msra.gmra.mrb[22].mxu0 %vm1052_vm4, %v1762_v34 }
 0x603   : > { %6938 = vmatprep.mubr.msk.f32.mxu0 %vm7959_vm3, %v7960_v16 }
 0x606   : > { %6939 = vmatmul.mubr.msk.f32.gmra.mrb[24].mxu0 %vm1052_vm4, %v1764_v35 }
 0x607   : > { %6941 = vmatprep.mubr.msk.f32.mxu0 %vm7959_vm3, %v7960_v16 }
 0x60a   : > { %6942 = vmatmul.mubr.msk.f32.gmra.mrb[26].mxu0 %vm1052_vm4, %v1766_v36 }
 0x680   : > { %v8331_v37 = vpop.f32.mrb[4].mxu0 }
 0x681   : > { %v6862_v38 = vpop.f32.mrb[5].mxu0 }
 0x684   : > { %v8333_v39 = vpop.f32.mrb[6].mxu0 }
 0x685   : > { %v6865_v40 = vpop.f32.mrb[7].mxu0 }
 0x6b9   : > { %v8335_v41 = vpop.f32.mrb[8].mxu0 }
 0x6ba   : > { %v6868_v42 = vpop.f32.mrb[9].mxu0 }
 0x6bd   : > { %v1373_v43 = vpop.f32.mrb[10].mxu0 }
 0x6be   : > { %v1387_v44 = vmul.f32 0.35355338, %v1373_v43  ;;  %v6877_v45 = vpop.f32.mrb[11].mxu0 }
 0x6c0   : > { %v1390_v46 = vsel %vm1148_vm6, %v1387_v44, -inf }
 0x6c1   : > { %1391 = vmax.xlane.f32.xlu1 %v1390_v46  ;;  %v1378_v47 = vpop.f32.mrb[12].mxu0 }
 0x6c2   : > { %v1388_v51 = vmul.f32 0.35355338, %v1378_v47  ;;  %v6880_v52 = vpop.f32.mrb[13].mxu0 }
 0x6c4   : > { %v1393_v53 = vsel %vm1148_vm6, %v1388_v51, -inf }
 0x6c5   : > { %1394 = vmax.xlane.f32.xlu0 %v1393_v53  ;;  %v1383_v55 = vpop.f32.mrb[14].mxu0 }
 0x6c6   : > { %v1389_v56 = vmul.f32 0.35355338, %v1383_v55  ;;  %v6883_v57 = vpop.f32.mrb[15].mxu0 }
 0x6c8   : > { %v1396_v58 = vsel %vm1155_vm7, %v1389_v56, -inf }
 0x6c9   : > { %1397 = vmax.xlane.f32.xlu0 %v1396_v58  ;;  %v1612_v59 = vpop.f32.mrb[16].mxu0 }
 0x6ca   : > { %v8340_v60 = vmul.f32 0.35355338, %v1612_v59  ;;  %v6907_v61 = vpop.f32.mrb[17].mxu0 }
 0x6cc   : > { %v1629_v62 = vsel %vm1148_vm6, %v8340_v60, -inf }
 0x6cd   : > { %1630 = vmax.xlane.f32.xlu0 %v1629_v62  ;;  %v1617_v63 = vpop.f32.mrb[18].mxu0 }
 0x6ce   : > { %v1627_v0 = vmul.f32 0.35355338, %v1617_v63  ;;  %v6910_v1 = vpop.f32.mrb[19].mxu0 }
 0x6d0   : > { %v1632_v2 = vsel %vm1148_vm6, %v1627_v0, -inf }
 0x6d1   : > { %1633 = vmax.xlane.f32.xlu1 %v1632_v2  ;;  %v1622_v3 = vpop.f32.mrb[20].mxu0 }
 0x6d2   : > { %v1628_v4 = vmul.f32 0.35355338, %v1622_v3  ;;  %v6913_v6 = vpop.f32.mrb[21].mxu0 }
 0x6d4   : > { %v1635_v8 = vsel %vm1155_vm7, %v1628_v4, -inf }
 0x6d5   : > { %1636 = vmax.xlane.f32.xlu0 %v1635_v8  ;;  %v1851_v9 = vpop.f32.mrb[22].mxu0 }
 0x6d6   : > { %v1865_v10 = vmul.f32 0.35355338, %v1851_v9  ;;  %v6937_v12 = vpop.f32.mrb[23].mxu0 }
 0x6d8   : > { %v1868_v13 = vsel %vm1148_vm6, %v1865_v10, -inf }
 0x6d9   : > { %1869 = vmax.xlane.f32.xlu1 %v1868_v13  ;;  %v1856_v17 = vpop.f32.mrb[24].mxu0 }
 0x6da   : > { %v8347_v19 = vmul.f32 0.35355338, %v1856_v17  ;;  %v6940_v20 = vpop.f32.mrb[25].mxu0 }
 0x6dc   : > { %v1871_v22 = vsel %vm1148_vm6, %v8347_v19, -inf }
 0x6dd   : > { %1872 = vmax.xlane.f32.xlu0 %v1871_v22  ;;  %v1861_v23 = vpop.f32.mrb[26].mxu0 }
 0x6de   : > { %v1867_v24 = vmul.f32 0.35355338, %v1861_v23  ;;  %v6943_v25 = vpop.f32.mrb[27].mxu0 }
 0x6e0   : > { %v1874_v26 = vsel %vm1155_vm7, %v1867_v24, -inf }
 0x6e1   : > { %1875 = vmax.xlane.f32.xlu1 %v1874_v26 }
 0x6f2   : > { %7615 = vrot.lane.b32.xlu1 %v8209_v15, %s9559_s1 }
 0x6f3   : > { %1427 = vrot.lane.b32.xlu0 %v8199_v7, %s9559_s1  ;;  %s9571_s1 = smov 24  }
 0x6f7   : > { %7620 = vrot.lane.b32.xlu0 %v8209_v15, %s9555_s28 }
 0x74e   : > { %v1392_v27 = vpop.xlane.xlu1 %1391 }
 0x74f   : > { %v1399_v28 = vsub.f32 %v1387_v44, %v1392_v27 }
 0x751   : > { %v1402_v29 = vmul.f32 1.442695, %v1399_v28 }
 0x752   : > { %v1395_v30 = vpop.xlane.xlu0 %1394 }
 0x753   : > { %7765 = vpow2.f32 %v1402_v29  ;;  %v1400_v31 = vsub.f32 %v1388_v51, %v1395_v30 }
 0x755   : > { %v1404_v32 = vmul.f32 1.442695, %v1400_v31 }
 0x756   : > { %v1398_v33 = vpop.xlane.xlu0 %1397 }
 0x757   : > { %7767 = vpow2.f32 %v1404_v32  ;;  %v1401_v34 = vsub.f32 %v1389_v56, %v1398_v33 }
 0x759   : > { %v1406_v35 = vmul.f32 1.442695, %v1401_v34 }
 0x75a   : > { %v1631_v38 = vpop.xlane.xlu0 %1630 }
 0x75b   : > { %7769 = vpow2.f32 %v1406_v35  ;;  %v1638_v22 = vsub.f32 %v8340_v60, %v1631_v38 }
 0x75d   : > { %v8358_v36 = vpop.eup %7765  ;;  %v1641_v23 = vmul.f32 1.442695, %v1638_v22 }
 0x75e   : > { %v1634_v40 = vpop.xlane.xlu1 %1633  ;;  %v1408_v42 = vsel %vm1148_vm6, %v8358_v36, 0.0 }
 0x75f   : > { %v1639_v43 = vsub.f32 %v1627_v0, %v1634_v40  ;;  %1409 = vadd.xlane.f32.xlu0 %v1408_v42 }
 0x761   : > { %v8362_v44 = vpop.eup %7767  ;;  %v1643_v45 = vmul.f32 1.442695, %v1639_v43 }
 0x762   : > { %v1637_v46 = vpop.xlane.xlu0 %1636  ;;  %v1411_v47 = vsel %vm1148_vm6, %v8362_v44, 0.0 }
 0x763   : > { %7771 = vpow2.f32 %v1643_v45  ;;  %v1640_v51 = vsub.f32 %v1628_v4, %v1637_v46  ;;  %1412 = vadd.xlane.f32.xlu1 %v1411_v47 }
 0x765   : > { %v8366_v52 = vpop.eup %7769  ;;  %v1645_v53 = vmul.f32 1.442695, %v1640_v51 }
 0x766   : > { %v1870_v55 = vpop.xlane.xlu1 %1869  ;;  %v1414_v56 = vsel %vm1155_vm7, %v8366_v52, 0.0 }
 0x767   : > { %7773 = vpow2.f32 %v1645_v53  ;;  %v1877_v57 = vsub.f32 %v1865_v10, %v1870_v55  ;;  %1415 = vadd.xlane.f32.xlu0 %v1414_v56 }
 0x769   : > { %v1880_v58 = vmul.f32 1.442695, %v1877_v57 }
 0x76a   : > { %v1873_v9 = vpop.xlane.xlu0 %1872 }
 0x76b   : > { %7775 = vpow2.f32 %v1880_v58 }
 0x76d   : > { %v8370_v59 = vpop.eup %7771 }
 0x76e   : > { %v1876_v61 = vpop.xlane.xlu1 %1875  ;;  %v1650_v62 = vsel %vm1148_vm6, %v8370_v59, 0.0  ;;  %v1428_v13 = vpop.permute.xlu0 %1427 }
 0x76f   : > { %v1879_v63 = vsub.f32 %v1867_v24, %v1876_v61  ;;  %1651 = vadd.xlane.f32.xlu0 %v1650_v62  ;;  %v1878_v24 = vsub.f32 %v8347_v19, %v1873_v9 }
 0x771   : > { %v8374_v0 = vpop.eup %7773  ;;  %v1884_v1 = vmul.f32 1.442695, %v1879_v63  ;;  %v1882_v25 = vmul.f32 1.442695, %v1878_v24  ;;  %v7711_v24 = vld [vmem:[%s9609_s8] sm:$0xff]  }
 0x772   : > { %v7616_v2 = vpop.permute.xlu1 %7615  ;;  %v1653_v3 = vsel %vm1155_vm7, %v8374_v0, 0.0  ;;  %v7621_v60 = vpop.permute.xlu0 %7620  ;;  %6959 = vmatprep.subr.bf16.mxu0 %v7711_v24 }
 0x773   : > { %7777 = vpow2.f32 %v1884_v1  ;;  %v7618_v4 = vunpack.i.h.bf16 %v7616_v2  ;;  %1654 = vadd.xlane.f32.xlu0 %v1653_v3  ;;  %v7617_v6 = vunpack.i.l.bf16 %v7616_v2  ;;  %v7623_v32 = vunpack.i.h.bf16 %v7621_v60  ;;  %6960 = vmatpush3.bf16.msra.mxu0 %v7711_v24 }
 0x774   : > { %1666 = vrot.lane.b32.xlu1 %v8199_v7, %s9555_s28  ;;  %7779 = vpow2.f32 %v1641_v23  ;;  %s9557_s28 = smov 40  }
 0x775   : > { %v8380_v8 = vpop.eup %7775  ;;  %v7402_v10 = vpack.c.bf16 %v7618_v4, %v7617_v6  ;;  %7781 = vpow2.f32 %v1882_v25 }
 0x776   : > { %v1886_v12 = vsel %vm1148_vm6, %v8380_v8, 0.0 }
 0x777   : > { %1887 = vadd.xlane.f32.xlu0 %v1886_v12  ;;  %7403 = vmatpush3.bf16.msra.mxu1 %v7402_v10 }
 0x778   : > { %6888 = vmatprep.subr.mxu1 %v7960_v16 }
 0x77b   : > { %6889 = vmatpush3.msk.msra.mxu1 %vm1200_vm8, %v1428_v13 }
 0x77c   : > { %7408 = vmatprep.subr.bf16.mxu1 %v7957_v5 }
 0x77d   : > { %v8386_v17 = vpop.eup %7777 }
 0x77e   : > { %v1892_v20 = vsel %vm1155_vm7, %v8386_v17, 0.0  ;;  %v7780_v26 = vpop.eup %7779 }
 0x77f   : > { %1893 = vadd.xlane.f32.xlu0 %v1892_v20  ;;  %v1647_v27 = vsel %vm1148_vm6, %v7780_v26, 0.0  ;;  %v8396_v28 = vpop.eup %7781 }
 0x780   : > { %v1889_v29 = vsel %vm1148_vm6, %v8396_v28, 0.0 }
 0x795   : > { %7625 = vrot.lane.b32.xlu0 %v8209_v15, %s9557_s28  ;;  %v7622_v15 = vunpack.i.l.bf16 %v7621_v60  ;;  %v7712_v60 = vld [vmem:[%s9609_s8 + $0x8] sm:$0xff]  }
 0x796   : > { %6961 = vmatprep.subr.bf16.mxu0 %v7712_v60 }
 0x797   : > { %v7409_v35 = vpack.c.bf16 %v7623_v32, %v7622_v15  ;;  %6962 = vmatpush3.bf16.msra.mxu0 %v7712_v60 }
 0x798   : > { %1648 = vadd.xlane.f32.xlu1 %v1647_v27 }
 0x79c   : > { %1890 = vadd.xlane.f32.xlu1 %v1889_v29 }
 0x7ad   : > { %1905 = vrot.lane.b32.xlu1 %v8199_v7, %s9557_s28  ;;  %s9575_s28 = smov 8  }
 0x7ec   : > { %v1410_v19 = vpop.xlane.xlu0 %1409 }
 0x7ed   : > { %7783 = vrcp.f32 %v1410_v19 }
 0x7f0   : > { %v1413_v30 = vpop.xlane.xlu1 %1412 }
 0x7f1   : > { %7785 = vrcp.f32 %v1413_v30 }
 0x7f4   : > { %v1416_v31 = vpop.xlane.xlu0 %1415  ;;  %v1667_v40 = vpop.permute.xlu1 %1666 }
 0x7f5   : > { %7787 = vrcp.f32 %v1416_v31 }
 0x7f7   : > { %v7784_v33 = vpop.eup %7783 }
 0x7f8   : > { %v1418_v34 = vmul.f32 %v7784_v33, %v8358_v36 }
 0x7fa   : > { %6891 = vmatmul.mubr.msk.f32.vlgmr.msra.gmra.mrb[10].mxu1 %vm1148_vm6, %v1418_v34 }
 0x7fb   : > { %v7786_v38 = vpop.eup %7785  ;;  %7410 = vmatpush3.bf16.msra.mxu1 %v7409_v35  ;;  %6893 = vmatprep.mubr.msk.f32.mxu1 %vm7959_vm3, %v7960_v16 }
 0x7fc   : > { %6918 = vmatprep.subr.mxu1 %v7960_v16  ;;  %v1420_v7 = vmul.f32 %v7786_v38, %v8362_v44  ;;  %v1652_v43 = vpop.xlane.xlu0 %1651 }
 0x7fe   : > { %6894 = vmatmul.mubr.msk.f32.gmra.mrb[12].mxu1 %vm1148_vm6, %v1420_v7 }
 0x7ff   : > { %v7788_v42 = vpop.eup %7787  ;;  %6919 = vmatpush3.msk.msra.mxu1 %vm1200_vm8, %v1667_v40  ;;  %6896 = vmatprep.mubr.msk.f32.mxu1 %vm7959_vm3, %v7960_v16 }
 0x800   : > { %v1422_v36 = vmul.f32 %v7788_v42, %v8366_v52  ;;  %7415 = vmatprep.subr.bf16.mxu1 %v7957_v5  ;;  %v1655_v44 = vpop.xlane.xlu0 %1654 }
 0x802   : > { %6897 = vmatmul.mubr.msk.f32.gmra.mrb[14].mxu1 %vm1148_vm6, %v1422_v36 }
 0x803   : > { %6920 = vmatprep.mubr.msk.f32.mxu1 %vm7959_vm3, %v7960_v16 }
 0x804   : > { %v1888_v45 = vpop.xlane.xlu0 %1887 }
 0x80c   : > { %v1894_v46 = vpop.xlane.xlu0 %1893 }
 0x810   : > { %v7626_v51 = vpop.permute.xlu0 %7625 }
 0x811   : > { %v7628_v53 = vunpack.i.h.bf16 %v7626_v51  ;;  %v7627_v55 = vunpack.i.l.bf16 %v7626_v51 }
 0x813   : > { %v7416_v61 = vpack.c.bf16 %v7628_v53, %v7627_v55 }
 0x825   : > { %v1649_v47 = vpop.xlane.xlu1 %1648 }
 0x826   : > { %7789 = vrcp.f32 %v1649_v47 }
 0x827   : > { %7791 = vrcp.f32 %v1652_v43 }
 0x828   : > { %7793 = vrcp.f32 %v1655_v44 }
 0x829   : > { %7795 = vrcp.f32 %v1888_v45  ;;  %v1891_v57 = vpop.xlane.xlu1 %1890 }
 0x82a   : > { %7797 = vrcp.f32 %v1891_v57 }
 0x82b   : > { %7799 = vrcp.f32 %v1894_v46 }
 0x82d   : > { %v1906_v1 = vpop.permute.xlu1 %1905 }
 0x830   : > { %v7790_v56 = vpop.eup %7789 }
 0x831   : > { %v1657_v52 = vmul.f32 %v7790_v56, %v7780_v26  ;;  %v7792_v58 = vpop.eup %7791 }
 0x832   : > { %v1659_v62 = vmul.f32 %v7792_v58, %v8370_v59  ;;  %v7794_v63 = vpop.eup %7793 }
 0x833   : > { %6921 = vmatmul.mubr.msk.f32.vlgmr.msra.gmra.mrb[16].mxu1 %vm1148_vm6, %v1657_v52  ;;  %v1661_v2 = vmul.f32 %v7794_v63, %v8374_v0  ;;  %v7796_v3 = vpop.eup %7795 }
 0x834   : > { %7417 = vmatpush3.bf16.msra.mxu1 %v7416_v61  ;;  %6923 = vmatprep.mubr.msk.f32.mxu1 %vm7959_vm3, %v7960_v16  ;;  %v1896_v59 = vmul.f32 %v7796_v3, %v8380_v8  ;;  %v7798_v4 = vpop.eup %7797 }
 0x835   : > { %6948 = vmatprep.subr.mxu1 %v7960_v16  ;;  %v1898_v6 = vmul.f32 %v7798_v4, %v8396_v28  ;;  %v7800_v9 = vpop.eup %7799 }
 0x836   : > { %v1900_v0 = vmul.f32 %v7800_v9, %v8386_v17 }
 0x837   : > { %6924 = vmatmul.mubr.msk.f32.gmra.mrb[18].mxu1 %vm1148_vm6, %v1659_v62 }
 0x838   : > { %6949 = vmatpush3.msk.msra.mxu1 %vm1200_vm8, %v1906_v1  ;;  %6926 = vmatprep.mubr.msk.f32.mxu1 %vm7959_vm3, %v7960_v16 }
 0x83b   : > { %6927 = vmatmul.mubr.msk.f32.gmra.mrb[20].mxu1 %vm1148_vm6, %v1661_v2 }
 0x83c   : > { %6950 = vmatprep.mubr.msk.f32.mxu1 %vm7959_vm3, %v7960_v16 }
 0x83f   : > { %6951 = vmatmul.mubr.msk.f32.vlgmr.msra.gmra.mrb[22].mxu1 %vm1148_vm6, %v1896_v59 }
 0x840   : > { %6953 = vmatprep.mubr.msk.f32.mxu1 %vm7959_vm3, %v7960_v16 }
 0x843   : > { %6954 = vmatmul.mubr.msk.f32.gmra.mrb[24].mxu1 %vm1148_vm6, %v1898_v6 }
 0x844   : > { %6956 = vmatprep.mubr.msk.f32.mxu1 %vm7959_vm3, %v7960_v16 }
 0x847   : > { %6957 = vmatmul.mubr.msk.f32.gmra.mrb[26].mxu1 %vm1148_vm6, %v1900_v0 }
 0x8cd   : > { %v1508_v10 = vpop.f32.mrb[10].mxu1 }
 0x8ce   : > { %v6892_v8 = vpop.f32.mrb[11].mxu1 }
 0x8d1   : > { %v1513_v12 = vpop.f32.mrb[12].mxu1 }
 0x8d2   : > { %v7629_v13 = vpack.i.bf16 %v1513_v12, %v1508_v10  ;;  %v6895_v20 = vpop.f32.mrb[13].mxu1 }
 0x8d4   : > { %7630 = vrot.lane.b32.xlu1 %v7629_v13, %s9575_s28 }
 0x8d5   : > { %v1518_v22 = vpop.f32.mrb[14].mxu1 }
 0x8d6   : > { %v6898_v23 = vpop.f32.mrb[15].mxu1 }
 0x8d8   : > { %2007 = vrot.lane.b32.xlu1 %v1518_v22, %s9575_s28  ;;  %s9612_s28 = sld [smem:[#allocation10_spill]] }
 0x906   : > { %v1747_v25 = vpop.f32.mrb[16].mxu1 }
 0x907   : > { %v6922_v17 = vpop.f32.mrb[17].mxu1 }
 0x90a   : > { %v1752_v26 = vpop.f32.mrb[18].mxu1 }
 0x90b   : > { %v7634_v27 = vpack.i.bf16 %v1752_v26, %v1747_v25  ;;  %v6925_v28 = vpop.f32.mrb[19].mxu1 }
 0x90d   : > { %7635 = vrot.lane.b32.xlu1 %v7634_v27, %s9573_s0 }
 0x90e   : > { %v1757_v29 = vpop.f32.mrb[20].mxu1 }
 0x90f   : > { %v6928_v19 = vpop.f32.mrb[21].mxu1 }
 0x911   : > { %2019 = vrot.lane.b32.xlu1 %v1757_v29, %s9573_s0  ;;  %s9611_s0 = sld [smem:[#allocation11_spill]] }
 0x912   : > { %v1986_v30 = vpop.f32.mrb[22].mxu1 }
 0x913   : > { %v6952_v31 = vpop.f32.mrb[23].mxu1 }
 0x916   : > { %v1991_v32 = vpop.f32.mrb[24].mxu1 }
 0x917   : > { %v7639_v15 = vpack.i.bf16 %v1991_v32, %v1986_v30  ;;  %v6955_v33 = vpop.f32.mrb[25].mxu1  ;;  %v7713_v32 = vld [vmem:[%s9610_s3] sm:$0xff]  }
 0x918   : > { %6967 = vmatprep.subr.bf16.mxu1 %v7713_v32 }
 0x919   : > { %7640 = vrot.lane.b32.xlu1 %v7639_v15, %s9571_s1  ;;  %v7714_v15 = vld [vmem:[%s9610_s3 + $0x8] sm:$0xff]   ;;  %6968 = vmatpush3.bf16.msra.mxu1 %v7713_v32 }
 0x91a   : > { %v1996_v34 = vpop.f32.mrb[26].mxu1  ;;  %6969 = vmatprep.subr.bf16.mxu1 %v7714_v15 }
 0x91b   : > { %2031 = vrot.lane.b32.xlu0 %v1996_v34, %s9571_s1  ;;  %v6958_v35 = vpop.f32.mrb[27].mxu1  ;;  %s9619_s1 = smov 104  }
 0x91d   : > { %6970 = vmatpush3.bf16.msra.mxu1 %v7714_v15 }
 0x946   : > { %v7631_v38 = vpop.permute.xlu1 %7630 }
 0x947   : > { %v7633_v42 = vunpack.i.h.bf16 %v7631_v38  ;;  %v7632_v43 = vunpack.i.l.bf16 %v7631_v38 }
 0x949   : > { %v2037_v46 = vsel %vm1052_vm4, %v8333_v39, %v7633_v42  ;;  %v2036_v51 = vsel %vm1052_vm4, %v8331_v37, %v7632_v43 }
 0x94a   : > { %v2008_v7 = vpop.permute.xlu1 %2007 }
 0x94b   : > { %v2038_v53 = vsel %vm1052_vm4, %v8335_v41, %v2008_v7  ;;  %v8467_v41 = vsub.s32 4, %v8175_v48 }
 0x94d   : > { %v2125_v3 = vrot.slane %v8183_v50, %v8467_v41 }
 0x97f   : > { %v7636_v40 = vpop.permute.xlu1 %7635 }
 0x980   : > { %v7638_v44 = vunpack.i.h.bf16 %v7636_v40  ;;  %v7637_v45 = vunpack.i.l.bf16 %v7636_v40 }
 0x982   : > { %v2041_v52 = vsel %vm2039_vm9, %v2037_v46, %v7638_v44  ;;  %v2040_v57 = vsel %vm2039_vm9, %v2036_v51, %v7637_v45  ;;  %v8499_v44 = vsub.s32 2, %v8175_v48  ;;  %v8504_v45 = vld [vmem:[%s9605_s5] sm:$0x3f] }
 0x983   : > { %v2020_v36 = vpop.permute.xlu1 %2019 }
 0x984   : > { %v2042_v58 = vsel %vm2039_vm9, %v2038_v53, %v2020_v36  ;;  %v2171_v46 = vrot.slane %v8504_v45, %v8499_v44 }
 0x98b   : > { %v7641_v47 = vpop.permute.xlu1 %7640 }
 0x98c   : > { %v7643_v55 = vunpack.i.h.bf16 %v7641_v47  ;;  %v7642_v56 = vunpack.i.l.bf16 %v7641_v47  ;;  %v8509_v47 = vsub.s32 3, %v8175_v48 }
 0x98d   : > { %v2032_v61 = vpop.permute.xlu0 %2031 }
 0x98e   : > { %v2045_v62 = vsel %vm2043_vm10, %v2041_v52, %v7643_v55  ;;  %v2044_v39 = vsel %vm2043_vm10, %v2040_v57, %v7642_v56  ;;  %v2046_v63 = vsel %vm2043_vm10, %v2042_v58, %v2032_v61  ;;  %v2178_v57 = vrot.slane %v8504_v45, %v8509_v47 }
 0x98f   : > { %v2052_v1 = vpack.c.bf16 %v2046_v63, %v2046_v63  ;;  %v2051_v37 = vpack.c.bf16 %v2045_v62, %v2044_v39 }
 0x991   : > { %6963 = vmatprep.mubr.msk.bf16.mxu0 %vm908_vm2, %v2051_v37 }
 0x992   : > { %6964 = vmatmul.mubr.msk.bf16.vlgmr.msra.gmra.mrb[28].mxu0 %vm908_vm2, %v2052_v1 }
 0xa65   : > { %v6965_v2 = vpop.f32.mrb[28].mxu0 }
 0xa66   : > { %v2105_v59 = vpop.f32.mrb[29].mxu0  ;;  %v2121_v0 = vadd.f32 %v6965_v2, %v8148_v11 }
 0xa67   : > { %v2119_v4 = vadd.f32 %v2105_v59, %v8153_v14  ;;  %v6966_v6 = vpop.f32.mrb[30].mxu0  ;;  %v7715_v59 = vld [vmem:[%s9611_s0] sm:$0xff]  }
 0xa68   : > { %v2108_v9 = vpop.f32.mrb[31].mxu0  ;;  %v8480_v20 = vadd.f32 %v2125_v3, %v2121_v0  ;;  %6975 = vmatprep.subr.bf16.mxu0 %v7715_v59  ;;  %v7717_v6 = vld [vmem:[%s9611_s0 + $0x10] sm:$0xff]   ;;  %v7719_v0 = vld [vmem:[%s9611_s0 + $0x20] sm:$0xff]  }
 0xa69   : > { %v8473_v10 = vadd.f32 %v2125_v3, %v2119_v4  ;;  %v2120_v8 = vadd.f32 %v2108_v9, %v8157_v18  ;;  %6976 = vmatpush3.bf16.msra.mxu0 %v7715_v59  ;;  %v7716_v4 = vld [vmem:[%s9611_s0 + $0x8] sm:$0xff]   ;;  %v7718_v9 = vld [vmem:[%s9611_s0 + $0x18] sm:$0xff]  }
 0xa6a   : > { %v2135_v14 = vsel %vm915_vm1, %v8480_v20, 0.0  ;;  %6977 = vmatprep.subr.bf16.mxu0 %v7716_v4 }
 0xa6b   : > { %v8476_v12 = vadd.f32 %v2125_v3, %v2120_v8  ;;  %v2129_v13 = vsel %vm908_vm2, %v8473_v10, 0.0  ;;  %v7720_v8 = vld [vmem:[%s9611_s0 + $0x28] sm:$0xff]  }
 0xa6c   : > { %2130 = vadd.xlane.f32.xlu1 %v2129_v13  ;;  %v7721_v13 = vld [vmem:[%s9611_s0 + $0x30] sm:$0xff]  }
 0xa6d   : > { %v2132_v50 = vsel %vm908_vm2, %v8476_v12, 0.0  ;;  %6978 = vmatpush3.bf16.msra.mxu0 %v7716_v4 }
 0xa6e   : > { %2133 = vadd.xlane.f32.xlu0 %v2132_v50  ;;  %6979 = vmatprep.subr.bf16.mxu0 %v7717_v6  ;;  %v7722_v50 = vld [vmem:[%s9611_s0 + $0x38] sm:$0xff]  }
 0xa71   : > { %6980 = vmatpush3.bf16.msra.mxu0 %v7717_v6 }
 0xa72   : > { %2136 = vadd.xlane.f32.xlu0 %v2135_v14  ;;  %6981 = vmatprep.subr.bf16.mxu0 %v7718_v9  ;;  %v6404_v14 = vld [vmem:[%s9612_s28] ss:$0 sm:$0xff] }
 0xa75   : > { %6982 = vmatpush3.bf16.msra.mxu0 %v7718_v9 }
 0xa76   : > { %6983 = vmatprep.subr.bf16.mxu0 %v7719_v0 }
 0xa79   : > { %6984 = vmatpush3.bf16.msra.mxu0 %v7719_v0 }
 0xa7a   : > { %6985 = vmatprep.subr.bf16.mxu0 %v7720_v8 }
 0xa7d   : > { %6986 = vmatpush3.bf16.msra.mxu0 %v7720_v8 }
 0xa7e   : > { %6987 = vmatprep.subr.bf16.mxu0 %v7721_v13 }
 0xa81   : > { %6988 = vmatpush3.bf16.msra.mxu0 %v7721_v13 }
 0xa82   : > { %6989 = vmatprep.subr.bf16.mxu0 %v7722_v50 }
 0xa85   : > { %6990 = vmatpush3.bf16.msra.mxu0 %v7722_v50 }
 0xa86   : > { %7425 = vmatprep.subr.bf16.mxu0 %v7957_v5 }
 0xaf9   : > { %v2131_v11 = vpop.xlane.xlu1 %2130 }
 0xafa   : > { %v2138_v22 = vmul.f32 0.03125, %v2131_v11 }
 0xafb   : > { %v2134_v23 = vpop.xlane.xlu0 %2133 }
 0xafc   : > { %v2141_v18 = vsub.f32 %v8473_v10, %v2138_v22  ;;  %v2139_v24 = vmul.f32 0.03125, %v2134_v23 }
 0xafe   : > { %v2142_v25 = vsub.f32 %v8476_v12, %v2139_v24  ;;  %v2144_v17 = vmul.f32 %v2141_v18, %v2141_v18 }
 0xaff   : > { %v2137_v26 = vpop.xlane.xlu0 %2136 }
 0xb00   : > { %v2140_v27 = vmul.f32 0.03125, %v2137_v26  ;;  %v2147_v28 = vsel %vm908_vm2, %v2144_v17, 0.0  ;;  %v2145_v29 = vmul.f32 %v2142_v25, %v2142_v25 }
 0xb01   : > { %2148 = vadd.xlane.f32.xlu0 %v2147_v28 }
 0xb02   : > { %v2143_v60 = vsub.f32 %v8480_v20, %v2140_v27  ;;  %v2150_v19 = vsel %vm908_vm2, %v2145_v29, 0.0 }
 0xb03   : > { %2151 = vadd.xlane.f32.xlu1 %v2150_v19 }
 0xb04   : > { %v2146_v30 = vmul.f32 %v2143_v60, %v2143_v60 }
 0xb06   : > { %v2153_v31 = vsel %vm915_vm1, %v2146_v30, 0.0 }
 0xb07   : > { %2154 = vadd.xlane.f32.xlu0 %v2153_v31 }
 0xb8e   : > { %v2149_v33 = vpop.xlane.xlu0 %2148 }
 0xb8f   : > { %v2156_v34 = vmul.f32 0.03125, %v2149_v33 }
 0xb90   : > { %v2152_v35 = vpop.xlane.xlu1 %2151 }
 0xb91   : > { %v2159_v38 = vadd.f32 1e-05, %v2156_v34  ;;  %v2157_v7 = vmul.f32 0.03125, %v2152_v35 }
 0xb93   : > { %7801 = vrsqrt.f32 %v2159_v38  ;;  %v2160_v40 = vadd.f32 1e-05, %v2157_v7 }
 0xb94   : > { %v2155_v42 = vpop.xlane.xlu0 %2154 }
 0xb95   : > { %7803 = vrsqrt.f32 %v2160_v40  ;;  %v2158_v36 = vmul.f32 0.03125, %v2155_v42 }
 0xb97   : > { %v2161_v43 = vadd.f32 1e-05, %v2158_v36 }
 0xb99   : > { %7805 = vrsqrt.f32 %v2161_v43 }
 0xb9d   : > { %v7802_v51 = vpop.eup %7801 }
 0xb9e   : > { %v2165_v53 = vmul.f32 %v7802_v51, %v2141_v18 }
 0xb9f   : > { %v7804_v55 = vpop.eup %7803 }
 0xba0   : > { %v2166_v56 = vmul.f32 %v7804_v55, %v2142_v25  ;;  %v2172_v52 = vmul.f32 %v2171_v46, %v2165_v53 }
 0xba2   : > { %v2173_v58 = vmul.f32 %v2171_v46, %v2166_v56  ;;  %v2179_v39 = vadd.f32 %v2178_v57, %v2172_v52 }
 0xba3   : > { %v7806_v61 = vpop.eup %7805 }
 0xba4   : > { %v2167_v62 = vmul.f32 %v7806_v61, %v2143_v60  ;;  %v2180_v63 = vadd.f32 %v2178_v57, %v2173_v58 }
 0xba6   : > { %v2174_v1 = vmul.f32 %v2171_v46, %v2167_v62  ;;  %v2187_v37 = vpack.c.bf16 %v2180_v63, %v2179_v39  ;;  %v8546_v39 = vsub.s32 5, %v8175_v48 }
 0xba8   : > { %6971 = vmatprep.mubr.msk.bf16.mxu1 %vm908_vm2, %v2187_v37  ;;  %v2181_v2 = vadd.f32 %v2178_v57, %v2174_v1  ;;  %v2408_v1 = vrot.slane %v8504_v45, %v8546_v39 }
 0xbaa   : > { %v2188_v3 = vpack.c.bf16 %v2181_v2, %v2181_v2 }
 0xbac   : > { %6972 = vmatmul.mubr.msk.bf16.vlgmr.msra.gmra.mrb[28].mxu1 %vm908_vm2, %v2188_v3 }
 0xc7f   : > { %v6973_v11 = vpop.f32.mrb[28].mxu1 }
 0xc80   : > { %v2256_v22 = vadd.f32 %v6973_v11, %v6404_v14  ;;  %v2247_v23 = vpop.f32.mrb[29].mxu1 }
 0xc81   : > { %v2248_v18 = vadd.f32 %v6404_v14, %v2247_v23  ;;  %v6974_v24 = vpop.f32.mrb[30].mxu1 }
 0xc82   : > { %v2263_v25 = vmul.f32 %v2256_v22, %v2256_v22  ;;  %v2250_v17 = vpop.f32.mrb[31].mxu1 }
 0xc83   : > { %v2261_v26 = vmul.f32 %v2248_v18, %v2248_v18  ;;  %v2251_v27 = vadd.f32 %v6404_v14, %v2250_v17 }
 0xc84   : > { %v2266_v28 = vmul.f32 %v2263_v25, %v2256_v22 }
 0xc85   : > { %v2264_v29 = vmul.f32 %v2261_v26, %v2248_v18  ;;  %v2262_v60 = vmul.f32 %v2251_v27, %v2251_v27 }
 0xc86   : > { %v2269_v19 = vmul.f32 0.044715, %v2266_v28 }
 0xc87   : > { %v2267_v30 = vmul.f32 0.044715, %v2264_v29  ;;  %v2265_v31 = vmul.f32 %v2262_v60, %v2251_v27  ;;  %v7723_v60 = vld [vmem:[%s9604_s6 + $0x10] sm:$0xff]  }
 0xc88   : > { %v2272_v32 = vadd.f32 %v2269_v19, %v2256_v22  ;;  %v7724_v19 = vld [vmem:[%s9604_s6 + $0x18] sm:$0xff]   ;;  %6995 = vmatprep.subr.bf16.mxu1 %v7723_v60  ;;  %s9628_s6 = sld [smem:[#allocation14_spill]] }
 0xc89   : > { %v2270_v15 = vadd.f32 %v2267_v30, %v2248_v18  ;;  %v2268_v33 = vmul.f32 0.044715, %v2265_v31  ;;  %6996 = vmatpush3.bf16.msra.mxu1 %v7723_v60 }
 0xc8a   : > { %v2275_v34 = vmul.f32 0.7978846, %v2272_v32  ;;  %6997 = vmatprep.subr.bf16.mxu1 %v7724_v19 }
 0xc8b   : > { %v2273_v35 = vmul.f32 0.7978846, %v2270_v15  ;;  %v2271_v38 = vadd.f32 %v2268_v33, %v2251_v27 }
 0xc8c   : > { %7807 = vtanh.f32 %v2275_v34 }
 0xc8d   : > { %7809 = vtanh.f32 %v2273_v35  ;;  %v2274_v7 = vmul.f32 0.7978846, %v2271_v38  ;;  %6998 = vmatpush3.bf16.msra.mxu1 %v7724_v19 }
 0xc8e   : > { %7418 = vmatprep.subr.bf16.mxu1 %v7957_v5 }
 0xc8f   : > { %7811 = vtanh.f32 %v2274_v7 }
 0xc96   : > { %v7808_v40 = vpop.eup %7807 }
 0xc97   : > { %v7810_v42 = vpop.eup %7809  ;;  %v2281_v36 = vadd.f32 1.0, %v7808_v40  ;;  %v8581_v40 = vld [vmem:[%s9605_s5 + $0x8] sm:$0x3f] }
 0xc98   : > { %v2279_v43 = vadd.f32 1.0, %v7810_v42  ;;  %v2456_v42 = vrot.slane %v8581_v40, %v8178_v49 }
 0xc99   : > { %v7812_v46 = vpop.eup %7811  ;;  %v2284_v51 = vmul.f32 0.5, %v2281_v36 }
 0xc9a   : > { %v2280_v53 = vadd.f32 1.0, %v7812_v46  ;;  %v2282_v55 = vmul.f32 0.5, %v2279_v43 }
 0xc9b   : > { %v2287_v52 = vmul.f32 %v2284_v51, %v2256_v22 }
 0xc9c   : > { %v2283_v56 = vmul.f32 0.5, %v2280_v53  ;;  %v2285_v57 = vmul.f32 %v2282_v55, %v2248_v18  ;;  %v2463_v55 = vrot.slane %v8581_v40, %v8188_v54 }
 0xc9d   : > { %v2305_v62 = vpack.c.bf16 %v2287_v52, %v2287_v52 }
 0xc9e   : > { %v2286_v58 = vmul.f32 %v2283_v56, %v2251_v27 }
 0xca0   : > { %v2304_v61 = vpack.c.bf16 %v2286_v58, %v2285_v57 }
 0xca2   : > { %6991 = vmatprep.mubr.bf16.mxu0 %v2304_v61 }
 0xca3   : > { %6992 = vmatmul.mubr.bf16.vlgmr.msra.gmra.mrb[32].mxu0 %v2305_v62 }
 0xca4   : > { %7039 = vmatprep.mubr.msk.f32.mxu0 %vm7959_vm3, %v7960_v16 }
 0xd76   : > { %v6993_v63 = vpop.f32.mrb[32].mxu0 }
 0xd77   : > { %v2388_v37 = vpop.f32.mrb[33].mxu0  ;;  %v2404_v2 = vadd.f32 %v6993_v63, %v8480_v20 }
 0xd78   : > { %v2402_v3 = vadd.f32 %v2388_v37, %v8473_v10  ;;  %v6994_v59 = vpop.f32.mrb[34].mxu0 }
 0xd79   : > { %v2391_v4 = vpop.f32.mrb[35].mxu0  ;;  %v8555_v0 = vadd.f32 %v2408_v1, %v2404_v2  ;;  %v6423_v2 = vld [vmem:[%s9606_s10 + $0x1] ss:$0 sm:$0xff]  ;;  %s9627_s10 = sld [smem:[#allocation13_spill]] }
 0xd7a   : > { %v8552_v6 = vadd.f32 %v2408_v1, %v2402_v3  ;;  %v2403_v9 = vadd.f32 %v2391_v4, %v8476_v12 }
 0xd7b   : > { %v2420_v10 = vsel %vm915_vm1, %v8555_v0, 0.0 }
 0xd7c   : > { %v8557_v8 = vadd.f32 %v2408_v1, %v2403_v9  ;;  %v2414_v13 = vsel %vm908_vm2, %v8552_v6, 0.0 }
 0xd7d   : > { %2415 = vadd.xlane.f32.xlu1 %v2414_v13 }
 0xd7e   : > { %v2417_v45 = vsel %vm908_vm2, %v8557_v8, 0.0 }
 0xd7f   : > { %2418 = vadd.xlane.f32.xlu0 %v2417_v45 }
 0xd81   : > { %2421 = vadd.xlane.f32.xlu1 %v2420_v10 }
 0xe0a   : > { %v2416_v20 = vpop.xlane.xlu1 %2415 }
 0xe0b   : > { %v2423_v50 = vmul.f32 0.03125, %v2416_v20 }
 0xe0c   : > { %v2419_v14 = vpop.xlane.xlu0 %2418 }
 0xe0d   : > { %v2426_v12 = vsub.f32 %v8552_v6, %v2423_v50  ;;  %v2424_v11 = vmul.f32 0.03125, %v2419_v14 }
 0xe0e   : > { %v2422_v22 = vpop.xlane.xlu1 %2421 }
 0xe0f   : > { %v2427_v23 = vsub.f32 %v8557_v8, %v2424_v11  ;;  %v2425_v18 = vmul.f32 0.03125, %v2422_v22  ;;  %v2429_v24 = vmul.f32 %v2426_v12, %v2426_v12 }
 0xe11   : > { %v2428_v25 = vsub.f32 %v8555_v0, %v2425_v18  ;;  %v2432_v17 = vsel %vm908_vm2, %v2429_v24, 0.0  ;;  %v2430_v26 = vmul.f32 %v2427_v23, %v2427_v23 }
 0xe12   : > { %2433 = vadd.xlane.f32.xlu0 %v2432_v17 }
 0xe13   : > { %v2435_v27 = vsel %vm908_vm2, %v2430_v26, 0.0  ;;  %v2431_v28 = vmul.f32 %v2428_v25, %v2428_v25 }
 0xe14   : > { %2436 = vadd.xlane.f32.xlu1 %v2435_v27 }
 0xe15   : > { %v2438_v29 = vsel %vm915_vm1, %v2431_v28, 0.0 }
 0xe16   : > { %2439 = vadd.xlane.f32.xlu0 %v2438_v29 }
 0xe9f   : > { %v2434_v30 = vpop.xlane.xlu0 %2433 }
 0xea0   : > { %v2441_v31 = vmul.f32 0.03125, %v2434_v30 }
 0xea1   : > { %v2437_v32 = vpop.xlane.xlu1 %2436 }
 0xea2   : > { %v2444_v15 = vadd.f32 1e-05, %v2441_v31  ;;  %v2442_v33 = vmul.f32 0.03125, %v2437_v32 }
 0xea3   : > { %v2440_v34 = vpop.xlane.xlu0 %2439 }
 0xea4   : > { %7813 = vrsqrt.f32 %v2444_v15  ;;  %v2445_v35 = vadd.f32 1e-05, %v2442_v33  ;;  %v2443_v38 = vmul.f32 0.03125, %v2440_v34 }
 0xea6   : > { %7815 = vrsqrt.f32 %v2445_v35  ;;  %v2446_v7 = vadd.f32 1e-05, %v2443_v38 }
 0xea8   : > { %7817 = vrsqrt.f32 %v2446_v7 }
 0xeae   : > { %v7814_v36 = vpop.eup %7813 }
 0xeaf   : > { %v2450_v43 = vmul.f32 %v7814_v36, %v2426_v12 }
 0xeb0   : > { %v7816_v46 = vpop.eup %7815 }
 0xeb1   : > { %v2451_v51 = vmul.f32 %v7816_v46, %v2427_v23  ;;  %v2457_v53 = vmul.f32 %v2456_v42, %v2450_v43 }
 0xeb2   : > { %v7818_v56 = vpop.eup %7817 }
 0xeb3   : > { %v2452_v52 = vmul.f32 %v7818_v56, %v2428_v25  ;;  %v2458_v57 = vmul.f32 %v2456_v42, %v2451_v51  ;;  %v2464_v58 = vadd.f32 %v2463_v55, %v2457_v53 }
 0xeb5   : > { %v2465_v61 = vadd.f32 %v2463_v55, %v2458_v57  ;;  %v2459_v62 = vmul.f32 %v2456_v42, %v2452_v52 }
 0xeb7   : > { %v2474_v63 = vpack.c.bf16 %v2465_v61, %v2464_v58  ;;  %v2466_v1 = vadd.f32 %v2463_v55, %v2459_v62 }
 0xeb9   : > { %6999 = vmatprep.mubr.msk.bf16.mxu1 %vm908_vm2, %v2474_v63  ;;  %v2475_v37 = vpack.c.bf16 %v2466_v1, %v2466_v1 }
 0xebb   : > { %7000 = vmatmul.mubr.msk.bf16.vlgmr.msra.gmra.mrb[32].mxu1 %vm908_vm2, %v2475_v37 }
 0xebc   : > { %7009 = vmatprep.mubr.msk.f32.mxu1 %vm7959_vm3, %v7960_v16 }
 0xf8e   : > { %v7001_v3 = vpop.f32.mrb[32].mxu1 }
 0xf8f   : > { %v8594_v59 = vadd.f32 %v7001_v3, %v6423_v2  ;;  %v2534_v4 = vpop.f32.mrb[33].mxu1 }
 0xf90   : > { %v7002_v9 = vpop.f32.mrb[34].mxu1  ;;  %v2535_v45 = vadd.f32 %v6423_v2, %v2534_v4 }
 0xf91   : > { %2555 = vrot.lane.b32.xlu0 %v8594_v59, %s9613_s9  ;;  %v2537_v13 = vpop.f32.mrb[35].mxu1 }
 0xf92   : > { %v2538_v10 = vadd.f32 %v6423_v2, %v2537_v13 }
 0xf94   : > { %v8598_v20 = vpack.i.bf16 %v2538_v10, %v2535_v45 }
 0xf95   : > { %2784 = vrot.lane.b32.xlu0 %v2535_v45, %s9614_s29 }
 0xf96   : > { %7645 = vrot.lane.b32.xlu1 %v8598_v20, %s9613_s9 }
 0xf99   : > { %2788 = vrot.lane.b32.xlu0 %v8594_v59, %s9614_s29 }
 0xf9a   : > { %7650 = vrot.lane.b32.xlu1 %v8598_v20, %s9615_s7 }
 0xf9d   : > { %7660 = vrot.lane.b32.xlu0 %v8598_v20, %s9616_s30 }
 0xf9e   : > { %2794 = vrot.lane.b32.xlu1 %v8594_v59, %s9615_s7  ;;  %s9621_s7 = smov 56  }
 0xfa1   : > { %3025 = vrot.lane.b32.xlu0 %v2538_v10, %s9617_s11 }
 0xfa2   : > { %7655 = vrot.lane.b32.xlu1 %v8598_v20, %s9618_s2 }
 0xfa5   : > { %3272 = vrot.lane.b32.xlu0 %v8594_v59, %s9616_s30  ;;  %s9622_s30 = smov 48  }
 0xfa6   : > { %2786 = vrot.lane.b32.xlu1 %v2538_v10, %s9614_s29  ;;  %s9620_s29 = smov 64  }
 0xfa9   : > { %3264 = vrot.lane.b32.xlu0 %v2538_v10, %s9619_s1 }
 0xfaa   : > { %3033 = vrot.lane.b32.xlu1 %v8594_v59, %s9618_s2  ;;  %s9624_s2 = smov 8  }
 0xfae   : > { %3023 = vrot.lane.b32.xlu1 %v2535_v45, %s9617_s11 }
 0xfb2   : > { %3027 = vrot.lane.b32.xlu1 %v8594_v59, %s9617_s11  ;;  %s9623_s11 = smov 40  }
 0xfb6   : > { %3262 = vrot.lane.b32.xlu1 %v2535_v45, %s9619_s1 }
 0xfba   : > { %3266 = vrot.lane.b32.xlu1 %v8594_v59, %s9619_s1  ;;  %s6565_s1 = sshll.u32 %s9633_s4, 5 }
0x1003   : > { %v2556_v24 = vpop.permute.xlu0 %2555 }
0x1007   : > { %v2785_v26 = vpop.permute.xlu0 %2784 }
0x1008   : > { %v7646_v50 = vpop.permute.xlu1 %7645 }
0x1009   : > { %v7648_v14 = vunpack.i.h.bf16 %v7646_v50  ;;  %v7647_v12 = vunpack.i.l.bf16 %v7646_v50 }
0x100b   : > { %v7419_v11 = vpack.c.bf16 %v7648_v14, %v7647_v12  ;;  %v2789_v60 = vpop.permute.xlu0 %2788 }
0x100c   : > { %v7651_v22 = vpop.permute.xlu1 %7650 }
0x100d   : > { %v7653_v23 = vunpack.i.h.bf16 %v7651_v22  ;;  %v7652_v18 = vunpack.i.l.bf16 %v7651_v22  ;;  %7421 = vmatpush3.bf16.xpose.msk.msra.mxu1 %vm8219_vm5, %v7419_v11 }
0x100e   : > { %7007 = vmatprep.subr.mxu1 %v7960_v16 }
0x100f   : > { %v7426_v25 = vpack.c.bf16 %v7653_v23, %v7652_v18  ;;  %v7661_v31 = vpop.permute.xlu0 %7660 }
0x1010   : > { %v2795_v17 = vpop.permute.xlu1 %2794  ;;  %v7663_v15 = vunpack.i.h.bf16 %v7661_v31  ;;  %v7662_v33 = vunpack.i.l.bf16 %v7661_v31 }
0x1011   : > { %7428 = vmatpush3.bf16.xpose.msk.msra.mxu0 %vm8219_vm5, %v7426_v25 }
0x1012   : > { %7037 = vmatprep.subr.mxu0 %v7960_v16  ;;  %v7440_v34 = vpack.c.bf16 %v7663_v15, %v7662_v33 }
0x1013   : > { %v3026_v38 = vpop.permute.xlu0 %3025 }
0x1014   : > { %v7656_v27 = vpop.permute.xlu1 %7655 }
0x1015   : > { %7008 = vmatpush3.xpose.msk.msra.mxu1 %vm1052_vm4, %v2556_v24  ;;  %v7658_v28 = vunpack.i.h.bf16 %v7656_v27  ;;  %v7657_v29 = vunpack.i.l.bf16 %v7656_v27 }
0x1016   : > { %7422 = vmatprep.subr.bf16.mxu1 %v7957_v5 }
0x1017   : > { %v7433_v19 = vpack.c.bf16 %v7658_v28, %v7657_v29  ;;  %v3273_v42 = vpop.permute.xlu0 %3272 }
0x1018   : > { %7010 = vmatmul.mubr.msk.f32.vlgmr.msra.gmra.mrb[36].mxu1 %vm1052_vm4, %v2535_v45  ;;  %v2787_v30 = vpop.permute.xlu1 %2786 }
0x1019   : > { %7038 = vmatpush3.xpose.msk.msra.mxu0 %vm1052_vm4, %v2795_v17  ;;  %7012 = vmatprep.mubr.msk.f32.mxu1 %vm7959_vm3, %v7960_v16 }
0x101a   : > { %7432 = vmatprep.subr.bf16.mxu0 %v7957_v5 }
0x101b   : > { %v3265_v36 = vpop.permute.xlu0 %3264 }
0x101c   : > { %7013 = vmatmul.mubr.msk.f32.gmra.mrb[38].mxu1 %vm1052_vm4, %v2538_v10  ;;  %7040 = vmatmul.mubr.msk.f32.vlgmr.msra.gmra.mrb[36].mxu0 %vm1052_vm4, %v2785_v26  ;;  %v3034_v32 = vpop.permute.xlu1 %3033 }
0x101d   : > { %7435 = vmatpush3.bf16.xpose.msk.msra.mxu0 %vm8219_vm5, %v7433_v19  ;;  %7015 = vmatprep.mubr.msk.f32.mxu1 %vm7959_vm3, %v7960_v16 }
0x101e   : > { %7042 = vmatprep.mubr.msk.f32.mxu0 %vm7959_vm3, %v7960_v16  ;;  %7067 = vmatprep.subr.mxu0 %v7960_v16 }
0x1020   : > { %7016 = vmatmul.mubr.msk.f32.gmra.mrb[40].mxu1 %vm1052_vm4, %v8594_v59  ;;  %7043 = vmatmul.mubr.msk.f32.gmra.mrb[38].mxu0 %vm1052_vm4, %v2787_v30  ;;  %v3024_v35 = vpop.permute.xlu1 %3023 }
0x1021   : > { %7045 = vmatprep.mubr.msk.f32.mxu0 %vm7959_vm3, %v7960_v16  ;;  %7024 = vmatprep.mubr.msk.f32.mxu1 %vm7959_vm3, %v7960_v16 }
0x1024   : > { %7046 = vmatmul.mubr.msk.f32.gmra.mrb[40].mxu0 %vm1052_vm4, %v2789_v60  ;;  %v3028_v7 = vpop.permute.xlu1 %3027 }
0x1025   : > { %7068 = vmatpush3.xpose.msk.msra.mxu0 %vm1052_vm4, %v3034_v32  ;;  %7069 = vmatprep.mubr.msk.f32.mxu0 %vm7959_vm3, %v7960_v16 }
0x1026   : > { %7439 = vmatprep.subr.bf16.mxu0 %v7957_v5 }
0x1028   : > { %7070 = vmatmul.mubr.msk.f32.vlgmr.msra.gmra.mrb[42].mxu0 %vm1052_vm4, %v3024_v35  ;;  %v3263_v21 = vpop.permute.xlu1 %3262 }
0x1029   : > { %7442 = vmatpush3.bf16.xpose.msk.msra.mxu0 %vm8219_vm5, %v7440_v34  ;;  %7072 = vmatprep.mubr.msk.f32.mxu0 %vm7959_vm3, %v7960_v16 }
0x102a   : > { %7097 = vmatprep.subr.mxu0 %v7960_v16 }
0x102c   : > { %7073 = vmatmul.mubr.msk.f32.gmra.mrb[44].mxu0 %vm1052_vm4, %v3026_v38  ;;  %v3267_v43 = vpop.permute.xlu1 %3266 }
0x102d   : > { %7075 = vmatprep.mubr.msk.f32.mxu0 %vm7959_vm3, %v7960_v16 }
0x1030   : > { %7076 = vmatmul.mubr.msk.f32.gmra.mrb[46].mxu0 %vm1052_vm4, %v3028_v7 }
0x1031   : > { %7098 = vmatpush3.xpose.msk.msra.mxu0 %vm1052_vm4, %v3273_v42  ;;  %7099 = vmatprep.mubr.msk.f32.mxu0 %vm7959_vm3, %v7960_v16 }
0x1034   : > { %7100 = vmatmul.mubr.msk.f32.vlgmr.msra.gmra.mrb[48].mxu0 %vm1052_vm4, %v3263_v21 }
0x1035   : > { %7102 = vmatprep.mubr.msk.f32.mxu0 %vm7959_vm3, %v7960_v16 }
0x1038   : > { %7103 = vmatmul.mubr.msk.f32.gmra.mrb[50].mxu0 %vm1052_vm4, %v3265_v36 }
0x1039   : > { %7105 = vmatprep.mubr.msk.f32.mxu0 %vm7959_vm3, %v7960_v16 }
0x103c   : > { %7106 = vmatmul.mubr.msk.f32.gmra.mrb[52].mxu0 %vm1052_vm4, %v3267_v43 }
0x10eb   : > { %v2635_v46 = vpop.f32.mrb[36].mxu1 }
0x10ec   : > { %v8680_v51 = vmul.f32 0.35355338, %v2635_v46  ;;  %v7011_v53 = vpop.f32.mrb[37].mxu1 }
0x10ee   : > { %v2652_v55 = vsel %vm1148_vm6, %v8680_v51, -inf }
0x10ef   : > { %v2874_v56 = vpop.f32.mrb[36].mxu0  ;;  %2653 = vmax.xlane.f32.xlu0 %v2652_v55  ;;  %v2640_v52 = vpop.f32.mrb[38].mxu1 }
0x10f0   : > { %v8684_v57 = vmul.f32 0.35355338, %v2874_v56  ;;  %v8686_v58 = vmul.f32 0.35355338, %v2640_v52  ;;  %v7014_v61 = vpop.f32.mrb[39].mxu1  ;;  %v7041_v62 = vpop.f32.mrb[37].mxu0 }
0x10f2   : > { %v2891_v63 = vsel %vm1148_vm6, %v8684_v57, -inf  ;;  %v2655_v1 = vsel %vm1148_vm6, %v8686_v58, -inf }
0x10f3   : > { %v2879_v37 = vpop.f32.mrb[38].mxu0  ;;  %2892 = vmax.xlane.f32.xlu0 %v2891_v63  ;;  %2656 = vmax.xlane.f32.xlu1 %v2655_v1  ;;  %v2645_v2 = vpop.f32.mrb[40].mxu1 }
0x10f4   : > { %v2889_v3 = vmul.f32 0.35355338, %v2879_v37  ;;  %v7017_v4 = vpop.f32.mrb[41].mxu1  ;;  %v7044_v9 = vpop.f32.mrb[39].mxu0  ;;  %v8692_v13 = vmul.f32 0.35355338, %v2645_v2 }
0x10f6   : > { %v2894_v45 = vsel %vm1148_vm6, %v2889_v3, -inf  ;;  %v2658_v11 = vsel %vm1155_vm7, %v8692_v13, -inf }
0x10f7   : > { %v2884_v10 = vpop.f32.mrb[40].mxu0  ;;  %2895 = vmax.xlane.f32.xlu0 %v2894_v45 }
0x10f8   : > { %v2890_v50 = vmul.f32 0.35355338, %v2884_v10  ;;  %v7047_v14 = vpop.f32.mrb[41].mxu0 }
0x10fa   : > { %v2897_v12 = vsel %vm1155_vm7, %v2890_v50, -inf }
0x10fb   : > { %v3113_v22 = vpop.f32.mrb[42].mxu0  ;;  %2898 = vmax.xlane.f32.xlu1 %v2897_v12  ;;  %2659 = vmax.xlane.f32.xlu0 %v2658_v11 }
0x10fc   : > { %v3127_v23 = vmul.f32 0.35355338, %v3113_v22  ;;  %v7071_v18 = vpop.f32.mrb[43].mxu0 }
0x10fe   : > { %v3130_v24 = vsel %vm1148_vm6, %v3127_v23, -inf }
0x10ff   : > { %v3118_v25 = vpop.f32.mrb[44].mxu0  ;;  %3131 = vmax.xlane.f32.xlu0 %v3130_v24 }
0x1100   : > { %v8699_v17 = vmul.f32 0.35355338, %v3118_v25  ;;  %v7074_v26 = vpop.f32.mrb[45].mxu0 }
0x1102   : > { %v3133_v27 = vsel %vm1148_vm6, %v8699_v17, -inf }
0x1103   : > { %v3123_v28 = vpop.f32.mrb[46].mxu0  ;;  %3134 = vmax.xlane.f32.xlu1 %v3133_v27 }
0x1104   : > { %v8703_v29 = vmul.f32 0.35355338, %v3123_v28  ;;  %v7077_v60 = vpop.f32.mrb[47].mxu0 }
0x1106   : > { %v3136_v19 = vsel %vm1155_vm7, %v8703_v29, -inf }
0x1107   : > { %v3352_v30 = vpop.f32.mrb[48].mxu0  ;;  %3137 = vmax.xlane.f32.xlu0 %v3136_v19 }
0x1108   : > { %v8707_v31 = vmul.f32 0.35355338, %v3352_v30  ;;  %v7101_v32 = vpop.f32.mrb[49].mxu0 }
0x110a   : > { %v3369_v15 = vsel %vm1148_vm6, %v8707_v31, -inf }
0x110b   : > { %v3357_v33 = vpop.f32.mrb[50].mxu0  ;;  %3370 = vmax.xlane.f32.xlu1 %v3369_v15 }
0x110c   : > { %v8711_v34 = vmul.f32 0.35355338, %v3357_v33  ;;  %v7104_v35 = vpop.f32.mrb[51].mxu0 }
0x110e   : > { %v3372_v38 = vsel %vm1148_vm6, %v8711_v34, -inf }
0x110f   : > { %v3362_v7 = vpop.f32.mrb[52].mxu0  ;;  %3373 = vmax.xlane.f32.xlu0 %v3372_v38 }
0x1110   : > { %v8715_v42 = vmul.f32 0.35355338, %v3362_v7  ;;  %v7107_v21 = vpop.f32.mrb[53].mxu0 }
0x1112   : > { %v3375_v36 = vsel %vm1155_vm7, %v8715_v42, -inf }
0x1113   : > { %3376 = vmax.xlane.f32.xlu1 %v3375_v36 }
0x1124   : > { %7665 = vrot.lane.b32.xlu1 %v8598_v20, %s9620_s29 }
0x1125   : > { %2689 = vrot.lane.b32.xlu0 %v8594_v59, %s9620_s29 }
0x1129   : > { %7670 = vrot.lane.b32.xlu0 %v8598_v20, %s9621_s7 }
0x117c   : > { %v2654_v43 = vpop.xlane.xlu0 %2653 }
0x117d   : > { %v2661_v46 = vsub.f32 %v8680_v51, %v2654_v43 }
0x117f   : > { %v2664_v53 = vmul.f32 1.442695, %v2661_v46 }
0x1180   : > { %v2893_v55 = vpop.xlane.xlu0 %2892  ;;  %v2657_v56 = vpop.xlane.xlu1 %2656 }
0x1181   : > { %7819 = vpow2.f32 %v2664_v53  ;;  %v2900_v52 = vsub.f32 %v8684_v57, %v2893_v55  ;;  %v2662_v61 = vsub.f32 %v8686_v58, %v2657_v56 }
0x1183   : > { %v2903_v62 = vmul.f32 1.442695, %v2900_v52  ;;  %v2666_v63 = vmul.f32 1.442695, %v2662_v61 }
0x1184   : > { %v2896_v1 = vpop.xlane.xlu0 %2895 }
0x1185   : > { %7821 = vpow2.f32 %v2903_v62  ;;  %v2901_v37 = vsub.f32 %v2889_v3, %v2896_v1 }
0x1186   : > { %7823 = vpow2.f32 %v2666_v63 }
0x1187   : > { %v2905_v2 = vmul.f32 1.442695, %v2901_v37 }
0x1188   : > { %v2899_v4 = vpop.xlane.xlu1 %2898  ;;  %v2660_v9 = vpop.xlane.xlu0 %2659 }
0x1189   : > { %7825 = vpow2.f32 %v2905_v2  ;;  %v2902_v45 = vsub.f32 %v2890_v50, %v2899_v4  ;;  %v2663_v51 = vsub.f32 %v8692_v13, %v2660_v9 }
0x118b   : > { %v8729_v10 = vpop.eup %7819  ;;  %v2668_v14 = vmul.f32 1.442695, %v2663_v51  ;;  %v2907_v12 = vmul.f32 1.442695, %v2902_v45 }
0x118c   : > { %v3132_v57 = vpop.xlane.xlu0 %3131  ;;  %v2670_v58 = vsel %vm1148_vm6, %v8729_v10, 0.0 }
0x118d   : > { %v3139_v11 = vsub.f32 %v3127_v23, %v3132_v57  ;;  %2671 = vadd.xlane.f32.xlu0 %v2670_v58  ;;  %7827 = vpow2.f32 %v2668_v14 }
0x118e   : > { %7829 = vpow2.f32 %v2907_v12 }
0x118f   : > { %v8733_v3 = vpop.eup %7821  ;;  %v3142_v22 = vmul.f32 1.442695, %v3139_v11 }
0x1190   : > { %v3135_v18 = vpop.xlane.xlu1 %3134  ;;  %v2909_v50 = vsel %vm1148_vm6, %v8733_v3, 0.0  ;;  %v8737_v13 = vpop.eup %7823 }
0x1191   : > { %v3140_v24 = vsub.f32 %v8699_v17, %v3135_v18  ;;  %2910 = vadd.xlane.f32.xlu1 %v2909_v50  ;;  %7831 = vpow2.f32 %v3142_v22  ;;  %v2673_v27 = vsel %vm1148_vm6, %v8737_v13, 0.0 }
0x1193   : > { %v8740_v25 = vpop.eup %7825  ;;  %v3144_v26 = vmul.f32 1.442695, %v3140_v24 }
0x1194   : > { %v3138_v23 = vpop.xlane.xlu0 %3137  ;;  %v2912_v28 = vsel %vm1148_vm6, %v8740_v25, 0.0 }
0x1195   : > { %7833 = vpow2.f32 %v3144_v26  ;;  %v3141_v60 = vsub.f32 %v8703_v29, %v3138_v23  ;;  %2674 = vadd.xlane.f32.xlu1 %v2673_v27  ;;  %2913 = vadd.xlane.f32.xlu0 %v2912_v28 }
0x1197   : > { %v3146_v19 = vmul.f32 1.442695, %v3141_v60  ;;  %v8747_v30 = vpop.eup %7827 }
0x1198   : > { %v3371_v17 = vpop.xlane.xlu1 %3370  ;;  %v2676_v15 = vsel %vm1155_vm7, %v8747_v30, 0.0  ;;  %v8752_v33 = vpop.eup %7829 }
0x1199   : > { %7835 = vpow2.f32 %v3146_v19  ;;  %v3378_v32 = vsub.f32 %v8707_v31, %v3371_v17  ;;  %2677 = vadd.xlane.f32.xlu0 %v2676_v15  ;;  %v2915_v29 = vsel %vm1155_vm7, %v8752_v33, 0.0 }
0x119b   : > { %v3381_v35 = vmul.f32 1.442695, %v3378_v32  ;;  %v8756_v38 = vpop.eup %7831 }
0x119c   : > { %v3148_v36 = vsel %vm1148_vm6, %v8756_v38, 0.0  ;;  %v3374_v52 = vpop.xlane.xlu0 %3373 }
0x119d   : > { %7837 = vpow2.f32 %v3381_v35  ;;  %2916 = vadd.xlane.f32.xlu0 %v2915_v29  ;;  %v3379_v37 = vsub.f32 %v8711_v34, %v3374_v52 }
0x119f   : > { %v8758_v7 = vpop.eup %7833  ;;  %v3383_v4 = vmul.f32 1.442695, %v3379_v37 }
0x11a0   : > { %v3377_v21 = vpop.xlane.xlu1 %3376  ;;  %v3151_v31 = vsel %vm1148_vm6, %v8758_v7, 0.0  ;;  %v2690_v1 = vpop.permute.xlu0 %2689 }
0x11a1   : > { %3152 = vadd.xlane.f32.xlu1 %v3151_v31  ;;  %3149 = vadd.xlane.f32.xlu0 %v3148_v36  ;;  %v3380_v2 = vsub.f32 %v8715_v42, %v3377_v21  ;;  %7839 = vpow2.f32 %v3383_v4 }
0x11a3   : > { %v8764_v43 = vpop.eup %7835  ;;  %v3385_v9 = vmul.f32 1.442695, %v3380_v2 }
0x11a4   : > { %v7666_v46 = vpop.permute.xlu1 %7665  ;;  %v3154_v53 = vsel %vm1155_vm7, %v8764_v43, 0.0  ;;  %v7671_v34 = vpop.permute.xlu0 %7670 }
0x11a5   : > { %v7668_v55 = vunpack.i.h.bf16 %v7666_v46  ;;  %v7667_v56 = vunpack.i.l.bf16 %v7666_v46  ;;  %3155 = vadd.xlane.f32.xlu0 %v3154_v53  ;;  %7841 = vpow2.f32 %v3385_v9  ;;  %v7673_v22 = vunpack.i.h.bf16 %v7671_v34 }
0x11a6   : > { %v7672_v18 = vunpack.i.l.bf16 %v7671_v34 }
0x11a7   : > { %v8768_v61 = vpop.eup %7837  ;;  %v7423_v62 = vpack.c.bf16 %v7668_v55, %v7667_v56 }
0x11a8   : > { %v3387_v63 = vsel %vm1148_vm6, %v8768_v61, 0.0  ;;  %v7430_v26 = vpack.c.bf16 %v7673_v22, %v7672_v18 }
0x11a9   : > { %3388 = vadd.xlane.f32.xlu1 %v3387_v63  ;;  %7424 = vmatpush3.bf16.msra.mxu1 %v7423_v62 }
0x11aa   : > { %7022 = vmatprep.subr.mxu1 %v7960_v16 }
0x11ab   : > { %v8781_v45 = vpop.eup %7839 }
0x11ac   : > { %v3390_v14 = vsel %vm1148_vm6, %v8781_v45, 0.0 }
0x11ad   : > { %7023 = vmatpush3.msk.msra.mxu1 %vm1200_vm8, %v2690_v1 }
0x11ae   : > { %7429 = vmatprep.subr.bf16.mxu1 %v7957_v5 }
0x11af   : > { %v8783_v51 = vpop.eup %7841 }
0x11b0   : > { %v3393_v12 = vsel %vm1155_vm7, %v8783_v51, 0.0 }
0x11ba   : > { %2928 = vrot.lane.b32.xlu1 %v8594_v59, %s9621_s7 }
0x11bb   : > { %7675 = vrot.lane.b32.xlu0 %v8598_v20, %s9622_s30 }
0x11da   : > { %3391 = vadd.xlane.f32.xlu0 %v3390_v14 }
0x11de   : > { %3394 = vadd.xlane.f32.xlu1 %v3393_v12 }
0x11f0   : > { %3167 = vrot.lane.b32.xlu0 %v8594_v59, %s9622_s30  ;;  %s9625_s30 = smov 16  }
0x11f4   : > { %7680 = vrot.lane.b32.xlu0 %v8598_v20, %s9623_s11 }
0x11f8   : > { %3406 = vrot.lane.b32.xlu0 %v8594_v59, %s9623_s11  ;;  %s7974_s11 = smov 32  }
0x121a   : > { %v2672_v42 = vpop.xlane.xlu0 %2671 }
0x121b   : > { %7843 = vrcp.f32 %v2672_v42 }
0x121e   : > { %v2911_v57 = vpop.xlane.xlu1 %2910 }
0x1222   : > { %v2675_v58 = vpop.xlane.xlu1 %2674  ;;  %v2914_v11 = vpop.xlane.xlu0 %2913 }
0x1223   : > { %7845 = vrcp.f32 %v2675_v58 }
0x1225   : > { %v7844_v50 = vpop.eup %7843 }
0x1226   : > { %v2680_v24 = vmul.f32 %v7844_v50, %v8729_v10  ;;  %v2678_v23 = vpop.xlane.xlu0 %2677 }
0x1227   : > { %7847 = vrcp.f32 %v2678_v23 }
0x1228   : > { %7025 = vmatmul.mubr.msk.f32.vlgmr.msra.gmra.mrb[42].mxu1 %vm1148_vm6, %v2680_v24  ;;  %7849 = vrcp.f32 %v2911_v57 }
0x1229   : > { %7431 = vmatpush3.bf16.msra.mxu1 %v7430_v26  ;;  %7027 = vmatprep.mubr.msk.f32.mxu1 %vm7959_vm3, %v7960_v16  ;;  %7851 = vrcp.f32 %v2914_v11 }
0x122a   : > { %7052 = vmatprep.subr.mxu1 %v7960_v16  ;;  %v2917_v59 = vpop.xlane.xlu0 %2916 }
0x122b   : > { %7853 = vrcp.f32 %v2917_v59 }
0x122d   : > { %v7846_v20 = vpop.eup %7845 }
0x122e   : > { %v2682_v27 = vmul.f32 %v7846_v20, %v8737_v13  ;;  %v3150_v28 = vpop.xlane.xlu0 %3149  ;;  %v3153_v60 = vpop.xlane.xlu1 %3152 }
0x122f   : > { %7855 = vrcp.f32 %v3150_v28 }
0x1230   : > { %7028 = vmatmul.mubr.msk.f32.gmra.mrb[44].mxu1 %vm1148_vm6, %v2682_v27  ;;  %7857 = vrcp.f32 %v3153_v60 }
0x1231   : > { %7030 = vmatprep.mubr.msk.f32.mxu1 %vm7959_vm3, %v7960_v16  ;;  %v7848_v10 = vpop.eup %7847 }
0x1232   : > { %v3156_v19 = vpop.xlane.xlu0 %3155  ;;  %v2684_v17 = vmul.f32 %v7848_v10, %v8747_v30  ;;  %v7850_v13 = vpop.eup %7849 }
0x1233   : > { %v2919_v21 = vmul.f32 %v7850_v13, %v8733_v3  ;;  %v7852_v36 = vpop.eup %7851  ;;  %7859 = vrcp.f32 %v3156_v19  ;;  %v7726_v13 = vld [vmem:[%s9609_s8 + $0x18] sm:$0xff]  }
0x1234   : > { %7031 = vmatmul.mubr.msk.f32.gmra.mrb[46].mxu1 %vm1148_vm6, %v2684_v17  ;;  %v2921_v30 = vmul.f32 %v7852_v36, %v8740_v25 }
0x1235   : > { %7054 = vmatprep.mubr.msk.f32.mxu1 %vm7959_vm3, %v7960_v16  ;;  %v7854_v53 = vpop.eup %7853 }
0x1236   : > { %v3389_v32 = vpop.xlane.xlu1 %3388  ;;  %v7676_v15 = vpop.permute.xlu0 %7675  ;;  %v2923_v3 = vmul.f32 %v7854_v53, %v8752_v33 }
0x1237   : > { %v7678_v35 = vunpack.i.h.bf16 %v7676_v15  ;;  %v7677_v29 = vunpack.i.l.bf16 %v7676_v15  ;;  %7861 = vrcp.f32 %v3389_v32 }
0x1239   : > { %v7437_v46 = vpack.c.bf16 %v7678_v35, %v7677_v29  ;;  %v7856_v25 = vpop.eup %7855 }
0x123a   : > { %v2929_v31 = vpop.permute.xlu1 %2928  ;;  %v3158_v56 = vmul.f32 %v7856_v25, %v8756_v38  ;;  %v7858_v62 = vpop.eup %7857 }
0x123b   : > { %7053 = vmatpush3.msk.msra.mxu1 %vm1200_vm8, %v2929_v31  ;;  %v3160_v1 = vmul.f32 %v7858_v62, %v8758_v7 }
0x123c   : > { %7055 = vmatmul.mubr.msk.f32.vlgmr.msra.gmra.mrb[48].mxu1 %vm1148_vm6, %v2919_v21  ;;  %7436 = vmatprep.subr.bf16.mxu1 %v7957_v5 }
0x123d   : > { %7438 = vmatpush3.bf16.msra.mxu1 %v7437_v46  ;;  %7057 = vmatprep.mubr.msk.f32.mxu1 %vm7959_vm3, %v7960_v16  ;;  %v7860_v37 = vpop.eup %7859 }
0x123e   : > { %7082 = vmatprep.subr.mxu1 %v7960_v16  ;;  %v3162_v9 = vmul.f32 %v7860_v37, %v8764_v43 }
0x1240   : > { %7058 = vmatmul.mubr.msk.f32.gmra.mrb[50].mxu1 %vm1148_vm6, %v2921_v30 }
0x1241   : > { %7060 = vmatprep.mubr.msk.f32.mxu1 %vm7959_vm3, %v7960_v16  ;;  %v7862_v14 = vpop.eup %7861 }
0x1242   : > { %v3397_v7 = vmul.f32 %v7862_v14, %v8768_v61 }
0x1244   : > { %7061 = vmatmul.mubr.msk.f32.gmra.mrb[52].mxu1 %vm1148_vm6, %v2923_v3 }
0x1245   : > { %7084 = vmatprep.mubr.msk.f32.mxu1 %vm7959_vm3, %v7960_v16 }
0x1267   : > { %v3392_v55 = vpop.xlane.xlu0 %3391 }
0x1268   : > { %7863 = vrcp.f32 %v3392_v55 }
0x126b   : > { %v3168_v52 = vpop.permute.xlu0 %3167  ;;  %v3395_v33 = vpop.xlane.xlu1 %3394 }
0x126c   : > { %7083 = vmatpush3.msk.msra.mxu1 %vm1200_vm8, %v3168_v52  ;;  %7865 = vrcp.f32 %v3395_v33 }
0x126d   : > { %7085 = vmatmul.mubr.msk.f32.vlgmr.msra.gmra.mrb[54].mxu1 %vm1148_vm6, %v3158_v56  ;;  %7443 = vmatprep.subr.bf16.mxu1 %v7957_v5 }
0x126e   : > { %7087 = vmatprep.mubr.msk.f32.mxu1 %vm7959_vm3, %v7960_v16 }
0x126f   : > { %v7681_v63 = vpop.permute.xlu0 %7680 }
0x1270   : > { %v7683_v2 = vunpack.i.h.bf16 %v7681_v63  ;;  %v7682_v4 = vunpack.i.l.bf16 %v7681_v63 }
0x1271   : > { %7088 = vmatmul.mubr.msk.f32.gmra.mrb[56].mxu1 %vm1148_vm6, %v3160_v1 }
0x1272   : > { %v7444_v38 = vpack.c.bf16 %v7683_v2, %v7682_v4  ;;  %7090 = vmatprep.mubr.msk.f32.mxu1 %vm7959_vm3, %v7960_v16  ;;  %v7864_v34 = vpop.eup %7863 }
0x1273   : > { %v3407_v12 = vpop.permute.xlu0 %3406  ;;  %v3399_v43 = vmul.f32 %v7864_v34, %v8781_v45 }
0x1274   : > { %7445 = vmatpush3.bf16.msra.mxu1 %v7444_v38 }
0x1275   : > { %7091 = vmatmul.mubr.msk.f32.gmra.mrb[58].mxu1 %vm1148_vm6, %v3162_v9  ;;  %7112 = vmatprep.subr.mxu1 %v7960_v16 }
0x1276   : > { %7114 = vmatprep.mubr.msk.f32.mxu1 %vm7959_vm3, %v7960_v16  ;;  %v7866_v42 = vpop.eup %7865 }
0x1277   : > { %v3401_v57 = vmul.f32 %v7866_v42, %v8783_v51  ;;  %v7725_v51 = vld [vmem:[%s9609_s8 + $0x10] sm:$0xff]   ;;  %s7976_s8 = smov 97  }
0x1278   : > { %7113 = vmatpush3.msk.msra.mxu1 %vm1200_vm8, %v3407_v12  ;;  %7123 = vmatprep.subr.bf16.mxu0 %v7725_v51 }
0x1279   : > { %7115 = vmatmul.mubr.msk.f32.vlgmr.msra.gmra.mrb[60].mxu1 %vm1148_vm6, %v3397_v7  ;;  %7124 = vmatpush3.bf16.msra.mxu0 %v7725_v51 }
0x127a   : > { %7117 = vmatprep.mubr.msk.f32.mxu1 %vm7959_vm3, %v7960_v16  ;;  %7125 = vmatprep.subr.bf16.mxu0 %v7726_v13 }
0x127d   : > { %7118 = vmatmul.mubr.msk.f32.gmra.mrb[62].mxu1 %vm1148_vm6, %v3399_v43  ;;  %7126 = vmatpush3.bf16.msra.mxu0 %v7726_v13 }
0x127e   : > { %7120 = vmatprep.mubr.msk.f32.mxu1 %vm7959_vm3, %v7960_v16 }
0x1281   : > { %7121 = vmatmul.mubr.msk.f32.gmra.mrb[64].mxu1 %vm1148_vm6, %v3401_v57 }
0x12fb   : > { %v2770_v61 = vpop.f32.mrb[42].mxu1 }
0x12fc   : > { %v7026_v58 = vpop.f32.mrb[43].mxu1 }
0x1303   : > { %v2775_v11 = vpop.f32.mrb[44].mxu1 }
0x1304   : > { %v7029_v22 = vpop.f32.mrb[45].mxu1 }
0x1307   : > { %v2780_v18 = vpop.f32.mrb[46].mxu1 }
0x1308   : > { %v7032_v50 = vpop.f32.mrb[47].mxu1 }
0x130f   : > { %v3009_v24 = vpop.f32.mrb[48].mxu1 }
0x1310   : > { %v7056_v26 = vpop.f32.mrb[49].mxu1 }
0x1313   : > { %v3014_v23 = vpop.f32.mrb[50].mxu1 }
0x1314   : > { %v7684_v45 = vpack.i.bf16 %v3014_v23, %v3009_v24  ;;  %v7059_v59 = vpop.f32.mrb[51].mxu1 }
0x1316   : > { %7685 = vrot.lane.b32.xlu0 %v7684_v45, %s9624_s2 }
0x1317   : > { %v3019_v20 = vpop.f32.mrb[52].mxu1 }
0x1318   : > { %3508 = vrot.lane.b32.xlu1 %v3019_v20, %s9624_s2  ;;  %v7062_v27 = vpop.f32.mrb[53].mxu1  ;;  %s9626_s2 = smov 24  }
0x1340   : > { %v3248_v28 = vpop.f32.mrb[54].mxu1 }
0x1341   : > { %v7086_v10 = vpop.f32.mrb[55].mxu1 }
0x1344   : > { %v3253_v60 = vpop.f32.mrb[56].mxu1 }
0x1345   : > { %v7689_v19 = vpack.i.bf16 %v3253_v60, %v3248_v28  ;;  %v7089_v17 = vpop.f32.mrb[57].mxu1 }
0x1347   : > { %7690 = vrot.lane.b32.xlu0 %v7689_v19, %s9625_s30 }
0x1348   : > { %v3258_v32 = vpop.f32.mrb[58].mxu1 }
0x1349   : > { %v7092_v15 = vpop.f32.mrb[59].mxu1 }
0x134b   : > { %3520 = vrot.lane.b32.xlu0 %v3258_v32, %s9625_s30 }
0x134c   : > { %v3487_v35 = vpop.f32.mrb[60].mxu1 }
0x134d   : > { %v7116_v29 = vpop.f32.mrb[61].mxu1 }
0x1350   : > { %v3492_v21 = vpop.f32.mrb[62].mxu1 }
0x1351   : > { %v7694_v31 = vpack.i.bf16 %v3492_v21, %v3487_v35  ;;  %v7119_v36 = vpop.f32.mrb[63].mxu1 }
0x1353   : > { %7695 = vrot.lane.b32.xlu0 %v7694_v31, %s9626_s2 }
0x1354   : > { %v3497_v46 = vpop.f32.mrb[64].mxu1 }
0x1355   : > { %v7122_v30 = vpop.f32.mrb[65].mxu1 }
0x1357   : > { %3532 = vrot.lane.b32.xlu0 %v3497_v46, %s9626_s2  ;;  %s7977_s2 = smov 98  }
0x1388   : > { %v7686_v53 = vpop.permute.xlu0 %7685 }
0x1389   : > { %v7688_v25 = vunpack.i.h.bf16 %v7686_v53  ;;  %v7687_v56 = vunpack.i.l.bf16 %v7686_v53 }
0x138a   : > { %v3509_v33 = vpop.permute.xlu1 %3508 }
0x138b   : > { %v3538_v1 = vsel %vm1052_vm4, %v2775_v11, %v7688_v25  ;;  %v3537_v37 = vsel %vm1052_vm4, %v2770_v61, %v7687_v56  ;;  %v3539_v14 = vsel %vm1052_vm4, %v2780_v18, %v3509_v33  ;;  %v3625_v11 = vrot.slane %v8581_v40, %v8467_v41 }
0x138c   : > { %vm6200_vm4 = vcmask 23552  }
0x13b9   : > { %v7691_v3 = vpop.permute.xlu0 %7690 }
0x13ba   : > { %v7693_v52 = vunpack.i.h.bf16 %v7691_v3  ;;  %v7692_v62 = vunpack.i.l.bf16 %v7691_v3  ;;  %v7727_v3 = vld [vmem:[%s9610_s3 + $0x10] sm:$0xff]  }
0x13bb   : > { %7131 = vmatprep.subr.bf16.mxu1 %v7727_v3 }
0x13bc   : > { %v3541_v38 = vsel %vm2039_vm9, %v3538_v1, %v7693_v52  ;;  %v3540_v9 = vsel %vm2039_vm9, %v3537_v37, %v7692_v62  ;;  %7132 = vmatpush3.bf16.msra.mxu1 %v7727_v3 }
0x13bd   : > { %v3521_v55 = vpop.permute.xlu0 %3520 }
0x13be   : > { %v3542_v34 = vsel %vm2039_vm9, %v3539_v14, %v3521_v55  ;;  %v7728_v55 = vld [vmem:[%s9610_s3 + $0x18] sm:$0xff]  }
0x13bf   : > { %7133 = vmatprep.subr.bf16.mxu1 %v7728_v55 }
0x13c0   : > { %7134 = vmatpush3.bf16.msra.mxu1 %v7728_v55 }
0x13c5   : > { %v7696_v63 = vpop.permute.xlu0 %7695 }
0x13c6   : > { %v7698_v2 = vunpack.i.h.bf16 %v7696_v63  ;;  %v7697_v4 = vunpack.i.l.bf16 %v7696_v63 }
0x13c8   : > { %v3544_v7 = vsel %vm2043_vm10, %v3541_v38, %v7698_v2  ;;  %v3543_v12 = vsel %vm2043_vm10, %v3540_v9, %v7697_v4  ;;  %v3671_v4 = vrot.slane %v8581_v40, %v8499_v44 }
0x13c9   : > { %v3551_v43 = vpack.c.bf16 %v3544_v7, %v3543_v12  ;;  %v3533_v42 = vpop.permute.xlu0 %3532 }
0x13ca   : > { %v3545_v57 = vsel %vm2043_vm10, %v3542_v34, %v3533_v42  ;;  %v3678_v34 = vrot.slane %v8581_v40, %v8509_v47  ;;  %v7730_v40 = vld [vmem:[%s9611_s0 + $0x48] sm:$0xff]  }
0x13cb   : > { %v3552_v58 = vpack.c.bf16 %v3545_v57, %v3545_v57  ;;  %7127 = vmatprep.mubr.msk.bf16.mxu0 %vm908_vm2, %v3551_v43 }
0x13cd   : > { %7128 = vmatmul.mubr.msk.bf16.vlgmr.msra.gmra.mrb[56].mxu0 %vm908_vm2, %v3552_v58 }
0x14a0   : > { %v7129_v61 = vpop.f32.mrb[56].mxu0 }
0x14a1   : > { %v3605_v22 = vpop.f32.mrb[57].mxu0  ;;  %v3621_v18 = vadd.f32 %v7129_v61, %v8555_v0 }
0x14a2   : > { %v3619_v50 = vadd.f32 %v3605_v22, %v8552_v6  ;;  %v7130_v24 = vpop.f32.mrb[58].mxu0 }
0x14a3   : > { %v3608_v26 = vpop.f32.mrb[59].mxu0  ;;  %v8879_v59 = vadd.f32 %v3625_v11, %v3621_v18  ;;  %v7729_v24 = vld [vmem:[%s9611_s0 + $0x40] sm:$0xff]  }
0x14a4   : > { %v8876_v23 = vadd.f32 %v3625_v11, %v3619_v50  ;;  %v3620_v45 = vadd.f32 %v3608_v26, %v8557_v8  ;;  %7139 = vmatprep.subr.bf16.mxu0 %v7729_v24  ;;  %v7731_v26 = vld [vmem:[%s9611_s0 + $0x50] sm:$0xff]  }
0x14a5   : > { %v3635_v28 = vsel %vm915_vm1, %v8879_v59, 0.0  ;;  %7140 = vmatpush3.bf16.msra.mxu0 %v7729_v24 }
0x14a6   : > { %v8881_v20 = vadd.f32 %v3625_v11, %v3620_v45  ;;  %v3629_v27 = vsel %vm908_vm2, %v8876_v23, 0.0  ;;  %7141 = vmatprep.subr.bf16.mxu0 %v7730_v40  ;;  %v7732_v45 = vld [vmem:[%s9611_s0 + $0x58] sm:$0xff]  }
0x14a7   : > { %3630 = vadd.xlane.f32.xlu0 %v3629_v27  ;;  %v7733_v27 = vld [vmem:[%s9611_s0 + $0x60] sm:$0xff]  }
0x14a8   : > { %v3632_v51 = vsel %vm908_vm2, %v8881_v20, 0.0 }
0x14a9   : > { %3633 = vadd.xlane.f32.xlu1 %v3632_v51  ;;  %7142 = vmatpush3.bf16.msra.mxu0 %v7730_v40  ;;  %v7734_v51 = vld [vmem:[%s9611_s0 + $0x68] sm:$0xff]  }
0x14aa   : > { %7143 = vmatprep.subr.bf16.mxu0 %v7731_v26 }
0x14ab   : > { %3636 = vadd.xlane.f32.xlu0 %v3635_v28  ;;  %v7735_v28 = vld [vmem:[%s9611_s0 + $0x70] sm:$0xff]  }
0x14ad   : > { %7144 = vmatpush3.bf16.msra.mxu0 %v7731_v26 }
0x14ae   : > { %7145 = vmatprep.subr.bf16.mxu0 %v7732_v45 }
0x14b1   : > { %7146 = vmatpush3.bf16.msra.mxu0 %v7732_v45 }
0x14b2   : > { %7147 = vmatprep.subr.bf16.mxu0 %v7733_v27 }
0x14b5   : > { %7148 = vmatpush3.bf16.msra.mxu0 %v7733_v27 }
0x14b6   : > { %7149 = vmatprep.subr.bf16.mxu0 %v7734_v51 }
0x14b9   : > { %7150 = vmatpush3.bf16.msra.mxu0 %v7734_v51 }
0x14ba   : > { %7151 = vmatprep.subr.bf16.mxu0 %v7735_v28 }
0x14bd   : > { %7152 = vmatpush3.bf16.msra.mxu0 %v7735_v28 }
0x1534   : > { %v3631_v10 = vpop.xlane.xlu0 %3630 }
0x1535   : > { %v3638_v60 = vmul.f32 0.03125, %v3631_v10  ;;  %v7736_v10 = vld [vmem:[%s9611_s0 + $0x78] sm:$0xff]  }
0x1536   : > { %v3634_v19 = vpop.xlane.xlu1 %3633  ;;  %7153 = vmatprep.subr.bf16.mxu0 %v7736_v10 }
0x1537   : > { %v3641_v17 = vsub.f32 %v8876_v23, %v3638_v60  ;;  %v3639_v32 = vmul.f32 0.03125, %v3634_v19  ;;  %7154 = vmatpush3.bf16.msra.mxu0 %v7736_v10  ;;  %v6481_v60 = vld [vmem:[%s9612_s28 + $0x1] ss:$0 sm:$0xff] }
0x1538   : > { %v3637_v13 = vpop.xlane.xlu0 %3636  ;;  %7476 = vmatprep.subr.bf16.mxu0 %v7957_v5 }
0x1539   : > { %v3642_v15 = vsub.f32 %v8881_v20, %v3639_v32  ;;  %v3640_v35 = vmul.f32 0.03125, %v3637_v13  ;;  %v3644_v29 = vmul.f32 %v3641_v17, %v3641_v17 }
0x153b   : > { %v3643_v21 = vsub.f32 %v8879_v59, %v3640_v35  ;;  %v3647_v31 = vsel %vm908_vm2, %v3644_v29, 0.0  ;;  %v3645_v36 = vmul.f32 %v3642_v15, %v3642_v15 }
0x153c   : > { %3648 = vadd.xlane.f32.xlu0 %v3647_v31 }
0x153d   : > { %v3650_v46 = vsel %vm908_vm2, %v3645_v36, 0.0  ;;  %v3646_v30 = vmul.f32 %v3643_v21, %v3643_v21 }
0x153e   : > { %3651 = vadd.xlane.f32.xlu1 %v3650_v46 }
0x153f   : > { %v3653_v53 = vsel %vm915_vm1, %v3646_v30, 0.0 }
0x1540   : > { %3654 = vadd.xlane.f32.xlu0 %v3653_v53 }
0x15c9   : > { %v3649_v25 = vpop.xlane.xlu0 %3648 }
0x15ca   : > { %v3656_v56 = vmul.f32 0.03125, %v3649_v25 }
0x15cb   : > { %v3652_v52 = vpop.xlane.xlu1 %3651 }
0x15cc   : > { %v3659_v62 = vadd.f32 1e-05, %v3656_v56  ;;  %v3657_v33 = vmul.f32 0.03125, %v3652_v52 }
0x15cd   : > { %v3655_v63 = vpop.xlane.xlu0 %3654 }
0x15ce   : > { %7867 = vrsqrt.f32 %v3659_v62  ;;  %v3660_v1 = vadd.f32 1e-05, %v3657_v33  ;;  %v3658_v37 = vmul.f32 0.03125, %v3655_v63 }
0x15d0   : > { %7869 = vrsqrt.f32 %v3660_v1  ;;  %v3661_v2 = vadd.f32 1e-05, %v3658_v37 }
0x15d2   : > { %7871 = vrsqrt.f32 %v3661_v2 }
0x15d8   : > { %v7868_v38 = vpop.eup %7867 }
0x15d9   : > { %v3665_v9 = vmul.f32 %v7868_v38, %v3641_v17 }
0x15da   : > { %v7870_v14 = vpop.eup %7869 }
0x15db   : > { %v3666_v7 = vmul.f32 %v7870_v14, %v3642_v15  ;;  %v3672_v12 = vmul.f32 %v3671_v4, %v3665_v9 }
0x15dc   : > { %v7872_v43 = vpop.eup %7871 }
0x15dd   : > { %v3667_v42 = vmul.f32 %v7872_v43, %v3643_v21  ;;  %v3673_v57 = vmul.f32 %v3671_v4, %v3666_v7  ;;  %v3679_v61 = vadd.f32 %v3678_v34, %v3672_v12 }
0x15df   : > { %v3674_v58 = vmul.f32 %v3671_v4, %v3667_v42  ;;  %v3680_v11 = vadd.f32 %v3678_v34, %v3673_v57 }
0x15e1   : > { %v3689_v22 = vpack.c.bf16 %v3680_v11, %v3679_v61  ;;  %v3681_v18 = vadd.f32 %v3678_v34, %v3674_v58 }
0x15e3   : > { %7135 = vmatprep.mubr.msk.bf16.mxu1 %vm908_vm2, %v3689_v22  ;;  %v3690_v50 = vpack.c.bf16 %v3681_v18, %v3681_v18  ;;  %v7948_v22 = vld [vmem:[%s9605_s5 + $0x8] sm:$0x3f]  ;;  %s9485_s5 = scalar_lea.vmem %s9540_s27, %s6565_s1 }
0x15e4   : > { %v3911_v18 = vrot.slane %v7948_v22, %v8546_v39 }
0x15e5   : > { %7136 = vmatmul.mubr.msk.bf16.vlgmr.msra.gmra.mrb[68].mxu1 %vm908_vm2, %v3690_v50 }
0x16b8   : > { %v7137_v19 = vpop.f32.mrb[68].mxu1 }
0x16b9   : > { %v3758_v17 = vadd.f32 %v7137_v19, %v6481_v60  ;;  %v3749_v32 = vpop.f32.mrb[69].mxu1 }
0x16ba   : > { %v3750_v13 = vadd.f32 %v6481_v60, %v3749_v32  ;;  %v7138_v15 = vpop.f32.mrb[70].mxu1 }
0x16bb   : > { %v3765_v35 = vmul.f32 %v3758_v17, %v3758_v17  ;;  %v3752_v29 = vpop.f32.mrb[71].mxu1 }
0x16bc   : > { %v3763_v21 = vmul.f32 %v3750_v13, %v3750_v13  ;;  %v3753_v31 = vadd.f32 %v6481_v60, %v3752_v29 }
0x16bd   : > { %v3768_v36 = vmul.f32 %v3765_v35, %v3758_v17 }
0x16be   : > { %v3766_v46 = vmul.f32 %v3763_v21, %v3750_v13  ;;  %v3764_v30 = vmul.f32 %v3753_v31, %v3753_v31 }
0x16bf   : > { %v3771_v53 = vmul.f32 0.044715, %v3768_v36 }
0x16c0   : > { %v3769_v3 = vmul.f32 0.044715, %v3766_v46  ;;  %v3767_v55 = vmul.f32 %v3764_v30, %v3753_v31 }
0x16c1   : > { %v3774_v25 = vadd.f32 %v3771_v53, %v3758_v17 }
0x16c2   : > { %v3772_v56 = vadd.f32 %v3769_v3, %v3750_v13  ;;  %v3770_v52 = vmul.f32 0.044715, %v3767_v55 }
0x16c3   : > { %v3777_v62 = vmul.f32 0.7978846, %v3774_v25 }
0x16c4   : > { %v3775_v33 = vmul.f32 0.7978846, %v3772_v56  ;;  %v3773_v63 = vadd.f32 %v3770_v52, %v3753_v31 }
0x16c5   : > { %7873 = vtanh.f32 %v3777_v62 }
0x16c6   : > { %7875 = vtanh.f32 %v3775_v33  ;;  %v3776_v1 = vmul.f32 0.7978846, %v3773_v63 }
0x16c8   : > { %7877 = vtanh.f32 %v3776_v1 }
0x16cf   : > { %v7874_v37 = vpop.eup %7873 }
0x16d0   : > { %v7876_v2 = vpop.eup %7875  ;;  %v3783_v4 = vadd.f32 1.0, %v7874_v37 }
0x16d1   : > { %v3781_v38 = vadd.f32 1.0, %v7876_v2  ;;  %v3915_v2 = vld [vmem:[%s9627_s10] sm:$0x3] }
0x16d2   : > { %v7878_v9 = vpop.eup %7877  ;;  %v3786_v14 = vmul.f32 0.5, %v3783_v4  ;;  %v3958_v4 = vrot.slane %v3915_v2, %v8178_v49 }
0x16d3   : > { %v3782_v7 = vadd.f32 1.0, %v7878_v9  ;;  %v3784_v12 = vmul.f32 0.5, %v3781_v38 }
0x16d4   : > { %v3789_v43 = vmul.f32 %v3786_v14, %v3758_v17  ;;  %v3965_v14 = vrot.slane %v3915_v2, %v8188_v54 }
0x16d5   : > { %v3785_v34 = vmul.f32 0.5, %v3782_v7  ;;  %v3787_v42 = vmul.f32 %v3784_v12, %v3750_v13 }
0x16d6   : > { %v3808_v61 = vpack.c.bf16 %v3789_v43, %v3789_v43 }
0x16d7   : > { %v3788_v57 = vmul.f32 %v3785_v34, %v3753_v31 }
0x16d9   : > { %v3807_v58 = vpack.c.bf16 %v3788_v57, %v3787_v42 }
0x16db   : > { %7155 = vmatprep.mubr.bf16.mxu0 %v3807_v58 }
0x16dc   : > { %7156 = vmatmul.mubr.bf16.vlgmr.msra.gmra.mrb[60].mxu0 %v3808_v61 }
0x16dd   : > { %7207 = vmatprep.mubr.msk.f32.mxu0 %vm7959_vm3, %v7960_v16 }
0x17af   : > { %v7157_v11 = vpop.f32.mrb[60].mxu0 }
0x17b0   : > { %v3891_v50 = vpop.f32.mrb[61].mxu0  ;;  %v3907_v24 = vadd.f32 %v7157_v11, %v8879_v59 }
0x17b1   : > { %v3905_v40 = vadd.f32 %v3891_v50, %v8876_v23  ;;  %v7158_v26 = vpop.f32.mrb[62].mxu0 }
0x17b2   : > { %v3894_v45 = vpop.f32.mrb[63].mxu0  ;;  %v3914_v28 = vadd.f32 %v3911_v18, %v3907_v24 }
0x17b3   : > { %v3912_v27 = vadd.f32 %v3911_v18, %v3905_v40  ;;  %v3906_v51 = vadd.f32 %v3894_v45, %v8881_v20 }
0x17b4   : > { %v3922_v17 = vsel %vm915_vm1, %v3914_v28, 0.0 }
0x17b5   : > { %v3913_v10 = vadd.f32 %v3911_v18, %v3906_v51  ;;  %v3916_v60 = vsel %vm908_vm2, %v3912_v27, 0.0 }
0x17b6   : > { %3917 = vadd.xlane.f32.xlu1 %v3916_v60 }
0x17b7   : > { %v3919_v19 = vsel %vm908_vm2, %v3913_v10, 0.0 }
0x17b8   : > { %3920 = vadd.xlane.f32.xlu0 %v3919_v19 }
0x17ba   : > { %3923 = vadd.xlane.f32.xlu1 %v3922_v17 }
0x1843   : > { %v3918_v32 = vpop.xlane.xlu1 %3917 }
0x1844   : > { %v3925_v59 = vmul.f32 0.03125, %v3918_v32 }
0x1845   : > { %v3921_v13 = vpop.xlane.xlu0 %3920 }
0x1846   : > { %v3928_v23 = vsub.f32 %v3912_v27, %v3925_v59  ;;  %v3926_v15 = vmul.f32 0.03125, %v3921_v13 }
0x1847   : > { %v3924_v35 = vpop.xlane.xlu1 %3923 }
0x1848   : > { %v3929_v29 = vsub.f32 %v3913_v10, %v3926_v15  ;;  %v3927_v21 = vmul.f32 0.03125, %v3924_v35  ;;  %v3931_v20 = vmul.f32 %v3928_v23, %v3928_v23 }
0x184a   : > { %v3930_v31 = vsub.f32 %v3914_v28, %v3927_v21  ;;  %v3934_v36 = vsel %vm908_vm2, %v3931_v20, 0.0  ;;  %v3932_v46 = vmul.f32 %v3929_v29, %v3929_v29  ;;  %v4031_v20 = vld [vmem:[%s9628_s6] sm:$0xff] }
0x184b   : > { %3935 = vadd.xlane.f32.xlu0 %v3934_v36 }
0x184c   : > { %v3937_v30 = vsel %vm908_vm2, %v3932_v46, 0.0  ;;  %v3933_v53 = vmul.f32 %v3930_v31, %v3930_v31  ;;  %v4033_v46 = vld [vmem:[%s9628_s6 + $0x10] sm:$0xff] }
0x184d   : > { %3938 = vadd.xlane.f32.xlu1 %v3937_v30  ;;  %v4034_v30 = vld [vmem:[%s9628_s6 + $0x18] sm:$0xff] }
0x184e   : > { %v3940_v3 = vsel %vm915_vm1, %v3933_v53, 0.0  ;;  %v7450_v53 = vpack.c.bf16 %v4034_v30, %v4033_v46 }
0x184f   : > { %3941 = vadd.xlane.f32.xlu0 %v3940_v3  ;;  %v6512_v3 = vld [vmem:[%s9628_s6 + $0x20] sm:$0xff] }
0x18d8   : > { %v3936_v55 = vpop.xlane.xlu0 %3935 }
0x18d9   : > { %v3943_v25 = vmul.f32 0.03125, %v3936_v55  ;;  %v6513_v55 = vld [vmem:[%s9628_s6 + $0x28] sm:$0xff] }
0x18da   : > { %v3939_v56 = vpop.xlane.xlu1 %3938 }
0x18db   : > { %v3946_v52 = vadd.f32 1e-05, %v3943_v25  ;;  %v3944_v62 = vmul.f32 0.03125, %v3939_v56  ;;  %v7454_v25 = vpack.c.bf16 %v6513_v55, %v6512_v3 }
0x18dc   : > { %v3942_v33 = vpop.xlane.xlu0 %3941 }
0x18dd   : > { %7879 = vrsqrt.f32 %v3946_v52  ;;  %v3947_v63 = vadd.f32 1e-05, %v3944_v62  ;;  %v3945_v1 = vmul.f32 0.03125, %v3942_v33 }
0x18df   : > { %7881 = vrsqrt.f32 %v3947_v63  ;;  %v3948_v37 = vadd.f32 1e-05, %v3945_v1 }
0x18e1   : > { %7883 = vrsqrt.f32 %v3948_v37 }
0x18e7   : > { %v7880_v38 = vpop.eup %7879 }
0x18e8   : > { %v3952_v9 = vmul.f32 %v7880_v38, %v3928_v23  ;;  %v8994_v38 = vld [vmem:[%s9533_s20] sm:$0xff] }
0x18e9   : > { %v7882_v7 = vpop.eup %7881 }
0x18ea   : > { %v3959_v12 = vmul.f32 %v3958_v4, %v3952_v9  ;;  %v3953_v34 = vmul.f32 %v7882_v7, %v3929_v29  ;;  %v4020_v9 = vrot.slane %v8994_v38, %v8178_v49 }
0x18eb   : > { %v7884_v43 = vpop.eup %7883 }
0x18ec   : > { %v8955_v42 = vadd.f32 %v3965_v14, %v3959_v12  ;;  %v3960_v57 = vmul.f32 %v3958_v4, %v3953_v34  ;;  %v3954_v58 = vmul.f32 %v7884_v43, %v3930_v31  ;;  %v4032_v31 = vld [vmem:[%s9628_s6 + $0x8] sm:$0xff]  ;;  %v4027_v12 = vrot.slane %v8994_v38, %v8188_v54 }
0x18ed   : > { %v7446_v36 = vpack.c.bf16 %v4032_v31, %v4031_v20 }
0x18ee   : > { %v3969_v61 = vadd.f32 %v8955_v42, %v8552_v6  ;;  %v8959_v11 = vadd.f32 %v3965_v14, %v3960_v57  ;;  %v3961_v22 = vmul.f32 %v3958_v4, %v3954_v58 }
0x18ef   : > { %7447 = vmatprep.subr.bf16.mxu1 %v7446_v36 }
0x18f0   : > { %v3972_v18 = vmul.f32 0.5, %v3969_v61  ;;  %v3970_v50 = vadd.f32 %v8959_v11, %v8557_v8  ;;  %v8963_v24 = vadd.f32 %v3965_v14, %v3961_v22  ;;  %7449 = vmatpush3.bf16.msra.mxu1 %v7446_v36  ;;  %v9020_v36 = vld [vmem:[%s9534_s21] sm:$0xf] }
0x18f1   : > { %7451 = vmatprep.subr.bf16.mxu1 %v7450_v53  ;;  %v4345_v30 = vsel %vm4344_vm13, %v9020_v36, 0.0 }
0x18f2   : > { %v3978_v40 = vsel %vm3977_vm11, %v3972_v18, 0.0  ;;  %v3973_v26 = vmul.f32 0.5, %v3970_v50  ;;  %v3971_v45 = vadd.f32 %v8963_v24, %v8555_v0 }
0x18f3   : > { %3979 = vadd.xlane.f32.xlu1 %v3978_v40 }
0x18f4   : > { %v3981_v27 = vsel %vm908_vm2, %v3973_v26, 0.0  ;;  %v3974_v6 = vmul.f32 0.5, %v3971_v45  ;;  %7453 = vmatpush3.bf16.msra.mxu1 %v7450_v53 }
0x18f5   : > { %3982 = vadd.xlane.f32.xlu0 %v3981_v27  ;;  %7455 = vmatprep.subr.bf16.mxu1 %v7454_v25 }
0x18f6   : > { %v3984_v51 = vsel %vm915_vm1, %v3974_v6, 0.0 }
0x18f7   : > { %3985 = vadd.xlane.f32.xlu1 %v3984_v51 }
0x1980   : > { %v3980_v28 = vpop.xlane.xlu1 %3979 }
0x1981   : > { %v3987_v10 = vmul.f32 0.03125, %v3980_v28 }
0x1982   : > { %v3983_v60 = vpop.xlane.xlu0 %3982 }
0x1983   : > { %v3990_v8 = vsub.f32 %v3972_v18, %v3987_v10  ;;  %v3988_v19 = vmul.f32 0.03125, %v3983_v60  ;;  %v6514_v10 = vld [vmem:[%s9628_s6 + $0x30] sm:$0xff]  ;;  %v6515_v60 = vld [vmem:[%s9628_s6 + $0x38] sm:$0xff] }
0x1984   : > { %v3986_v17 = vpop.xlane.xlu1 %3985 }
0x1985   : > { %v3991_v32 = vsub.f32 %v3973_v26, %v3988_v19  ;;  %v3989_v59 = vmul.f32 0.03125, %v3986_v17  ;;  %v3993_v13 = vmul.f32 %v3990_v8, %v3990_v8  ;;  %v4038_v19 = vrot.slane %v8994_v38, %v8499_v44 }
0x1987   : > { %v3992_v23 = vsub.f32 %v3974_v6, %v3989_v59  ;;  %v3996_v0 = vsel %vm3977_vm11, %v3993_v13, 0.0  ;;  %v3994_v15 = vmul.f32 %v3991_v32, %v3991_v32 }
0x1988   : > { %3997 = vadd.xlane.f32.xlu0 %v3996_v0 }
0x1989   : > { %v3999_v35 = vsel %vm908_vm2, %v3994_v15, 0.0  ;;  %v3995_v29 = vmul.f32 %v3992_v23, %v3992_v23  ;;  %v4137_v15 = vrot.slane %v8994_v38, %v8509_v47 }
0x198a   : > { %4000 = vadd.xlane.f32.xlu1 %v3999_v35 }
0x198b   : > { %v4002_v21 = vsel %vm915_vm1, %v3995_v29, 0.0  ;;  %vm6194_vm1 = vcmask 7168  }
0x198c   : > { %4003 = vadd.xlane.f32.xlu0 %v4002_v21 }
0x1a15   : > { %v3998_v56 = vpop.xlane.xlu0 %3997 }
0x1a16   : > { %v4005_v52 = vmul.f32 0.03125, %v3998_v56 }
0x1a17   : > { %v4001_v62 = vpop.xlane.xlu1 %4000 }
0x1a18   : > { %v4008_v33 = vadd.f32 1e-05, %v4005_v52  ;;  %v4006_v63 = vmul.f32 0.03125, %v4001_v62 }
0x1a19   : > { %v4004_v1 = vpop.xlane.xlu0 %4003 }
0x1a1a   : > { %7885 = vrsqrt.f32 %v4008_v33  ;;  %v4009_v37 = vadd.f32 1e-05, %v4006_v63  ;;  %v4007_v2 = vmul.f32 0.03125, %v4004_v1 }
0x1a1c   : > { %7887 = vrsqrt.f32 %v4009_v37  ;;  %v4010_v4 = vadd.f32 1e-05, %v4007_v2 }
0x1a1e   : > { %7889 = vrsqrt.f32 %v4010_v4 }
0x1a24   : > { %v7886_v14 = vpop.eup %7885 }
0x1a25   : > { %v4014_v7 = vmul.f32 %v7886_v14, %v3990_v8  ;;  %v7458_v8 = vpack.c.bf16 %v6515_v60, %v6514_v10 }
0x1a26   : > { %v7888_v34 = vpop.eup %7887 }
0x1a27   : > { %v4015_v43 = vmul.f32 %v7888_v34, %v3991_v32  ;;  %v4021_v57 = vmul.f32 %v4020_v9, %v4014_v7  ;;  %v4257_v7 = vld [vmem:[%s9525_s12] sm:$0xff] }
0x1a28   : > { %v7890_v58 = vpop.eup %7889 }
0x1a29   : > { %v4016_v61 = vmul.f32 %v7890_v58, %v3992_v23  ;;  %v4022_v22 = vmul.f32 %v4020_v9, %v4015_v43  ;;  %v4028_v18 = vadd.f32 %v4027_v12, %v4021_v57  ;;  %v4259_v43 = vld [vmem:[%s9525_s12 + $0x10] sm:$0xff]  ;;  %v4260_v57 = vld [vmem:[%s9525_s12 + $0x18] sm:$0xff] }
0x1a2a   : > { %v7466_v58 = vpack.c.bf16 %v4260_v57, %v4259_v43 }
0x1a2b   : > { %v4029_v50 = vadd.f32 %v4027_v12, %v4022_v22  ;;  %v4023_v40 = vmul.f32 %v4020_v9, %v4016_v61  ;;  %v4043_v26 = vrot.slane %v4028_v18, 1 }
0x1a2d   : > { %v4044_v45 = vrot.slane %v4029_v50, 1  ;;  %v4030_v27 = vadd.f32 %v4027_v12, %v4023_v40  ;;  %v4258_v12 = vld [vmem:[%s9525_s12 + $0x8] sm:$0xff] }
0x1a2e   : > { %v7462_v34 = vpack.c.bf16 %v4258_v12, %v4257_v7 }
0x1a2f   : > { %v4045_v6 = vsel %vm4042_vm12, %v4043_v26, %v4044_v45  ;;  %v4046_v51 = vrot.slane %v4030_v27, 1 }
0x1a30   : > { %7167 = vmatprep.mubr.msk.f32.mxu1 %vm908_vm2, %v4045_v6 }
0x1a31   : > { %v4047_v28 = vsel %vm4042_vm12, %v4044_v45, %v4046_v51  ;;  %v4248_v51 = vrot.slane %v8994_v38, %v8467_v41 }
0x1a32   : > { %7168 = vmatmul.mubr.msk.f32.vlgmr.msra.gmra.mrb[66].mxu1 %vm908_vm2, %v4047_v28 }
0x1a33   : > { %7457 = vmatpush3.bf16.msra.mxu1 %v7454_v25 }
0x1a34   : > { %7459 = vmatprep.subr.bf16.mxu1 %v7458_v8 }
0x1a37   : > { %7461 = vmatpush3.bf16.msra.mxu1 %v7458_v8 }
0x1a38   : > { %7463 = vmatprep.subr.bf16.mxu1 %v7462_v34 }
0x1b05   : > { %v7169_v17 = vpop.f32.mrb[66].mxu1 }
0x1b06   : > { %v4124_v32 = vadd.f32 %v7169_v17, %v4038_v19  ;;  %v4118_v59 = vpop.f32.mrb[67].mxu1 }
0x1b07   : > { %v4119_v13 = vadd.f32 %v4118_v59, %v4038_v19  ;;  %v4254_v19 = vrot.slane %v8994_v38, %v8546_v39  ;;  %v4369_v59 = vld [vmem:[%s9526_s13 + $0x8] sm:$0xff]  ;;  %v4370_v39 = vld [vmem:[%s9526_s13 + $0x10] sm:$0xff] }
0x1b08   : > { %v4128_v0 = vmax.f32 %v4124_v32, 0.0  ;;  %v4368_v32 = vld [vmem:[%s9526_s13] sm:$0xff] }
0x1b09   : > { %v4127_v23 = vmax.f32 %v4119_v13, 0.0  ;;  %v4360_v13 = vsub.s32 6, %v8175_v48 }
0x1b0b   : > { %7178 = vmatprep.mubr.msk.f32.mxu1 %vm908_vm2, %v4127_v23 }
0x1b0c   : > { %7179 = vmatmul.mubr.msk.f32.vlgmr.msra.gmra.mrb[72].mxu1 %vm908_vm2, %v4128_v0 }
0x1b0d   : > { %7465 = vmatpush3.bf16.msra.mxu1 %v7462_v34 }
0x1b0e   : > { %7467 = vmatprep.subr.bf16.mxu1 %v7466_v58 }
0x1b11   : > { %7469 = vmatpush3.bf16.msra.mxu1 %v7466_v58 }
0x1b12   : > { %7470 = vmatprep.subr.bf16.mxu1 %v7957_v5 }
0x1bdf   : > { %v7180_v35 = vpop.f32.mrb[72].mxu1 }
0x1be0   : > { %v4216_v29 = vadd.f32 %v7180_v35, %v4137_v15  ;;  %v4210_v21 = vpop.f32.mrb[73].mxu1 }
0x1be1   : > { %v4211_v20 = vadd.f32 %v4210_v21, %v4137_v15  ;;  %v9053_v15 = vpack.c.bf16 %v4369_v59, %v4368_v32  ;;  %v4371_v21 = vld [vmem:[%s9526_s13 + $0x18] sm:$0xff]  ;;  %v4713_v32 = vld [vmem:[%s9528_s15 + $0x10] sm:$0xff] }
0x1be2   : > { %v4222_v31 = vsel %vm908_vm2, %v4216_v29, 0.0 }
0x1be3   : > { %4223 = vadd.xlane.f32.xlu0 %v4222_v31  ;;  %v4219_v46 = vsel %vm908_vm2, %v4211_v20, 0.0  ;;  %v4365_v31 = vsub.s32 7, %v8175_v48 }
0x1be4   : > { %4220 = vadd.xlane.f32.xlu1 %v4219_v46  ;;  %v9068_v46 = vpack.c.bf16 %v4371_v21, %v4370_v39 }
0x1be8   : > { %4346 = vadd.xlane.f32.xlu1 %v4345_v30 }
0x1c70   : > { %v4224_v53 = vpop.xlane.xlu0 %4223 }
0x1c71   : > { %v4226_v3 = vmul.f32 0.03125, %v4224_v53  ;;  %v4221_v55 = vpop.xlane.xlu1 %4220  ;;  %v9075_v53 = vrot.slane %v8994_v38, %v4365_v31  ;;  %v4632_v31 = vld [vmem:[%s9527_s14 + $0x10] sm:$0xff] }
0x1c72   : > { %v4225_v25 = vmul.f32 0.03125, %v4221_v55 }
0x1c73   : > { %v4228_v56 = vsub.f32 %v4216_v29, %v4226_v3 }
0x1c74   : > { %v4227_v52 = vsub.f32 %v4211_v20, %v4225_v25  ;;  %v9062_v20 = vrot.slane %v8994_v38, %v4360_v13  ;;  %v4714_v13 = vld [vmem:[%s9528_s15 + $0x18] sm:$0xff] }
0x1c75   : > { %v4347_v62 = vpop.xlane.xlu1 %4346  ;;  %v4230_v33 = vmul.f32 %v4228_v56, %v4228_v56 }
0x1c76   : > { %v4348_v63 = vmul.f32 0.03125, %v4347_v62  ;;  %v4229_v1 = vmul.f32 %v4227_v52, %v4227_v52 }
0x1c77   : > { %v4234_v37 = vsel %vm908_vm2, %v4230_v33, 0.0 }
0x1c78   : > { %v4349_v2 = vsub.f32 %v9020_v36, %v4348_v63  ;;  %4235 = vadd.xlane.f32.xlu1 %v4234_v37  ;;  %v4231_v4 = vsel %vm908_vm2, %v4229_v1, 0.0 }
0x1c79   : > { %4232 = vadd.xlane.f32.xlu0 %v4231_v4 }
0x1c7a   : > { %v4350_v9 = vmul.f32 %v4349_v2, %v4349_v2 }
0x1c7c   : > { %v4351_v14 = vsel %vm4344_vm13, %v4350_v9, 0.0 }
0x1c7d   : > { %4352 = vadd.xlane.f32.xlu0 %v4351_v14 }
0x1d05   : > { %v4236_v61 = vpop.xlane.xlu1 %4235 }
0x1d06   : > { %v4238_v22 = vmul.f32 0.03125, %v4236_v61  ;;  %v4233_v18 = vpop.xlane.xlu0 %4232 }
0x1d07   : > { %v4237_v50 = vmul.f32 0.03125, %v4233_v18 }
0x1d08   : > { %v4240_v40 = vadd.f32 1e-05, %v4238_v22 }
0x1d09   : > { %v4239_v26 = vadd.f32 1e-05, %v4237_v50 }
0x1d0a   : > { %7891 = vrsqrt.f32 %v4240_v40  ;;  %v4353_v45 = vpop.xlane.xlu0 %4352 }
0x1d0b   : > { %7893 = vrsqrt.f32 %v4239_v26  ;;  %v4354_v27 = vmul.f32 0.03125, %v4353_v45 }
0x1d0d   : > { %v4355_v6 = vadd.f32 1e-05, %v4354_v27 }
0x1d0f   : > { %7895 = vrsqrt.f32 %v4355_v6 }
0x1d14   : > { %v7892_v28 = vpop.eup %7891 }
0x1d15   : > { %v7894_v10 = vpop.eup %7893  ;;  %v4244_v60 = vmul.f32 %v7892_v28, %v4228_v56 }
0x1d16   : > { %v4243_v8 = vmul.f32 %v7894_v10, %v4227_v52 }
0x1d17   : > { %v4250_v17 = vmul.f32 %v4248_v51, %v4244_v60 }
0x1d18   : > { %v4249_v23 = vmul.f32 %v4248_v51, %v4243_v8 }
0x1d19   : > { %v7896_v41 = vpop.eup %7895  ;;  %v4256_v29 = vadd.f32 %v4254_v19, %v4250_v17  ;;  %v4712_v17 = vld [vmem:[%s9528_s15 + $0x8] sm:$0xff] }
0x1d1a   : > { %v4255_v0 = vadd.f32 %v4254_v19, %v4249_v23  ;;  %v4357_v35 = vmul.f32 %v7896_v41, %v4349_v2  ;;  %v4711_v19 = vld [vmem:[%s9528_s15] sm:$0xff]  ;;  %v9121_v23 = vpack.c.bf16 %v4714_v13, %v4713_v32 }
0x1d1b   : > { %v9115_v59 = vpack.c.bf16 %v4712_v17, %v4711_v19 }
0x1d1c   : > { %7189 = vmatprep.mubr.msk.f32.mxu1 %vm908_vm2, %v4255_v0  ;;  %v4362_v30 = vmul.f32 %v9062_v20, %v4357_v35  ;;  %v4630_v0 = vld [vmem:[%s9527_s14] sm:$0xff]  ;;  %v4631_v35 = vld [vmem:[%s9527_s14 + $0x8] sm:$0xff] }
0x1d1d   : > { %7190 = vmatmul.mubr.msk.f32.vlgmr.msra.gmra.mrb[74].mxu1 %vm908_vm2, %v4256_v29  ;;  %v9136_v39 = vpack.c.bf16 %v4631_v35, %v4630_v0  ;;  %v4860_v0 = vld [vmem:[%s9530_s17] sm:$0xff]  ;;  %v4861_v35 = vld [vmem:[%s9530_s17 + $0x8] sm:$0xff] }
0x1d1e   : > { %7472 = vmatpush3.bf16.msra.mxu1 %v9053_v15  ;;  %7200 = vmatprep.mubr.msk.f32.mxu1 %vm7959_vm3, %v7960_v16  ;;  %v4367_v48 = vadd.f32 %v9075_v53, %v4362_v30  ;;  %v4633_v30 = vld [vmem:[%s9527_s14 + $0x18] sm:$0xff] }
0x1d1f   : > { %7473 = vmatprep.subr.bf16.mxu1 %v7957_v5 }
0x1d22   : > { %7475 = vmatpush3.bf16.msra.mxu1 %v9068_v46 }
0x1d23   : > { %7480 = vmatprep.subr.bf16.mxu1 %v7957_v5 }
0x1d25   : > { %7201 = vmatmul.mubr.msk.f32.vlgmr.msra.gmra.mrb[76].mxu1 %vm908_vm2, %v4367_v48  ;;  %v9146_v48 = vpack.c.bf16 %v4633_v30, %v4632_v31  ;;  %v4863_v31 = vld [vmem:[%s9530_s17 + $0x18] sm:$0xff] }
0x1d26   : > { %7214 = vmatprep.mubr.msk.f32.mxu1 %vm7959_vm3, %v7960_v16 }
0x1df0   : > { %v7191_v3 = vpop.f32.mrb[74].mxu1 }
0x1df1   : > { %v4333_v55 = vpop.f32.mrb[75].mxu1 }
0x1df2   : > { %v7699_v38 = vpack.i.bf16 %v7191_v3, %v4333_v55  ;;  %v9089_v56 = vpack.c.bf16 %v7191_v3, %v4333_v55  ;;  %v4342_v3 = vld [vmem:[%s9529_s16] sm:$0x3] }
0x1df3   : > { %v9157_v55 = vrot.slane %v4342_v3, %v8188_v54 }
0x1df4   : > { %7700 = vrot.lane.b32.xlu0 %v7699_v38, %s9613_s9  ;;  %7479 = vmatpush3.bf16.xpose.msk.msra.mxu0 %vm9085_vm14, %v9089_v56 }
0x1df5   : > { %7489 = vmatprep.subr.bf16.mxu0 %v7957_v5 }
0x1df8   : > { %v4441_v52 = vpop.f32.mrb[76].mxu1 }
0x1df9   : > { %v7202_v62 = vpop.f32.mrb[77].mxu1 }
0x1dfb   : > { %7208 = vmatmul.mubr.msk.f32.vlgmr.msra.gmra.mrb[54].mxu0 %vm908_vm2, %v4441_v52 }
0x1dfc   : > { %7236 = vmatprep.mubr.msk.f32.mxu0 %vm7959_vm3, %v7960_v16  ;;  %7491 = vmatpush3.bf16.msra.mxu0 %v9115_v59 }
0x1dfd   : > { %7492 = vmatprep.subr.bf16.mxu0 %v7957_v5 }
0x1e00   : > { %7494 = vmatpush3.bf16.msra.mxu0 %v9121_v23 }
0x1e01   : > { %7501 = vmatprep.subr.bf16.mxu0 %v7957_v5 }
0x1e03   : > { %7237 = vmatmul.mubr.msk.f32.vlgmr.msra.gmra.mrb[64].mxu0 %vm908_vm2, %v9020_v36 }
0x1e04   : > { %7266 = vmatprep.mubr.msk.f32.mxu0 %vm7959_vm3, %v7960_v16 }
0x1e66   : > { %v7701_v33 = vpop.permute.xlu0 %7700 }
0x1e67   : > { %v7703_v63 = vunpack.i.h.bf16 %v7701_v33  ;;  %v7702_v1 = vunpack.i.l.bf16 %v7701_v33 }
0x1e69   : > { %v9099_v37 = vpack.c.bf16 %v7703_v63, %v7702_v1  ;;  %v9165_v1 = vrot.slane %v4342_v3, %v8178_v49 }
0x1e6b   : > { %7482 = vmatpush3.bf16.msra.mxu1 %v9099_v37 }
0x1e6c   : > { %7483 = vmatprep.subr.bf16.mxu1 %v7957_v5 }
0x1ece   : > { %v4520_v2 = vpop.f32.mrb[54].mxu0 }
0x1ecf   : > { %v4524_v4 = vmul.f32 0.17677669, %v4520_v2  ;;  %v7209_v9 = vpop.f32.mrb[55].mxu0 }
0x1ed1   : > { %v4526_v14 = vsel %vm4525_vm15, %v4524_v4, -inf }
0x1ed2   : > { %v4527_v7 = vrot.slane %v4526_v14, 4 }
0x1ed4   : > { %v4528_v12 = vmax.f32 %v4526_v14, %v4527_v7 }
0x1ed6   : > { %v4529_v34 = vrot.slane %v4528_v12, 2  ;;  %v4788_v38 = vpop.f32.mrb[64].mxu0 }
0x1ed7   : > { %v4789_v52 = vadd.f32 %v4788_v38, %v9157_v55  ;;  %v7238_v62 = vpop.f32.mrb[65].mxu0 }
0x1ed8   : > { %v4530_v43 = vmax.f32 %v4528_v12, %v4529_v34  ;;  %v4947_v62 = vld [vmem:[%s9532_s19] sm:$0xff] }
0x1eda   : > { %v4531_v57 = vrot.slane %v4530_v43, 1 }
0x1edc   : > { %v4532_v58 = vmax.f32 %v4530_v43, %v4531_v57 }
0x1ede   : > { %v4533_v61 = vsub.f32 %v4524_v4, %v4532_v58 }
0x1ee0   : > { %v4534_v22 = vmul.f32 1.442695, %v4533_v61 }
0x1ee2   : > { %7897 = vpow2.f32 %v4534_v22 }
0x1eec   : > { %v7898_v18 = vpop.eup %7897 }
0x1eed   : > { %v4536_v50 = vsel %vm4525_vm15, %v7898_v18, 0.0 }
0x1eee   : > { %v4537_v40 = vrot.slane %v4536_v50, 4 }
0x1ef0   : > { %v4538_v26 = vadd.f32 %v4537_v40, %v4536_v50 }
0x1ef2   : > { %v4539_v45 = vrot.slane %v4538_v26, 2 }
0x1ef4   : > { %v4540_v27 = vadd.f32 %v4539_v45, %v4538_v26 }
0x1ef6   : > { %v4541_v6 = vrot.slane %v4540_v27, 1 }
0x1ef8   : > { %v4542_v51 = vadd.f32 %v4541_v6, %v4540_v27 }
0x1efa   : > { %7899 = vrcp.f32 %v4542_v51 }
0x1f04   : > { %v7900_v28 = vpop.eup %7899 }
0x1f05   : > { %v4544_v10 = vmul.f32 %v7900_v28, %v7898_v18 }
0x1f07   : > { %v4545_v60 = vadd.f32 1e-08, %v4544_v10 }
0x1f09   : > { %v4546_v8 = vsel %vm4525_vm15, %v4545_v60, 0.0 }
0x1f0a   : > { %4547 = vadd.xlane.f32.xlu1 %v4546_v8 }
0x1f1b   : > { %4800 = vrot.lane.b32.xlu1 %v4789_v52, %s9620_s29 }
0x1f97   : > { %v4548_v41 = vpop.xlane.xlu1 %4547 }
0x1f98   : > { %7901 = vrcp.f32 %v4548_v41 }
0x1f9b   : > { %v4801_v43 = vpop.permute.xlu1 %4800 }
0x1fa2   : > { %v7902_v29 = vpop.eup %7901 }
0x1fa3   : > { %v4550_v21 = vmul.f32 %v7902_v29, %v4545_v60  ;;  %v4862_v29 = vld [vmem:[%s9530_s17 + $0x10] sm:$0xff] }
0x1fa4   : > { %v9206_v30 = vpack.c.bf16 %v4863_v31, %v4862_v29 }
0x1fa5   : > { %7215 = vmatmul.mubr.msk.f32.vlgmr.msra.gmra.mrb[78].mxu1 %vm2039_vm9, %v4550_v21  ;;  %v9200_v21 = vpack.c.bf16 %v4861_v35, %v4860_v0 }
0x1fa6   : > { %7485 = vmatpush3.bf16.msra.mxu1 %v9136_v39  ;;  %7225 = vmatprep.mubr.msk.f32.mxu1 %vm7959_vm3, %v7960_v16 }
0x1fa7   : > { %7486 = vmatprep.subr.bf16.mxu1 %v7957_v5 }
0x1faa   : > { %7488 = vmatpush3.bf16.msra.mxu1 %v9146_v48 }
0x1fab   : > { %7495 = vmatprep.subr.bf16.mxu1 %v7957_v5 }
0x2078   : > { %v4626_v33 = vpop.f32.mrb[78].mxu1 }
0x2079   : > { %v7216_v63 = vpop.f32.mrb[79].mxu1  ;;  %7226 = vmatmul.mubr.msk.f32.vlgmr.msra.gmra.mrb[80].mxu1 %vm908_vm2, %v4626_v33  ;;  %v4948_v33 = vld [vmem:[%s9532_s19 + $0x8] sm:$0xff] }
0x207a   : > { %7247 = vmatprep.mubr.msk.f32.mxu1 %vm7959_vm3, %v7960_v16  ;;  %7497 = vmatpush3.bf16.msra.mxu1 %v9200_v21  ;;  %v4949_v63 = vld [vmem:[%s9532_s19 + $0x10] sm:$0xff] }
0x207b   : > { %7498 = vmatprep.subr.bf16.mxu1 %v7957_v5 }
0x207e   : > { %7500 = vmatpush3.bf16.msra.mxu1 %v9206_v30 }
0x207f   : > { %7513 = vmatprep.subr.bf16.mxu1 %v7957_v5 }
0x214c   : > { %v4707_v2 = vpop.f32.mrb[80].mxu1 }
0x214d   : > { %v4708_v4 = vadd.f32 %v4707_v2, %v9165_v1  ;;  %v7227_v9 = vpop.f32.mrb[81].mxu1  ;;  %v9220_v2 = vpack.c.bf16 %v4948_v33, %v4947_v62 }
0x214f   : > { %v4792_v14 = vadd.f32 %v4789_v52, %v4708_v4  ;;  %7503 = vmatpush3.bf16.msra.mxu0 %v9220_v2 }
0x2150   : > { %7504 = vmatprep.subr.bf16.mxu0 %v7957_v5 }
0x2151   : > { %v6527_v7 = vmul.f32 -1.442695, %v4792_v14  ;;  %v4951_v14 = vld [vmem:[%s9532_s19 + $0x20] sm:$0xff] }
0x2153   : > { %7903 = vpow2.f32 %v6527_v7  ;;  %v4952_v7 = vld [vmem:[%s9532_s19 + $0x28] sm:$0xff] }
0x215d   : > { %v7904_v12 = vpop.eup %7903 }
0x215e   : > { %v4796_v34 = vadd.f32 1.0, %v7904_v12 }
0x2160   : > { %7905 = vrcp.f32 %v4796_v34 }
0x216a   : > { %v7906_v57 = vpop.eup %7905 }
0x216b   : > { %v4803_v58 = vmul.f32 %v7906_v57, %v4801_v43  ;;  %v4810_v40 = vsub.f32 1.0, %v7906_v57 }
0x216d   : > { %4805 = vrot.lane.b32.xlu1 %v4803_v58, %s9620_s29 }
0x2171   : > { %4816 = vrot.lane.b32.xlu1 %v9020_v36, %s7974_s11  ;;  %v9180_v36 = vld [vmem:[%s9533_s20 + $0x8] sm:$0x7] }
0x2172   : > { %v4845_v10 = vrot.slane %v9180_v36, %v8178_v49  ;;  %v4854_v41 = vrot.slane %v9180_v36, %v8188_v54 }
0x21df   : > { %v4806_v61 = vpop.permute.xlu1 %4805 }
0x21e0   : > { %v4808_v22 = vadd.f32 %v4806_v61, %v4708_v4  ;;  %v4950_v4 = vld [vmem:[%s9532_s19 + $0x18] sm:$0xff] }
0x21e1   : > { %v9226_v9 = vpack.c.bf16 %v4950_v4, %v4949_v63 }
0x21e2   : > { %7907 = vtanh.f32 %v4808_v22 }
0x21e3   : > { %v4817_v50 = vpop.permute.xlu1 %4816  ;;  %7506 = vmatpush3.bf16.msra.mxu0 %v9226_v9 }
0x21e4   : > { %v4819_v45 = vmul.f32 %v7906_v57, %v4817_v50  ;;  %v9238_v57 = vpack.c.bf16 %v4952_v7, %v4951_v14  ;;  %7507 = vmatprep.subr.bf16.mxu0 %v7957_v5  ;;  %v4953_v50 = vld [vmem:[%s9532_s19 + $0x30] sm:$0xff] }
0x21e7   : > { %7509 = vmatpush3.bf16.msra.mxu0 %v9238_v57 }
0x21e8   : > { %7510 = vmatprep.subr.bf16.mxu0 %v7957_v5 }
0x21ec   : > { %v7908_v18 = vpop.eup %7907 }
0x21ed   : > { %4812 = vrot.lane.b32.xlu0 %v7908_v18, %s9613_s9 }
0x225f   : > { %v4813_v26 = vpop.permute.xlu0 %4812 }
0x2260   : > { %v4815_v27 = vmul.f32 %v4813_v26, %v4810_v40  ;;  %v4954_v40 = vld [vmem:[%s9532_s19 + $0x38] sm:$0xff] }
0x2261   : > { %v9261_v26 = vpack.c.bf16 %v4954_v40, %v4953_v50 }
0x2262   : > { %v9172_v6 = vadd.f32 %v4819_v45, %v4815_v27 }
0x2263   : > { %7512 = vmatpush3.bf16.msra.mxu0 %v9261_v26 }
0x2264   : > { %4822 = vrot.lane.b32.xlu0 %v9172_v6, %s9613_s9  ;;  %7523 = vmatprep.subr.bf16.mxu0 %v7957_v5 }
0x22d6   : > { %v4823_v51 = vpop.permute.xlu0 %4822 }
0x22d7   : > { %v4825_v28 = vsel %vm4344_vm13, %v4823_v51, 0.0 }
0x22d8   : > { %4826 = vadd.xlane.f32.xlu1 %v4825_v28  ;;  %v5037_v28 = vrot.slane %v9180_v36, %v8499_v44 }
0x22e9   : > { %4847 = vrot.lane.b32.xlu1 %v4845_v10, %s7974_s11 }
0x2365   : > { %v4827_v60 = vpop.xlane.xlu1 %4826 }
0x2366   : > { %v4828_v8 = vmul.f32 0.03125, %v4827_v60 }
0x2368   : > { %v4829_v19 = vsub.f32 %v9172_v6, %v4828_v8 }
0x2369   : > { %v9235_v34 = vpop.permute.xlu1 %4847 }
0x236a   : > { %v4830_v17 = vmul.f32 %v4829_v19, %v4829_v19 }
0x236c   : > { %4832 = vrot.lane.b32.xlu0 %v4830_v17, %s9613_s9 }
0x23de   : > { %v4833_v32 = vpop.permute.xlu0 %4832 }
0x23df   : > { %v4835_v13 = vsel %vm4344_vm13, %v4833_v32, 0.0 }
0x23e0   : > { %4836 = vadd.xlane.f32.xlu0 %v4835_v13 }
0x23f6   : > { %4856 = vrot.lane.b32.xlu0 %v4854_v41, %s7974_s11 }
0x23fa   : > { %5039 = vrot.lane.b32.xlu0 %v5037_v28, %s7974_s11 }
0x246d   : > { %v4837_v3 = vpop.xlane.xlu0 %4836 }
0x246e   : > { %v4838_v38 = vmul.f32 0.03125, %v4837_v3 }
0x2470   : > { %v4839_v52 = vadd.f32 1e-05, %v4838_v38 }
0x2471   : > { %v9240_v58 = vpop.permute.xlu0 %4856 }
0x2472   : > { %7909 = vrsqrt.f32 %v4839_v52 }
0x247c   : > { %v7910_v12 = vpop.eup %7909 }
0x247d   : > { %v4841_v43 = vmul.f32 %v7910_v12, %v4829_v19  ;;  %v9280_v19 = vpop.permute.xlu0 %5039 }
0x247f   : > { %v4850_v61 = vmul.f32 %v9235_v34, %v4841_v43 }
0x2481   : > { %v4859_v22 = vadd.f32 %v9240_v58, %v4850_v61 }
0x2483   : > { %4872 = vrot.lane.b32.xlu1 %v4859_v22, %s9613_s9 }
0x24f5   : > { %v4873_v18 = vpop.permute.xlu1 %4872 }
0x24f6   : > { %7248 = vmatmul.mubr.msk.f32.vlgmr.msra.gmra.mrb[82].mxu1 %vm908_vm2, %v4873_v18 }
0x24f7   : > { %7515 = vmatpush3.bf16.msra.mxu1 %v9053_v15  ;;  %7277 = vmatprep.mubr.msk.f32.mxu1 %vm7959_vm3, %v7960_v16  ;;  %v9268_v15 = vld [vmem:[%s9531_s18] ss:$0 sm:$0xff] }
0x24f8   : > { %7516 = vmatprep.subr.bf16.mxu1 %v7957_v5 }
0x24fb   : > { %7518 = vmatpush3.bf16.msra.mxu1 %v9068_v46 }
0x24fc   : > { %7519 = vmatprep.subr.bf16.mxu1 %v7957_v5 }
0x25c9   : > { %v4942_v46 = vpop.f32.mrb[82].mxu1 }
0x25ca   : > { %v4943_v45 = vadd.f32 %v9268_v15, %v4942_v46  ;;  %v7249_v27 = vpop.f32.mrb[83].mxu1 }
0x25cc   : > { %v4946_v51 = vmax.f32 %v4943_v45, 0.0 }
0x25ce   : > { %7267 = vmatmul.mubr.msk.f32.vlgmr.msra.gmra.mrb[66].mxu0 %vm4955_vm0, %v4946_v51 }
0x25cf   : > { %7525 = vmatpush3.bf16.msra.mxu0 %v9099_v37  ;;  %7291 = vmatprep.mubr.msk.f32.mxu0 %vm7959_vm3, %v7960_v16 }
0x25d0   : > { %7526 = vmatprep.subr.bf16.mxu0 %v7957_v5 }
0x26a1   : > { %v5025_v10 = vpop.f32.mrb[66].mxu0 }
0x26a2   : > { %5030 = vrot.lane.b32.xlu1 %v5025_v10, %s7974_s11  ;;  %v7268_v60 = vpop.f32.mrb[67].mxu0 }
0x2714   : > { %v5031_v8 = vpop.permute.xlu1 %5030 }
0x2715   : > { %v5033_v17 = vadd.f32 %v5031_v8, %v9172_v6 }
0x2717   : > { %v9284_v37 = vadd.f32 %v9280_v19, %v5033_v17 }
0x2719   : > { %5044 = vrot.lane.b32.xlu1 %v9284_v37, %s9613_s9 }
0x278b   : > { %v5045_v32 = vpop.permute.xlu1 %5044 }
0x278c   : > { %v5047_v36 = vsel %vm4344_vm13, %v5045_v32, 0.0 }
0x278d   : > { %5048 = vadd.xlane.f32.xlu0 %v5047_v36 }
0x27a3   : > { %5065 = vrot.lane.b32.xlu0 %v9062_v20, %s7974_s11 }
0x281a   : > { %v5049_v13 = vpop.xlane.xlu0 %5048 }
0x281b   : > { %v5050_v41 = vmul.f32 0.03125, %v5049_v13 }
0x281d   : > { %v5051_v0 = vsub.f32 %v9284_v37, %v5050_v41 }
0x281e   : > { %v5066_v20 = vpop.permute.xlu0 %5065 }
0x281f   : > { %v5052_v35 = vmul.f32 %v5051_v0, %v5051_v0 }
0x2821   : > { %5054 = vrot.lane.b32.xlu1 %v5052_v35, %s9613_s9 }
0x2893   : > { %v5055_v6 = vpop.permute.xlu1 %5054 }
0x2894   : > { %v5057_v29 = vsel %vm4344_vm13, %v5055_v6, 0.0 }
0x2895   : > { %5058 = vadd.xlane.f32.xlu1 %v5057_v29 }
0x28a6   : > { %5070 = vrot.lane.b32.xlu1 %v9075_v53, %s7974_s11 }
0x2922   : > { %v5059_v31 = vpop.xlane.xlu1 %5058 }
0x2923   : > { %v5060_v3 = vmul.f32 0.03125, %v5059_v31 }
0x2925   : > { %v5061_v38 = vadd.f32 1e-05, %v5060_v3 }
0x2926   : > { %v5071_v33 = vpop.permute.xlu1 %5070 }
0x2927   : > { %7911 = vrsqrt.f32 %v5061_v38 }
0x2931   : > { %v7912_v52 = vpop.eup %7911 }
0x2932   : > { %v5063_v62 = vmul.f32 %v7912_v52, %v5051_v0 }
0x2934   : > { %v5068_v63 = vmul.f32 %v5066_v20, %v5063_v62 }
0x2936   : > { %v5073_v4 = vadd.f32 %v5071_v33, %v5068_v63 }
0x2938   : > { %5075 = vrot.lane.b32.xlu0 %v5073_v4, %s9613_s9 }
0x29aa   : > { %v5076_v14 = vpop.permute.xlu0 %5075 }
0x29ab   : > { %7278 = vmatmul.mubr.msk.f32.vlgmr.msra.gmra.mrb[84].mxu1 %vm908_vm2, %v5076_v14 }
0x29ac   : > { %7522 = vmatpush3.bf16.xpose.msk.msra.mxu1 %vm9085_vm14, %v9089_v56  ;;  %7284 = vmatprep.mubr.msk.f32.mxu1 %vm7959_vm3, %v7960_v16 }
0x29ad   : > { %7532 = vmatprep.subr.bf16.mxu1 %v7957_v5 }
0x2a7e   : > { %v5145_v53 = vpop.f32.mrb[84].mxu1 }
0x2a7f   : > { %v7279_v7 = vpop.f32.mrb[85].mxu1  ;;  %7285 = vmatmul.mubr.msk.f32.vlgmr.msra.gmra.mrb[86].mxu1 %vm908_vm2, %v5145_v53 }
0x2a80   : > { %7534 = vmatpush3.bf16.msra.mxu1 %v9115_v59  ;;  %7313 = vmatprep.mubr.msk.f32.mxu1 %vm7959_vm3, %v7960_v16 }
0x2a81   : > { %7535 = vmatprep.subr.bf16.mxu1 %v7957_v5 }
0x2a84   : > { %7537 = vmatpush3.bf16.msra.mxu1 %v9121_v23 }
0x2a85   : > { %7544 = vmatprep.subr.bf16.mxu1 %v7957_v5 }
0x2a87   : > { %7314 = vmatmul.mubr.msk.f32.vlgmr.msra.gmra.mrb[88].mxu1 %vm908_vm2, %v5045_v32 }
0x2a88   : > { %7546 = vmatpush3.bf16.msra.mxu1 %v9220_v2  ;;  %7343 = vmatprep.mubr.msk.f32.mxu1 %vm7959_vm3, %v7960_v16 }
0x2a89   : > { %7547 = vmatprep.subr.bf16.mxu1 %v7957_v5 }
0x2a8c   : > { %7549 = vmatpush3.bf16.msra.mxu1 %v9226_v9 }
0x2a8d   : > { %7550 = vmatprep.subr.bf16.mxu1 %v7957_v5 }
0x2a90   : > { %7552 = vmatpush3.bf16.msra.mxu1 %v9238_v57 }
0x2a91   : > { %7553 = vmatprep.subr.bf16.mxu1 %v7957_v5 }
0x2a94   : > { %7555 = vmatpush3.bf16.msra.mxu1 %v9261_v26 }
0x2b52   : > { %v5218_v25 = vpop.f32.mrb[86].mxu1 }
0x2b53   : > { %v9321_v56 = vmul.f32 0.17677669, %v5218_v25  ;;  %v7286_v59 = vpop.f32.mrb[87].mxu1 }
0x2b55   : > { %v5223_v23 = vsel %vm4525_vm15, %v9321_v56, -inf }
0x2b56   : > { %v5224_v2 = vrot.slane %v5223_v23, 4 }
0x2b58   : > { %v5225_v12 = vmax.f32 %v5223_v23, %v5224_v2 }
0x2b5a   : > { %v5226_v43 = vrot.slane %v5225_v12, 2  ;;  %v5462_v61 = vpop.f32.mrb[88].mxu1 }
0x2b5b   : > { %v5463_v9 = vadd.f32 %v5462_v61, %v9157_v55  ;;  %v7315_v22 = vpop.f32.mrb[89].mxu1 }
0x2b5c   : > { %v5227_v18 = vmax.f32 %v5225_v12, %v5226_v43 }
0x2b5d   : > { %5474 = vrot.lane.b32.xlu1 %v5463_v9, %s9620_s29 }
0x2b5e   : > { %v5228_v57 = vrot.slane %v5227_v18, 1 }
0x2b60   : > { %v5229_v50 = vmax.f32 %v5227_v18, %v5228_v57 }
0x2b62   : > { %v5230_v40 = vsub.f32 %v9321_v56, %v5229_v50 }
0x2b64   : > { %v5231_v26 = vmul.f32 1.442695, %v5230_v40 }
0x2b66   : > { %7913 = vpow2.f32 %v5231_v26 }
0x2b70   : > { %v7914_v46 = vpop.eup %7913 }
0x2b71   : > { %v5233_v45 = vsel %vm4525_vm15, %v7914_v46, 0.0 }
0x2b72   : > { %v5234_v27 = vrot.slane %v5233_v45, 4 }
0x2b74   : > { %v5235_v51 = vadd.f32 %v5234_v27, %v5233_v45 }
0x2b76   : > { %v5236_v28 = vrot.slane %v5235_v51, 2 }
0x2b78   : > { %v5237_v10 = vadd.f32 %v5236_v28, %v5235_v51  ;;  %v5671_v51 = vld [vmem:[%s9535_s22] sm:$0xff] }
0x2b79   : > { %v7737_v28 = vld [vmem:[%s9536_s23] sm:$0xff]  }
0x2b7a   : > { %v5238_v60 = vrot.slane %v5237_v10, 1 }
0x2b7c   : > { %v5239_v8 = vadd.f32 %v5238_v60, %v5237_v10  ;;  %v7738_v10 = vld [vmem:[%s9536_s23 + $0x8] sm:$0xff]  }
0x2b7e   : > { %7915 = vrcp.f32 %v5239_v8 }
0x2b88   : > { %v7916_v55 = vpop.eup %7915 }
0x2b89   : > { %v9329_v17 = vmul.f32 %v7916_v55, %v7914_v46 }
0x2b8b   : > { %v5242_v32 = vadd.f32 1e-08, %v9329_v17 }
0x2b8d   : > { %v5243_v36 = vsel %vm4525_vm15, %v5242_v32, 0.0 }
0x2b8e   : > { %5244 = vadd.xlane.f32.xlu0 %v5243_v36 }
0x2bcf   : > { %v5475_v62 = vpop.permute.xlu1 %5474 }
0x2c1b   : > { %v5245_v13 = vpop.xlane.xlu0 %5244 }
0x2c1c   : > { %7917 = vrcp.f32 %v5245_v13 }
0x2c26   : > { %v7918_v41 = vpop.eup %7917 }
0x2c27   : > { %v5247_v0 = vmul.f32 %v7918_v41, %v5242_v32 }
0x2c29   : > { %7292 = vmatmul.mubr.msk.f32.vlgmr.msra.gmra.mrb[68].mxu0 %vm2039_vm9, %v5247_v0 }
0x2c2a   : > { %7528 = vmatpush3.bf16.msra.mxu0 %v9136_v39  ;;  %7302 = vmatprep.mubr.msk.f32.mxu0 %vm7959_vm3, %v7960_v16 }
0x2c2b   : > { %7529 = vmatprep.subr.bf16.mxu0 %v7957_v5 }
0x2c2e   : > { %7531 = vmatpush3.bf16.msra.mxu0 %v9146_v48 }
0x2c2f   : > { %7538 = vmatprep.subr.bf16.mxu0 %v7957_v5 }
0x2cfc   : > { %v5317_v35 = vpop.f32.mrb[68].mxu0 }
0x2cfd   : > { %v7293_v6 = vpop.f32.mrb[69].mxu0  ;;  %7303 = vmatmul.mubr.msk.f32.vlgmr.msra.gmra.mrb[70].mxu0 %vm908_vm2, %v5317_v35 }
0x2cfe   : > { %7540 = vmatpush3.bf16.msra.mxu0 %v9200_v21  ;;  %7324 = vmatprep.mubr.msk.f32.mxu0 %vm7959_vm3, %v7960_v16  ;;  %vm6197_vm3 = vcmask 15360  }
0x2cff   : > { %7541 = vmatprep.subr.bf16.mxu0 %v7957_v5 }
0x2d02   : > { %7543 = vmatpush3.bf16.msra.mxu0 %v9206_v30 }
0x2d03   : > { %7346 = vmatprep.subr.bf16.mxu0 %v7737_v28 }
0x2dd0   : > { %v5390_v39 = vpop.f32.mrb[70].mxu0 }
0x2dd1   : > { %v5391_v29 = vadd.f32 %v5390_v39, %v9165_v1  ;;  %v7304_v31 = vpop.f32.mrb[71].mxu0 }
0x2dd3   : > { %v5466_v48 = vadd.f32 %v5463_v9, %v5391_v29 }
0x2dd5   : > { %v6538_v3 = vmul.f32 -1.442695, %v5466_v48 }
0x2dd7   : > { %7919 = vpow2.f32 %v6538_v3 }
0x2de1   : > { %v7920_v38 = vpop.eup %7919 }
0x2de2   : > { %v5470_v52 = vadd.f32 1.0, %v7920_v38 }
0x2de4   : > { %7921 = vrcp.f32 %v5470_v52  ;;  %v7739_v52 = vld [vmem:[%s9537_s24] sm:$0xff]  }
0x2dee   : > { %v7922_v20 = vpop.eup %7921 }
0x2def   : > { %v5477_v21 = vmul.f32 %v7922_v20, %v5475_v62  ;;  %v5484_v30 = vsub.f32 1.0, %v7922_v20  ;;  %v5490_v63 = vmul.f32 %v7922_v20, %v9284_v37 }
0x2df1   : > { %5479 = vrot.lane.b32.xlu1 %v5477_v21, %s9620_s29 }
0x2e63   : > { %v5480_v16 = vpop.permute.xlu1 %5479 }
0x2e64   : > { %v5482_v33 = vadd.f32 %v5480_v16, %v5391_v29 }
0x2e66   : > { %7923 = vtanh.f32 %v5482_v33  ;;  %v7740_v33 = vld [vmem:[%s9537_s24 + $0x8] sm:$0xff]  }
0x2e70   : > { %v7924_v5 = vpop.eup %7923 }
0x2e71   : > { %5486 = vrot.lane.b32.xlu1 %v7924_v5, %s9613_s9 }
0x2ee3   : > { %v5487_v1 = vpop.permute.xlu1 %5486 }
0x2ee4   : > { %v5489_v4 = vmul.f32 %v5487_v1, %v5484_v30 }
0x2ee6   : > { %v5491_v14 = vadd.f32 %v5490_v63, %v5489_v4  ;;  %v7741_v63 = vld [vmem:[%s9537_s24 + $0x10] sm:$0xff]   ;;  %v7742_v4 = vld [vmem:[%s9537_s24 + $0x18] sm:$0xff]  }
0x2ee8   : > { %5493 = vrot.lane.b32.xlu1 %v5491_v14, %s9613_s9 }
0x2f5a   : > { %v5494_v53 = vpop.permute.xlu1 %5493 }
0x2f5b   : > { %v5496_v7 = vsel %vm4344_vm13, %v5494_v53, 0.0  ;;  %v7744_v53 = vld [vmem:[%s9538_s25 + $0x8] sm:$0xff]  }
0x2f5c   : > { %5497 = vadd.xlane.f32.xlu1 %v5496_v7  ;;  %v9415_v7 = vld [vmem:[%s9539_s26] sm:$0x7] }
0x2fe9   : > { %v5498_v25 = vpop.xlane.xlu1 %5497 }
0x2fea   : > { %v5499_v59 = vmul.f32 0.03125, %v5498_v25  ;;  %v5716_v25 = vrot.slane %v9415_v7, %v8178_v49 }
0x2fec   : > { %v5500_v23 = vsub.f32 %v5491_v14, %v5499_v59 }
0x2fee   : > { %v5501_v2 = vmul.f32 %v5500_v23, %v5500_v23 }
0x2ff0   : > { %5503 = vrot.lane.b32.xlu0 %v5501_v2, %s9613_s9 }
0x3062   : > { %v5504_v12 = vpop.permute.xlu0 %5503 }
0x3063   : > { %v5506_v43 = vsel %vm4344_vm13, %v5504_v12, 0.0 }
0x3064   : > { %5507 = vadd.xlane.f32.xlu1 %v5506_v43 }
0x30f1   : > { %v5508_v61 = vpop.xlane.xlu1 %5507 }
0x30f2   : > { %v5509_v37 = vmul.f32 0.03125, %v5508_v61 }
0x30f4   : > { %v5510_v9 = vadd.f32 1e-05, %v5509_v37 }
0x30f6   : > { %7925 = vrsqrt.f32 %v5510_v9 }
0x3100   : > { %v7926_v22 = vpop.eup %7925 }
0x3101   : > { %v5512_v18 = vmul.f32 %v7926_v22, %v5500_v23 }
0x3103   : > { %v5513_v57 = vmul.f32 %v5512_v18, %v9235_v34  ;;  %v5672_v34 = vld [vmem:[%s9535_s22 + $0x8] sm:$0xff] }
0x3105   : > { %v5514_v50 = vadd.f32 %v5513_v57, %v9240_v58 }
0x3107   : > { %5516 = vrot.lane.b32.xlu0 %v5514_v50, %s9613_s9 }
0x310b   : > { %5679 = vrot.lane.b32.xlu0 %v5671_v51, %s7974_s11 }
0x310f   : > { %5681 = vrot.lane.b32.xlu0 %v5672_v34, %s7974_s11 }
0x3179   : > { %v5517_v40 = vpop.permute.xlu0 %5516 }
0x317a   : > { %7325 = vmatmul.mubr.msk.f32.vlgmr.msra.gmra.mrb[72].mxu0 %vm908_vm2, %v5517_v40 }
0x317b   : > { %7347 = vmatpush3.bf16.msra.mxu0 %v7737_v28 }
0x317c   : > { %7348 = vmatprep.subr.bf16.mxu0 %v7738_v10 }
0x317d   : > { %v5680_v60 = vpop.permute.xlu0 %5679 }
0x317f   : > { %7349 = vmatpush3.bf16.msra.mxu0 %v7738_v10 }
0x3180   : > { %7358 = vmatprep.subr.bf16.mxu0 %v7739_v52 }
0x3181   : > { %v5682_v41 = vpop.permute.xlu0 %5681 }
0x324d   : > { %v5586_v26 = vpop.f32.mrb[72].mxu0 }
0x324e   : > { %v5587_v46 = vadd.f32 %v9268_v15, %v5586_v26  ;;  %v7326_v45 = vpop.f32.mrb[73].mxu0 }
0x3250   : > { %v5590_v27 = vmax.f32 %v5587_v46, 0.0 }
0x3252   : > { %7344 = vmatmul.mubr.msk.f32.vlgmr.msra.gmra.mrb[90].mxu1 %vm4955_vm0, %v5590_v27 }
0x3325   : > { %v5660_v58 = vpop.f32.mrb[90].mxu1 }
0x3326   : > { %5665 = vrot.lane.b32.xlu1 %v5660_v58, %s7974_s11  ;;  %v7345_v15 = vpop.f32.mrb[91].mxu1  ;;  %s7978_s11 = smov 99  }
0x3398   : > { %v5666_v8 = vpop.permute.xlu1 %5665 }
0x3399   : > { %v5668_v55 = vadd.f32 %v5666_v8, %v5491_v14  ;;  %v7743_v14 = vld [vmem:[%s9538_s25] sm:$0xff]  }
0x339a   : > { %7374 = vmatprep.subr.bf16.mxu1 %v7743_v14 }
0x339b   : > { %v9376_v32 = vadd.f32 %v5668_v55, %v9280_v19  ;;  %7375 = vmatpush3.bf16.msra.mxu1 %v7743_v14 }
0x339c   : > { %7376 = vmatprep.subr.bf16.mxu1 %v7744_v53 }
0x339d   : > { %v5676_v36 = vrot.slane %v9376_v32, %v8178_v49  ;;  %v5702_v13 = vrot.slane %v9376_v32, %v8509_v47  ;;  %v5690_v0 = vrot.slane %v9376_v32, %v8188_v54  ;;  %v5696_v31 = vrot.slane %v9376_v32, %v8499_v44 }
0x339f   : > { %v5685_v35 = vadd.f32 %v5680_v60, %v5676_v36  ;;  %v5703_v6 = vadd.f32 %v5702_v13, %v5680_v60  ;;  %v5686_v39 = vadd.f32 %v5682_v41, %v5676_v36  ;;  %v5704_v29 = vadd.f32 %v5702_v13, %v5682_v41  ;;  %7377 = vmatpush3.bf16.msra.mxu1 %v7744_v53  ;;  %v7745_v13 = vld [vmem:[%s9538_s25 + $0x10] sm:$0xff]  }
0x33a0   : > { %v5691_v48 = vadd.f32 %v5690_v0, %v5680_v60  ;;  %v5692_v19 = vadd.f32 %v5690_v0, %v5682_v41  ;;  %v5697_v47 = vadd.f32 %v5696_v31, %v5680_v60  ;;  %v5698_v20 = vadd.f32 %v5696_v31, %v5682_v41  ;;  %7378 = vmatprep.subr.bf16.mxu1 %v7745_v13  ;;  %v7746_v41 = vld [vmem:[%s9538_s25 + $0x18] sm:$0xff]  }
0x33a1   : > { %v5712_v3 = vpack.c.bf16 %v5704_v29, %v5703_v6  ;;  %v5709_v38 = vpack.c.bf16 %v5686_v39, %v5685_v35  ;;  %v5841_v0 = vrot.slane %v9415_v7, %v8188_v54 }
0x33a2   : > { %v5710_v62 = vpack.c.bf16 %v5692_v19, %v5691_v48  ;;  %v5711_v21 = vpack.c.bf16 %v5698_v20, %v5697_v47 }
0x33a3   : > { %5727 = vrot.lane.b32.xlu1 %v5712_v3, %s9613_s9  ;;  %5721 = vrot.lane.b32.xlu0 %v5709_v38, %s9613_s9 }
0x33a4   : > { %7379 = vmatpush3.bf16.msra.mxu1 %v7745_v13 }
0x33a5   : > { %7380 = vmatprep.subr.bf16.mxu1 %v7746_v41 }
0x33a7   : > { %5723 = vrot.lane.b32.xlu0 %v5710_v62, %s9613_s9 }
0x33a8   : > { %7381 = vmatpush3.bf16.msra.mxu1 %v7746_v41 }
0x33ab   : > { %5725 = vrot.lane.b32.xlu0 %v5711_v21, %s9613_s9 }
0x3415   : > { %v5722_v16 = vpop.permute.xlu0 %5721  ;;  %v5728_v1 = vpop.permute.xlu1 %5727 }
0x3416   : > { %7350 = vmatprep.mubr.msk.bf16.mxu0 %vm908_vm2, %v5722_v16 }
0x3419   : > { %v5724_v5 = vpop.permute.xlu0 %5723 }
0x341a   : > { %7351 = vmatmul.mubr.msk.bf16.vlgmr.msra.gmra.mrb[76].mxu0 %vm908_vm2, %v5724_v5 }
0x341b   : > { %7359 = vmatpush3.bf16.msra.mxu0 %v7739_v52 }
0x341c   : > { %7360 = vmatprep.subr.bf16.mxu0 %v7740_v33 }
0x341d   : > { %v5726_v30 = vpop.permute.xlu0 %5725 }
0x341e   : > { %7354 = vmatprep.mubr.msk.bf16.mxu0 %vm908_vm2, %v5726_v30 }
0x341f   : > { %7361 = vmatpush3.bf16.msra.mxu0 %v7740_v33 }
0x3420   : > { %7362 = vmatprep.subr.bf16.mxu0 %v7741_v63 }
0x3422   : > { %7355 = vmatmul.mubr.msk.bf16.gmra.mrb[80].mxu0 %vm908_vm2, %v5728_v1 }
0x3423   : > { %7363 = vmatpush3.bf16.msra.mxu0 %v7741_v63 }
0x3424   : > { %7364 = vmatprep.subr.bf16.mxu0 %v7742_v4 }
0x3427   : > { %7365 = vmatpush3.bf16.msra.mxu0 %v7742_v4 }
0x34ed   : > { %v7352_v59 = vpop.f32.mrb[76].mxu0 }
0x34ee   : > { %v5796_v23 = vadd.f32 %v7352_v59, %v5716_v25  ;;  %v5787_v2 = vpop.f32.mrb[77].mxu0 }
0x34ef   : > { %v5788_v12 = vadd.f32 %v5787_v2, %v5716_v25  ;;  %v7353_v43 = vpop.f32.mrb[78].mxu0 }
0x34f0   : > { %v5799_v61 = vadd.f32 %v7353_v43, %v5716_v25  ;;  %v5790_v37 = vpop.f32.mrb[79].mxu0  ;;  %v5820_v22 = vmax.f32 %v5796_v23, 0.0 }
0x34f1   : > { %v5791_v9 = vadd.f32 %v5790_v37, %v5716_v25  ;;  %v5818_v57 = vmax.f32 %v5788_v12, 0.0  ;;  %v7975_v12 = vmov 32   ;;  %v5966_v37 = vrot.slane %v9415_v7, %v8499_v44 }
0x34f2   : > { %v5821_v18 = vmax.f32 %v5799_v61, 0.0  ;;  %7705 = vset.pattern.permute.xlu1 %v7975_v12  ;;  %7704 = vset.pattern.permute.xlu0 %v7975_v12 }
0x34f3   : > { %v5819_v50 = vmax.f32 %v5791_v9, 0.0 }
0x34f4   : > { %v5835_v40 = vpack.c.bf16 %v5821_v18, %v5820_v22 }
0x34f5   : > { %v5834_v26 = vpack.c.bf16 %v5819_v50, %v5818_v57  ;;  %v7356_v46 = vpop.f32.mrb[80].mxu0 }
0x34f6   : > { %v5812_v45 = vadd.f32 %v7356_v46, %v5716_v25  ;;  %v5803_v27 = vpop.f32.mrb[81].mxu0 }
0x34f7   : > { %v5804_v51 = vadd.f32 %v5803_v27, %v5716_v25  ;;  %v7357_v34 = vpop.f32.mrb[82].mxu0  ;;  %7366 = vmatprep.mubr.msk.bf16.mxu0 %vm4955_vm0, %v5834_v26 }
0x34f8   : > { %v5815_v49 = vadd.f32 %v7357_v34, %v5716_v25  ;;  %v5806_v58 = vpop.f32.mrb[83].mxu0  ;;  %7367 = vmatmul.mubr.msk.bf16.vlgmr.msra.gmra.mrb[84].mxu0 %vm4955_vm0, %v5835_v40  ;;  %v5824_v28 = vmax.f32 %v5812_v45, 0.0 }
0x34f9   : > { %v5807_v15 = vadd.f32 %v5806_v58, %v5716_v25  ;;  %v5822_v60 = vmax.f32 %v5804_v51, 0.0 }
0x34fa   : > { %v5825_v10 = vmax.f32 %v5815_v49, 0.0 }
0x34fb   : > { %v5823_v8 = vmax.f32 %v5807_v15, 0.0 }
0x34fc   : > { %v5837_v55 = vpack.c.bf16 %v5825_v10, %v5824_v28 }
0x34fd   : > { %v5836_v36 = vpack.c.bf16 %v5823_v8, %v5822_v60 }
0x34ff   : > { %7370 = vmatprep.mubr.msk.bf16.mxu0 %vm4955_vm0, %v5836_v36 }
0x3500   : > { %7371 = vmatmul.mubr.msk.bf16.gmra.mrb[88].mxu0 %vm4955_vm0, %v5837_v55 }
0x35cb   : > { %v7368_v35 = vpop.f32.mrb[84].mxu0 }
0x35cc   : > { %v5921_v6 = vadd.f32 %v7368_v35, %v5841_v0  ;;  %v5912_v39 = vpop.f32.mrb[85].mxu0 }
0x35cd   : > { %v5913_v29 = vadd.f32 %v5912_v39, %v5841_v0  ;;  %v7369_v31 = vpop.f32.mrb[86].mxu0 }
0x35ce   : > { %v5924_v48 = vadd.f32 %v7369_v31, %v5841_v0  ;;  %v5915_v19 = vpop.f32.mrb[87].mxu0  ;;  %v5945_v38 = vmax.f32 %v5921_v6, 0.0 }
0x35cf   : > { %v5916_v3 = vadd.f32 %v5915_v19, %v5841_v0  ;;  %v5943_v47 = vmax.f32 %v5913_v29, 0.0 }
0x35d0   : > { %v5946_v52 = vmax.f32 %v5924_v48, 0.0 }
0x35d1   : > { %v5944_v20 = vmax.f32 %v5916_v3, 0.0 }
0x35d2   : > { %v5960_v62 = vpack.c.bf16 %v5946_v52, %v5945_v38 }
0x35d3   : > { %v5959_v21 = vpack.c.bf16 %v5944_v20, %v5943_v47  ;;  %v7372_v16 = vpop.f32.mrb[88].mxu0 }
0x35d4   : > { %v5937_v33 = vadd.f32 %v7372_v16, %v5841_v0  ;;  %v5928_v5 = vpop.f32.mrb[89].mxu0 }
0x35d5   : > { %v5929_v30 = vadd.f32 %v5928_v5, %v5841_v0  ;;  %v7373_v1 = vpop.f32.mrb[90].mxu0  ;;  %7382 = vmatprep.mubr.msk.bf16.mxu1 %vm4955_vm0, %v5959_v21 }
0x35d6   : > { %v5940_v54 = vadd.f32 %v7373_v1, %v5841_v0  ;;  %v5931_v63 = vpop.f32.mrb[91].mxu0  ;;  %7383 = vmatmul.mubr.msk.bf16.vlgmr.msra.gmra.mrb[92].mxu1 %vm4955_vm0, %v5960_v62  ;;  %v5949_v14 = vmax.f32 %v5937_v33, 0.0 }
0x35d7   : > { %v5932_v4 = vadd.f32 %v5931_v63, %v5841_v0  ;;  %v5947_v25 = vmax.f32 %v5929_v30, 0.0 }
0x35d8   : > { %v5950_v53 = vmax.f32 %v5940_v54, 0.0 }
0x35d9   : > { %v5948_v59 = vmax.f32 %v5932_v4, 0.0 }
0x35da   : > { %v5962_v23 = vpack.c.bf16 %v5950_v53, %v5949_v14 }
0x35db   : > { %v5961_v2 = vpack.c.bf16 %v5948_v59, %v5947_v25 }
0x35dd   : > { %7386 = vmatprep.mubr.msk.bf16.mxu1 %vm4955_vm0, %v5961_v2 }
0x35de   : > { %7387 = vmatmul.mubr.msk.bf16.gmra.mrb[96].mxu1 %vm4955_vm0, %v5962_v23 }
0x36a9   : > { %v7384_v43 = vpop.f32.mrb[92].mxu1 }
0x36aa   : > { %v6037_v61 = vpop.f32.mrb[93].mxu1  ;;  %v9437_v18 = vadd.f32 %v7384_v43, %v5966_v37 }
0x36ab   : > { %v7385_v9 = vpop.f32.mrb[94].mxu1  ;;  %v9439_v57 = vadd.f32 %v6037_v61, %v5966_v37 }
0x36ac   : > { %v6040_v22 = vpop.f32.mrb[95].mxu1  ;;  %v9441_v50 = vadd.f32 %v7385_v9, %v5966_v37 }
0x36ad   : > { %v9443_v40 = vadd.f32 %v6040_v22, %v5966_v37  ;;  %v6068_v45 = vmax.f32 %v9439_v57, %v9437_v18 }
0x36af   : > { %v6069_v44 = vmax.f32 %v9443_v40, %v9441_v50 }
0x36b1   : > { %v7388_v26 = vpop.f32.mrb[96].mxu1 }
0x36b2   : > { %v6053_v46 = vpop.f32.mrb[97].mxu1  ;;  %v9451_v7 = vadd.f32 %v7388_v26, %v5966_v37 }
0x36b3   : > { %v9447_v27 = vadd.f32 %v6053_v46, %v5966_v37  ;;  %v7389_v51 = vpop.f32.mrb[98].mxu1 }
0x36b4   : > { %v6056_v34 = vpop.f32.mrb[99].mxu1  ;;  %v9458_v10 = vadd.f32 %v7389_v51, %v5966_v37 }
0x36b5   : > { %v6070_v49 = vmax.f32 %v6068_v45, %v9447_v27  ;;  %v9454_v58 = vadd.f32 %v6056_v34, %v5966_v37 }
0x36b7   : > { %v6072_v15 = vmax.f32 %v6070_v49, %v9451_v7  ;;  %v6071_v28 = vmax.f32 %v6069_v44, %v9454_v58 }
0x36b9   : > { %v6074_v60 = vsub.f32 %v9439_v57, %v6072_v15  ;;  %v6080_v8 = vsub.f32 %v9437_v18, %v6072_v15  ;;  %v6086_v55 = vsub.f32 %v9447_v27, %v6072_v15  ;;  %v6092_v36 = vsub.f32 %v9451_v7, %v6072_v15 }
0x36ba   : > { %v6073_v13 = vmax.f32 %v6071_v28, %v9458_v10 }
0x36bb   : > { %v6076_v41 = vmul.f32 1.442695, %v6074_v60  ;;  %v6082_v0 = vmul.f32 1.442695, %v6080_v8  ;;  %v6088_v35 = vmul.f32 1.442695, %v6086_v55 }
0x36bc   : > { %v6094_v6 = vmul.f32 1.442695, %v6092_v36  ;;  %v6075_v39 = vsub.f32 %v9443_v40, %v6073_v13  ;;  %v6081_v29 = vsub.f32 %v9441_v50, %v6073_v13  ;;  %v6087_v31 = vsub.f32 %v9454_v58, %v6073_v13 }
0x36bd   : > { %7927 = vpow2.f32 %v6076_v41  ;;  %v6093_v3 = vsub.f32 %v9458_v10, %v6073_v13 }
0x36be   : > { %7929 = vpow2.f32 %v6082_v0  ;;  %v6078_v48 = vmul.f32 1.442695, %v6075_v39  ;;  %v6084_v19 = vmul.f32 1.442695, %v6081_v29  ;;  %v6090_v38 = vmul.f32 1.442695, %v6087_v31 }
0x36bf   : > { %7931 = vpow2.f32 %v6088_v35  ;;  %v6096_v52 = vmul.f32 1.442695, %v6093_v3 }
0x36c0   : > { %7933 = vpow2.f32 %v6094_v6 }
0x36c1   : > { %7935 = vpow2.f32 %v6078_v48 }
0x36c2   : > { %7937 = vpow2.f32 %v6084_v19 }
0x36c3   : > { %7939 = vpow2.f32 %v6090_v38 }
0x36c4   : > { %7941 = vpow2.f32 %v6096_v52 }
0x36c7   : > { %v7928_v47 = vpop.eup %7927 }
0x36c8   : > { %v7930_v20 = vpop.eup %7929 }
0x36c9   : > { %v7932_v62 = vpop.eup %7931  ;;  %v6098_v21 = vadd.f32 %v7930_v20, %v7928_v47 }
0x36ca   : > { %v7934_v16 = vpop.eup %7933 }
0x36cb   : > { %v7936_v33 = vpop.eup %7935  ;;  %v6100_v5 = vadd.f32 %v7932_v62, %v6098_v21 }
0x36cc   : > { %v7938_v30 = vpop.eup %7937 }
0x36cd   : > { %v6102_v1 = vadd.f32 %v7934_v16, %v6100_v5  ;;  %v6099_v54 = vadd.f32 %v7938_v30, %v7936_v33  ;;  %v7940_v63 = vpop.eup %7939 }
0x36ce   : > { %v7942_v14 = vpop.eup %7941 }
0x36cf   : > { %7943 = vrcp.f32 %v6102_v1  ;;  %v6101_v4 = vadd.f32 %v7940_v63, %v6099_v54 }
0x36d1   : > { %v6103_v53 = vadd.f32 %v7942_v14, %v6101_v4 }
0x36d3   : > { %7945 = vrcp.f32 %v6103_v53 }
0x36d9   : > { %v7944_v25 = vpop.eup %7943 }
0x36da   : > { %v6108_v59 = vmul.f32 %v7944_v25, %v7930_v20  ;;  %v6105_v23 = vmul.f32 %v7944_v25, %v7928_v47  ;;  %v6110_v12 = vmul.f32 %v7944_v25, %v7932_v62  ;;  %v6112_v9 = vmul.f32 %v7944_v25, %v7934_v16 }
0x36dc   : > { %6130 = vperm.xlu1 %7705, %v6108_v59   ;;  %6116 = vperm.xlu0 %7704, %v6105_v23  }
0x36dd   : > { %v7946_v2 = vpop.eup %7945 }
0x36de   : > { %v6109_v43 = vmul.f32 %v7946_v2, %v7938_v30  ;;  %v6107_v61 = vmul.f32 %v7946_v2, %v7936_v33  ;;  %v6111_v37 = vmul.f32 %v7946_v2, %v7940_v63  ;;  %v6113_v22 = vmul.f32 %v7946_v2, %v7942_v14 }
0x36e0   : > { %6144 = vperm.xlu1 %7705, %v6110_v12   ;;  %6135 = vperm.xlu0 %7704, %v6109_v43  }
0x36e4   : > { %6121 = vperm.xlu1 %7705, %v6107_v61   ;;  %6149 = vperm.xlu0 %7704, %v6111_v37  }
0x36e8   : > { %6158 = vperm.xlu1 %7705, %v6112_v9   ;;  %6163 = vperm.xlu0 %7704, %v6113_v22  }
0x36ec   : > { %6170 = vrot.lane.b32.xlu0 %v6105_v23, %s9613_s9 }
0x36f0   : > { %6176 = vrot.lane.b32.xlu0 %v6108_v59, %s7976_s8 }
0x36f4   : > { %6182 = vrot.lane.b32.xlu0 %v6110_v12, %s7977_s2 }
0x36f8   : > { %6172 = vrot.lane.b32.xlu0 %v6107_v61, %s9613_s9 }
0x36fc   : > { %6178 = vrot.lane.b32.xlu0 %v6109_v43, %s7976_s8 }
0x3700   : > { %6188 = vrot.lane.b32.xlu0 %v6112_v9, %s7978_s11 }
0x3704   : > { %6184 = vrot.lane.b32.xlu0 %v6111_v37, %s7977_s2 }
0x3708   : > { %6190 = vrot.lane.b32.xlu0 %v6113_v22, %s7978_s11 }
0x370c   : > { %6280 = vrot.lane.b32.xlu0 %v9321_v56, %s9625_s30 }
0x375b   : > { %v6131_v26 = vpop.permute.xlu1 %6130  ;;  %v6117_v46 = vpop.permute.xlu0 %6116 }
0x375c   : > { %v6138_v34 = vmul.f32 %v6131_v26, %v9437_v18  ;;  %v6124_v44 = vmul.f32 %v6117_v46, %v9439_v57 }
0x375e   : > { %v6140_v55 = vadd.f32 %v6138_v34, %v6124_v44 }
0x375f   : > { %v6145_v45 = vpop.permute.xlu1 %6144  ;;  %v6136_v51 = vpop.permute.xlu0 %6135 }
0x3760   : > { %v6152_v28 = vmul.f32 %v6145_v45, %v9447_v27  ;;  %v6139_v60 = vmul.f32 %v6136_v51, %v9441_v50 }
0x3762   : > { %v6154_v0 = vadd.f32 %v6152_v28, %v6140_v55 }
0x3763   : > { %v6122_v49 = vpop.permute.xlu1 %6121  ;;  %v6150_v15 = vpop.permute.xlu0 %6149 }
0x3764   : > { %v6125_v8 = vmul.f32 %v6122_v49, %v9443_v40  ;;  %v6153_v56 = vmul.f32 %v6150_v15, %v9454_v58 }
0x3766   : > { %v6141_v36 = vadd.f32 %v6139_v60, %v6125_v8 }
0x3767   : > { %v6159_v13 = vpop.permute.xlu1 %6158  ;;  %v6164_v41 = vpop.permute.xlu0 %6163 }
0x3768   : > { %v6155_v35 = vadd.f32 %v6153_v56, %v6141_v36  ;;  %v6166_v18 = vmul.f32 %v6159_v13, %v9451_v7  ;;  %v6167_v57 = vmul.f32 %v6164_v41, %v9458_v10 }
0x376a   : > { %v6168_v50 = vadd.f32 %v6166_v18, %v6154_v0  ;;  %v6169_v40 = vadd.f32 %v6167_v57, %v6155_v35 }
0x376b   : > { %v6171_v27 = vpop.permute.xlu0 %6170 }
0x376c   : > { %v6237_v6 = vrot.slane %v6168_v50, 7  ;;  %6272 = vst.msk [vmem:[%s9485_s5] sm:$0xff] %vm908_vm2, %v6168_v50  ;;  %v6238_v58 = vrot.slane %v6169_v40, 7  ;;  %6273 = vst.msk [vmem:[%s9485_s5 + $0x8] sm:$0xff] %vm908_vm2, %v6169_v40 }
0x376e   : > { %v6243_v7 = vsub.f32 %v8955_v42, %v6237_v6  ;;  %v6239_v10 = vsel %vm1200_vm8, %v6237_v6, %v6238_v58  ;;  %v6245_v39 = vsub.f32 %v8963_v24, %v6238_v58 }
0x376f   : > { %v6244_v29 = vsub.f32 %v8959_v11, %v6239_v10  ;;  %v6177_v31 = vpop.permute.xlu0 %6176 }
0x3770   : > { %v6246_v48 = vmul.f32 %v6243_v7, %v6243_v7  ;;  %v6248_v19 = vmul.f32 %v6245_v39, %v6245_v39  ;;  %v6195_v5 = vsel %vm6194_vm1, %v6171_v27, %v6177_v31 }
0x3771   : > { %v6247_v3 = vmul.f32 %v6244_v29, %v6244_v29 }
0x3772   : > { %v6252_v38 = vrot.slane %v6246_v48, 1  ;;  %v6255_v52 = vrot.slane %v6248_v19, 1 }
0x3773   : > { %v6183_v47 = vpop.permute.xlu0 %6182  ;;  %v6253_v20 = vrot.slane %v6247_v3, 1 }
0x3774   : > { %v6198_v30 = vsel %vm6197_vm3, %v6195_v5, %v6183_v47 }
0x3775   : > { %v6254_v62 = vsel %vm4042_vm12, %v6252_v38, %v6253_v20  ;;  %v6256_v21 = vsel %vm4042_vm12, %v6253_v20, %v6255_v52 }
0x3776   : > { %v6259_v42 = vsel %vm908_vm2, %v6254_v62, 0.0  ;;  %v6260_v16 = vsel %vm908_vm2, %v6256_v21, 0.0 }
0x3777   : > { %v6173_v33 = vpop.permute.xlu0 %6172  ;;  %v6261_v24 = vadd.f32 %v6260_v16, %v6259_v42 }
0x3779   : > { %6262 = vadd.xlane.f32.xlu1 %v6261_v24 }
0x377b   : > { %v6179_v11 = vpop.permute.xlu0 %6178 }
0x377c   : > { %v6196_v4 = vsel %vm6194_vm1, %v6173_v33, %v6179_v11 }
0x377f   : > { %v6189_v1 = vpop.permute.xlu0 %6188 }
0x3780   : > { %v6201_v54 = vsel %vm6200_vm4, %v6198_v30, %v6189_v1 }
0x3781   : > { %6203 = vxpose.xlu0.b32.start [1/2] (short) (narrow) %v6201_v54, 8 }
0x3783   : > { %v6185_v63 = vpop.permute.xlu0 %6184 }
0x3784   : > { %v6199_v14 = vsel %vm6197_vm3, %v6196_v4, %v6185_v63 }
0x3787   : > { %v6191_v53 = vpop.permute.xlu0 %6190 }
0x3788   : > { %v6202_v25 = vsel %vm6200_vm4, %v6199_v14, %v6191_v53 }
0x3789   : > { %6204 = vxpose.xlu0.b32.end [2/2] (short) (narrow) %v6202_v25, 8 }
0x378a   : > { %6275 = vrot.lane.b32.xlu1 %v9376_v32, %s9613_s9 }
0x378b   : > { %v6281_v59 = vpop.permute.xlu0 %6280 }
0x378c   : > { %v6283_v23 = vsel %vm2039_vm9, %v9329_v17, %v6281_v59 }
0x378d   : > { %6284 = vst.msk [vmem:[%s9485_s5 + $0x14] sm:$0xf] %vm4344_vm13, %v6283_v23 }
0x3805   : > { %v6219_v46 = vpop.trf.xlu0 }
0x3806   : > { %v6263_v2 = vpop.xlane.xlu1 %6262 }
0x3807   : > { %v6264_v12 = vrot.slane %v6263_v2, 4 }
0x3809   : > { %v6265_v43 = vadd.f32 %v6264_v12, %v6263_v2 }
0x380a   : > { %v6276_v61 = vpop.permute.xlu1 %6275 }
0x380b   : > { %v6266_v37 = vrot.slane %v6265_v43, 2  ;;  %6278 = vst.msk [vmem:[%s9485_s5 + $0x10] sm:$0xf] %vm4344_vm13, %v6276_v61 }
0x380d   : > { %v6267_v9 = vadd.f32 %v6266_v37, %v6265_v43 }
0x380f   : > { %v6268_v22 = vrot.slane %v6267_v9, 1 }
0x3811   : > { %v6269_v26 = vadd.f32 %v6268_v22, %v6267_v9 }
0x3813   : > { %7557 = vpush %v6269_v26 }
0x3844   : > { %s7558_s4 = spop %7557 }
0x3845   : > { %v6271_v32 = vstv %s7558_s4 }
0x3846   : > { %v6285_v45 = vsel %vm2039_vm9, %v6219_v46, %v6271_v32 }
0x3847   : > { %6286 = vst.msk [vmem:[%s9485_s5 + $0x18] sm:$0xf] %vm4344_vm13, %v6285_v45 }
0x3848 PF: > { %s9631_s9 = sld [smem:[#allocation2_spill]] }
0x384e   : > { %s37_s7 = sadd.s32 1, %s9631_s9  }
0x384f   : > { %p34_p4 = scmp.ge.s32.totalorder %s37_s7, 4  }
0x3851   :  { %36 = sbr.rel (!%p34_p4) target bundleno = 13 (0xd), region = 166 }

</bundles_post_ra>
